<compile_context>
chip_gen: v6e
topology: v6e:2x2x1
jax: 0.10.0
libtpu: 0.0.40
codegen_flags: <defaults>
</compile_context>

<pallas_src>
import functools

import jax
import jax.numpy as jnp
import numpy as np
from jax import lax
from jax.experimental import pallas as pl
from jax.experimental.pallas import tpu as pltpu

HID_CHANNELS = 32
KERNEL_SIZE = 4
HIDDEN_DIM = 256


# ------------------------- fused MLP (lin1 -> lin3) ------------------------ #
def _mlp_kernel(z_ref, w1_ref, b1_ref, w2_ref, b2_ref, w3_ref, b3_ref, o_ref):
    h = jnp.dot(z_ref[...], w1_ref[...], preferred_element_type=jnp.float32)
    h = jnp.maximum(h + b1_ref[...], 0.0)
    h = jnp.dot(h, w2_ref[...], preferred_element_type=jnp.float32)
    h = jnp.maximum(h + b2_ref[...], 0.0)
    h = jnp.dot(h, w3_ref[...], preferred_element_type=jnp.float32)
    o_ref[...] = jnp.maximum(h + b3_ref[...], 0.0)


def fused_mlp(z, w1, b1, w2, b2, w3, b3):
    B, Din = z.shape
    D1, D2, D3 = w1.shape[1], w2.shape[1], w3.shape[1]
    spec2 = lambda shape: pl.BlockSpec(shape, lambda i: (0, 0))
    return pl.pallas_call(
        _mlp_kernel,
        out_shape=jax.ShapeDtypeStruct((B, D3), jnp.float32),
        grid=(1,),
        in_specs=[
            spec2((B, Din)),
            spec2((Din, D1)), spec2((1, D1)),
            spec2((D1, D2)), spec2((1, D2)),
            spec2((D2, D3)), spec2((1, D3)),
        ],
        out_specs=spec2((B, D3)),
    )(z, w1, b1.reshape(1, D1), w2, b2.reshape(1, D2), w3, b3.reshape(1, D3))


# ----------------- transposed conv via sub-pixel phases -------------------- #
def _build_phase_weights(w_pt):
    """PyTorch ConvTranspose2d weight (Cin, Cout, 4, 4) -> (9, Cin, 4*Cout).

    Index t = sy*3 + sx addresses the padded-input shift (sy, sx) in the 3x3
    neighbourhood; the 4 output phases (py, px) are concatenated along columns
    (phase = py*2 + px).  Entries for (shift, phase) combos that do not
    contribute are zero.
    """
    Cin, Cout, K, _ = w_pt.shape
    zeros = jnp.zeros((Cin, Cout), w_pt.dtype)
    mats = []
    for sy in range(3):
        for sx in range(3):
            cols = []
            for py in range(2):
                for px in range(2):
                    if 0 <= sy - py <= 1 and 0 <= sx - px <= 1:
                        cols.append(w_pt[:, :, 3 - 2 * sy + py, 3 - 2 * sx + px])
                    else:
                        cols.append(zeros)
            mats.append(jnp.concatenate(cols, axis=1))      # (Cin, 4*Cout)
    return jnp.stack(mats, axis=0)                          # (9, Cin, 4*Cout)


def _convt_phase_kernel(x_ref, g_ref, b_ref, o_ref, *, Wp, Mbig, act):
    # x_ref: (1, S, Cin)       zero-padded image, spatial dims flattened.
    # g_ref: (9, Cin, 4*Cout)  per-shift weights, phases along columns.
    # b_ref: (1, 4*Cout)
    # o_ref: (1, Mbig, 4*Cout) rows = p*Wp + q; columns q >= W are junk and
    #                          are stripped by the wrapper.
    acc = None
    for t in range(9):
        sy, sx = divmod(t, 3)
        s = sy * Wp + sx
        slab = x_ref[0, s:s + Mbig, :]                       # (Mbig, Cin)
        d = jnp.dot(slab, g_ref[t], preferred_element_type=jnp.float32)
        acc = d if acc is None else acc + d
    o_ref[0] = act(acc + b_ref[...])


def conv_transpose2d_phase(x_nhwc, w_pt, b, act):
    """ConvTranspose2d(Cin, Cout, 4, stride=2, padding=1) on NHWC input.

    Returns the phase-blocked kernel output (B, H*(W+2), 4*Cout); use the
    _deinterleave_* helpers to recover NHWC / NCHW.
    """
    B, H, W, Cin = x_nhwc.shape
    Cin_w, Cout, K, _ = w_pt.shape
    assert Cin_w == Cin and K == KERNEL_SIZE
    Hp, Wp = H + 2, W + 2
    Mbig = H * Wp                     # includes 2 junk columns per output row
    S = Hp * Wp + 2                   # +2 rows so the (sy=2, sx=2) shift fits

    # zero-pad one ring, flatten spatial, append 2 extra zero rows.
    xp = jnp.pad(x_nhwc, ((0, 0), (1, 1), (1, 1), (0, 0)))
    xf = jnp.pad(xp.reshape(B, Hp * Wp, Cin), ((0, 0), (0, 2), (0, 0)))

    g = _build_phase_weights(w_pt)                 # (9, Cin, 4*Cout)
    b4 = jnp.tile(b, 4).reshape(1, 4 * Cout)       # bias per phase column

    return pl.pallas_call(
        functools.partial(_convt_phase_kernel, Wp=Wp, Mbig=Mbig, act=act),
        out_shape=jax.ShapeDtypeStruct((B, Mbig, 4 * Cout), jnp.float32),
        grid=(B,),
        in_specs=[
            pl.BlockSpec((1, S, Cin), lambda i: (i, 0, 0)),
            pl.BlockSpec((9, Cin, 4 * Cout), lambda i: (0, 0, 0)),
            pl.BlockSpec((1, 4 * Cout), lambda i: (0, 0)),
        ],
        out_specs=pl.BlockSpec((1, Mbig, 4 * Cout), lambda i: (i, 0, 0)),
        compiler_params=pltpu.CompilerParams(
            dimension_semantics=("parallel",),
            vmem_limit_bytes=32 * 1024 * 1024,
        ),
    )(xf, g, b4)


def _deinterleave_nhwc(o, B, H, W, Cout):
    Wp = W + 2
    y = o.reshape(B, H, Wp, 2, 2, Cout)[:, :, :W]      # drop junk columns
    y = jnp.transpose(y, (0, 1, 3, 2, 4, 5))           # (B, H, 2, W, 2, C)
    return y.reshape(B, 2 * H, 2 * W, Cout)


def _deinterleave_nchw(o, B, H, W, Cout):
    Wp = W + 2
    y = o.reshape(B, H, Wp, 2, 2, Cout)[:, :, :W]
    y = jnp.transpose(y, (0, 5, 1, 3, 2, 4))           # (B, C, H, 2, W, 2)
    return y.reshape(B, Cout, 2 * H, 2 * W)


# --------------------------- parameter init -------------------------------- #
def init_params(key, latent_dim, img_size):
    n_chan = img_size[0]
    ks = jax.random.split(key, 8)

    def lin_init(k, fin, fout):
        kw, kb = jax.random.split(k)
        lim = 1.0 / np.sqrt(fin)
        return (
            jax.random.uniform(kw, (fin, fout), jnp.float32, -lim, lim),
            jax.random.uniform(kb, (fout,), jnp.float32, -lim, lim),
        )

    def convt_init(k, cin, cout):
        kw, kb = jax.random.split(k)
        lim = 1.0 / np.sqrt(cin * KERNEL_SIZE * KERNEL_SIZE)
        return (
            jax.random.uniform(
                kw, (cin, cout, KERNEL_SIZE, KERNEL_SIZE), jnp.float32, -lim, lim
            ),
            jax.random.uniform(kb, (cout,), jnp.float32, -lim, lim),
        )

    params = {
        "lin1": lin_init(ks[0], latent_dim, HIDDEN_DIM),
        "lin2": lin_init(ks[1], HIDDEN_DIM, HIDDEN_DIM),
        "lin3": lin_init(ks[2], HIDDEN_DIM, HID_CHANNELS * KERNEL_SIZE * KERNEL_SIZE),
        "convT1": convt_init(ks[3], HID_CHANNELS, HID_CHANNELS),
        "convT2": convt_init(ks[4], HID_CHANNELS, HID_CHANNELS),
        "convT3": convt_init(ks[5], HID_CHANNELS, n_chan),
    }
    if img_size[1] == img_size[2] == 64:
        params["convT_64"] = convt_init(ks[6], HID_CHANNELS, HID_CHANNELS)
    # TODO(synk): 256x256 branch (convT_256 / convT_128 / convT_64 chain) not
    # instantiated at these synthetic shapes; it would reuse the same kernel.
    return params


# ------------------------------ forward ------------------------------------ #
def decoder_burgess_forward(params, z, img_size):
    relu = lambda v: jnp.maximum(v, 0.0)
    sigmoid = jax.nn.sigmoid
    B = z.shape[0]

    w1, b1 = params["lin1"]
    w2, b2 = params["lin2"]
    w3, b3 = params["lin3"]

    # Permute lin3 columns so the fused MLP's output is already (h, w, c)-major
    # (NHWC); torch's view(B, 32, 4, 4) is (c, h, w)-major.
    hw = KERNEL_SIZE * KERNEL_SIZE
    j = jnp.arange(HID_CHANNELS * hw)
    perm = (j % HID_CHANNELS) * hw + (j // HID_CHANNELS)

    x = fused_mlp(z, w1, b1, w2, b2, w3[:, perm], b3[perm])
    x = x.reshape(B, KERNEL_SIZE, KERNEL_SIZE, HID_CHANNELS)   # NHWC

    def conv_block(x, wb, act, to_nchw=False):
        Bx, H, W, _ = x.shape
        Cout = wb[0].shape[1]
        o = conv_transpose2d_phase(x, wb[0], wb[1], act)
        if to_nchw:
            return _deinterleave_nchw(o, Bx, H, W, Cout)
        return _deinterleave_nhwc(o, Bx, H, W, Cout)

    if img_size[1] == img_size[2] == 64:
        x = conv_block(x, params["convT_64"], relu)
    x = conv_block(x, params["convT1"], relu)
    x = conv_block(x, params["convT2"], relu)
    x = conv_block(x, params["convT3"], sigmoid, to_nchw=True)   # NCHW out
    return x


# --------------------------- pure-JAX reference ----------------------------- #
def reference_forward(params, z, img_size):
    relu = lambda v: jnp.maximum(v, 0.0)

    def convt_ref(x, w_pt, b):
        w_hwio = jnp.flip(jnp.transpose(w_pt, (2, 3, 0, 1)), axis=(0, 1))
        y = lax.conv_general_dilated(
            x, w_hwio, window_strides=(1, 1), padding=((2, 2), (2, 2)),
            lhs_dilation=(2, 2),
            dimension_numbers=("NHWC", "HWIO", "NHWC"),
        )
        return y + b

    x = relu(z @ params["lin1"][0] + params["lin1"][1])
    x = relu(x @ params["lin2"][0] + params["lin2"][1])
    x = relu(x @ params["lin3"][0] + params["lin3"][1])
    B = z.shape[0]
    x = jnp.transpose(
        x.reshape(B, HID_CHANNELS, KERNEL_SIZE, KERNEL_SIZE), (0, 2, 3, 1)
    )
    if img_size[1] == img_size[2] == 64:
        x = relu(convt_ref(x, *params["convT_64"]))
    x = relu(convt_ref(x, *params["convT1"]))
    x = relu(convt_ref(x, *params["convT2"]))
    x = jax.nn.sigmoid(convt_ref(x, *params["convT3"]))
    return jnp.transpose(x, (0, 3, 1, 2))


if __name__ == "__main__":
    img_size = (1, 32, 32)   # (n_chan, H, W) -> skips the 64/256 extra convs
    latent_dim = 10
    batch = 2

    key = jax.random.PRNGKey(0)
    kp, kz = jax.random.split(key)
    params = init_params(kp, latent_dim, img_size)
    z = jax.random.normal(kz, (batch, latent_dim), jnp.float32)

    fwd = jax.jit(functools.partial(decoder_burgess_forward, img_size=img_size))
    out = jax.block_until_ready(fwd(params, z))
    assert out.shape == (batch,) + img_size, out.shape

    ref = jax.block_until_ready(reference_forward(params, z, img_size))
    np.testing.assert_allclose(np.asarray(out), np.asarray(ref), atol=5e-3, rtol=5e-3)

    print("KERNEL_OK")
</pallas_src>

<mosaic_0001>
module attributes {stable_mosaic.version = 11 : i64} {
  func.func @_mlp_kernel(%arg0: i32, %arg1: memref<2x10xf32, #tpu.memory_space<vmem>>, %arg2: memref<10x256xf32, #tpu.memory_space<vmem>>, %arg3: memref<1x256xf32, #tpu.memory_space<vmem>>, %arg4: memref<256x256xf32, #tpu.memory_space<vmem>>, %arg5: memref<1x256xf32, #tpu.memory_space<vmem>>, %arg6: memref<256x512xf32, #tpu.memory_space<vmem>>, %arg7: memref<1x512xf32, #tpu.memory_space<vmem>>, %arg8: memref<2x512xf32, #tpu.memory_space<vmem>>) attributes {dimension_semantics = [#tpu.dimension_semantics<arbitrary>], iteration_bounds = array<i64: 1>, scalar_prefetch = 0 : i64, scratch_operands = 0 : i64, tpu.core_type = #tpu.core_type<tc>, window_params = [{pipeline_mode = #tpu.pipeline_mode<synchronous>, transform_indices = @transform_0, window_bounds = array<i64: 2, 10>}, {pipeline_mode = #tpu.pipeline_mode<synchronous>, transform_indices = @transform_1, window_bounds = array<i64: 10, 256>}, {pipeline_mode = #tpu.pipeline_mode<synchronous>, transform_indices = @transform_2, window_bounds = array<i64: 1, 256>}, {pipeline_mode = #tpu.pipeline_mode<synchronous>, transform_indices = @transform_3, window_bounds = array<i64: 256, 256>}, {pipeline_mode = #tpu.pipeline_mode<synchronous>, transform_indices = @transform_4, window_bounds = array<i64: 1, 256>}, {pipeline_mode = #tpu.pipeline_mode<synchronous>, transform_indices = @transform_5, window_bounds = array<i64: 256, 512>}, {pipeline_mode = #tpu.pipeline_mode<synchronous>, transform_indices = @transform_6, window_bounds = array<i64: 1, 512>}, {pipeline_mode = #tpu.pipeline_mode<synchronous>, transform_indices = @transform_7, window_bounds = array<i64: 2, 512>}]} {
    %c0 = arith.constant 0 : index
    %c0_0 = arith.constant 0 : index
    %0 = vector.load %arg1[%c0, %c0_0] : memref<2x10xf32, #tpu.memory_space<vmem>>, vector<2x10xf32>
    %c0_1 = arith.constant 0 : index
    %c0_2 = arith.constant 0 : index
    %1 = vector.load %arg2[%c0_1, %c0_2] : memref<10x256xf32, #tpu.memory_space<vmem>>, vector<10x256xf32>
    %cst = arith.constant dense<0.000000e+00> : vector<2x256xf32>
    %2 = tpu.matmul %0, %1, %cst {dimension_numbers = #tpu.dot_dimension_numbers<[1], [0], [0], [1], [0, 0, 1, 1], [], []>} : vector<2x10xf32>, vector<10x256xf32>, vector<2x256xf32> -> vector<2x256xf32>
    %c0_3 = arith.constant 0 : index
    %c0_4 = arith.constant 0 : index
    %3 = vector.load %arg3[%c0_3, %c0_4] : memref<1x256xf32, #tpu.memory_space<vmem>>, vector<1x256xf32>
    %4 = vector.broadcast %3 : vector<1x256xf32> to vector<2x256xf32>
    %5 = arith.addf %2, %4 : vector<2x256xf32>
    %cst_5 = arith.constant 0.000000e+00 : f32
    %6 = vector.broadcast %cst_5 : f32 to vector<2x256xf32>
    %7 = arith.maximumf %5, %6 : vector<2x256xf32>
    %c0_6 = arith.constant 0 : index
    %c0_7 = arith.constant 0 : index
    %8 = vector.load %arg4[%c0_6, %c0_7] : memref<256x256xf32, #tpu.memory_space<vmem>>, vector<256x256xf32>
    %cst_8 = arith.constant dense<0.000000e+00> : vector<2x256xf32>
    %9 = tpu.matmul %7, %8, %cst_8 {dimension_numbers = #tpu.dot_dimension_numbers<[1], [0], [0], [1], [0, 0, 1, 1], [], []>} : vector<2x256xf32>, vector<256x256xf32>, vector<2x256xf32> -> vector<2x256xf32>
    %c0_9 = arith.constant 0 : index
    %c0_10 = arith.constant 0 : index
    %10 = vector.load %arg5[%c0_9, %c0_10] : memref<1x256xf32, #tpu.memory_space<vmem>>, vector<1x256xf32>
    %11 = vector.broadcast %10 : vector<1x256xf32> to vector<2x256xf32>
    %12 = arith.addf %9, %11 : vector<2x256xf32>
    %cst_11 = arith.constant 0.000000e+00 : f32
    %13 = vector.broadcast %cst_11 : f32 to vector<2x256xf32>
    %14 = arith.maximumf %12, %13 : vector<2x256xf32>
    %c0_12 = arith.constant 0 : index
    %c0_13 = arith.constant 0 : index
    %15 = vector.load %arg6[%c0_12, %c0_13] : memref<256x512xf32, #tpu.memory_space<vmem>>, vector<256x512xf32>
    %cst_14 = arith.constant dense<0.000000e+00> : vector<2x512xf32>
    %16 = tpu.matmul %14, %15, %cst_14 {dimension_numbers = #tpu.dot_dimension_numbers<[1], [0], [0], [1], [0, 0, 1, 1], [], []>} : vector<2x256xf32>, vector<256x512xf32>, vector<2x512xf32> -> vector<2x512xf32>
    %c0_15 = arith.constant 0 : index
    %c0_16 = arith.constant 0 : index
    %17 = vector.load %arg7[%c0_15, %c0_16] : memref<1x512xf32, #tpu.memory_space<vmem>>, vector<1x512xf32>
    %18 = vector.broadcast %17 : vector<1x512xf32> to vector<2x512xf32>
    %19 = arith.addf %16, %18 : vector<2x512xf32>
    %cst_17 = arith.constant 0.000000e+00 : f32
    %20 = vector.broadcast %cst_17 : f32 to vector<2x512xf32>
    %21 = arith.maximumf %19, %20 : vector<2x512xf32>
    %c0_18 = arith.constant 0 : index
    %c0_19 = arith.constant 0 : index
    %22 = vector.load %arg8[%c0_18, %c0_19] : memref<2x512xf32, #tpu.memory_space<vmem>>, vector<2x512xf32>
    tpu.vector_store %arg8[%c0_18, %c0_19], %21 {strides = array<i32>} : memref<2x512xf32, #tpu.memory_space<vmem>>, vector<2x512xf32>,
    return
  }
  func.func @transform_0(%arg0: i32) -> (i32, i32) {
    %c0_i32 = arith.constant 0 : i32
    %c0_i32_0 = arith.constant 0 : i32
    %c0_i32_1 = arith.constant 0 : i32
    return %c0_i32, %c0_i32_0 : i32, i32
  }
  func.func @transform_1(%arg0: i32) -> (i32, i32) {
    %c0_i32 = arith.constant 0 : i32
    %c0_i32_0 = arith.constant 0 : i32
    %c0_i32_1 = arith.constant 0 : i32
    return %c0_i32, %c0_i32_0 : i32, i32
  }
  func.func @transform_2(%arg0: i32) -> (i32, i32) {
    %c0_i32 = arith.constant 0 : i32
    %c0_i32_0 = arith.constant 0 : i32
    %c0_i32_1 = arith.constant 0 : i32
    return %c0_i32, %c0_i32_0 : i32, i32
  }
  func.func @transform_3(%arg0: i32) -> (i32, i32) {
    %c0_i32 = arith.constant 0 : i32
    %c0_i32_0 = arith.constant 0 : i32
    %c0_i32_1 = arith.constant 0 : i32
    return %c0_i32, %c0_i32_0 : i32, i32
  }
  func.func @transform_4(%arg0: i32) -> (i32, i32) {
    %c0_i32 = arith.constant 0 : i32
    %c0_i32_0 = arith.constant 0 : i32
    %c0_i32_1 = arith.constant 0 : i32
    return %c0_i32, %c0_i32_0 : i32, i32
  }
  func.func @transform_5(%arg0: i32) -> (i32, i32) {
    %c0_i32 = arith.constant 0 : i32
    %c0_i32_0 = arith.constant 0 : i32
    %c0_i32_1 = arith.constant 0 : i32
    return %c0_i32, %c0_i32_0 : i32, i32
  }
  func.func @transform_6(%arg0: i32) -> (i32, i32) {
    %c0_i32 = arith.constant 0 : i32
    %c0_i32_0 = arith.constant 0 : i32
    %c0_i32_1 = arith.constant 0 : i32
    return %c0_i32, %c0_i32_0 : i32, i32
  }
  func.func @transform_7(%arg0: i32) -> (i32, i32) {
    %c0_i32 = arith.constant 0 : i32
    %c0_i32_0 = arith.constant 0 : i32
    %c0_i32_1 = arith.constant 0 : i32
    return %c0_i32, %c0_i32_0 : i32, i32
  }
}

module attributes {stable_mosaic.version = 11 : i64} {
  func.func @_convt_phase_kernel(%arg0: i32, %arg1: memref<1x38x32xf32, #tpu.memory_space<vmem>>, %arg2: memref<9x32x128xf32, #tpu.memory_space<vmem>>, %arg3: memref<1x128xf32, #tpu.memory_space<vmem>>, %arg4: memref<1x24x128xf32, #tpu.memory_space<vmem>>) attributes {dimension_semantics = [#tpu.dimension_semantics<parallel>], iteration_bounds = array<i64: 2>, scalar_prefetch = 0 : i64, scratch_operands = 0 : i64, tpu.core_type = #tpu.core_type<tc>, window_params = [{transform_indices = @transform_0, window_bounds = array<i64: 1, 38, 32>}, {pipeline_mode = #tpu.pipeline_mode<synchronous>, transform_indices = @transform_1, window_bounds = array<i64: 9, 32, 128>}, {pipeline_mode = #tpu.pipeline_mode<synchronous>, transform_indices = @transform_2, window_bounds = array<i64: 1, 128>}, {transform_indices = @transform_3, window_bounds = array<i64: 1, 24, 128>}]} {
    %c0 = arith.constant 0 : index
    %c0_0 = arith.constant 0 : index
    %c0_1 = arith.constant 0 : index
    %0 = vector.load %arg1[%c0, %c0_0, %c0_1] : memref<1x38x32xf32, #tpu.memory_space<vmem>>, vector<1x24x32xf32>
    %1 = vector.shape_cast %0 : vector<1x24x32xf32> to vector<24x32xf32>
    %c0_2 = arith.constant 0 : index
    %c0_3 = arith.constant 0 : index
    %c0_4 = arith.constant 0 : index
    %2 = vector.load %arg2[%c0_2, %c0_3, %c0_4] : memref<9x32x128xf32, #tpu.memory_space<vmem>>, vector<1x32x128xf32>
    %3 = vector.shape_cast %2 : vector<1x32x128xf32> to vector<32x128xf32>
    %cst = arith.constant dense<0.000000e+00> : vector<24x128xf32>
    %4 = tpu.matmul %1, %3, %cst {dimension_numbers = #tpu.dot_dimension_numbers<[1], [0], [0], [1], [0, 0, 1, 1], [], []>} : vector<24x32xf32>, vector<32x128xf32>, vector<24x128xf32> -> vector<24x128xf32>
    %c0_5 = arith.constant 0 : index
    %c1 = arith.constant 1 : index
    %c0_6 = arith.constant 0 : index
    %5 = vector.load %arg1[%c0_5, %c1, %c0_6] : memref<1x38x32xf32, #tpu.memory_space<vmem>>, vector<1x24x32xf32>
    %6 = vector.shape_cast %5 : vector<1x24x32xf32> to vector<24x32xf32>
    %c1_7 = arith.constant 1 : index
    %c0_8 = arith.constant 0 : index
    %c0_9 = arith.constant 0 : index
    %7 = vector.load %arg2[%c1_7, %c0_8, %c0_9] : memref<9x32x128xf32, #tpu.memory_space<vmem>>, vector<1x32x128xf32>
    %8 = vector.shape_cast %7 : vector<1x32x128xf32> to vector<32x128xf32>
    %cst_10 = arith.constant dense<0.000000e+00> : vector<24x128xf32>
    %9 = tpu.matmul %6, %8, %cst_10 {dimension_numbers = #tpu.dot_dimension_numbers<[1], [0], [0], [1], [0, 0, 1, 1], [], []>} : vector<24x32xf32>, vector<32x128xf32>, vector<24x128xf32> -> vector<24x128xf32>
    %10 = arith.addf %4, %9 : vector<24x128xf32>
    %c0_11 = arith.constant 0 : index
    %c2 = arith.constant 2 : index
    %c0_12 = arith.constant 0 : index
    %11 = vector.load %arg1[%c0_11, %c2, %c0_12] : memref<1x38x32xf32, #tpu.memory_space<vmem>>, vector<1x24x32xf32>
    %12 = vector.shape_cast %11 : vector<1x24x32xf32> to vector<24x32xf32>
    %c2_13 = arith.constant 2 : index
    %c0_14 = arith.constant 0 : index
    %c0_15 = arith.constant 0 : index
    %13 = vector.load %arg2[%c2_13, %c0_14, %c0_15] : memref<9x32x128xf32, #tpu.memory_space<vmem>>, vector<1x32x128xf32>
    %14 = vector.shape_cast %13 : vector<1x32x128xf32> to vector<32x128xf32>
    %cst_16 = arith.constant dense<0.000000e+00> : vector<24x128xf32>
    %15 = tpu.matmul %12, %14, %cst_16 {dimension_numbers = #tpu.dot_dimension_numbers<[1], [0], [0], [1], [0, 0, 1, 1], [], []>} : vector<24x32xf32>, vector<32x128xf32>, vector<24x128xf32> -> vector<24x128xf32>
    %16 = arith.addf %10, %15 : vector<24x128xf32>
    %c0_17 = arith.constant 0 : index
    %c6 = arith.constant 6 : index
    %c0_18 = arith.constant 0 : index
    %17 = vector.load %arg1[%c0_17, %c6, %c0_18] : memref<1x38x32xf32, #tpu.memory_space<vmem>>, vector<1x24x32xf32>
    %18 = vector.shape_cast %17 : vector<1x24x32xf32> to vector<24x32xf32>
    %c3 = arith.constant 3 : index
    %c0_19 = arith.constant 0 : index
    %c0_20 = arith.constant 0 : index
    %19 = vector.load %arg2[%c3, %c0_19, %c0_20] : memref<9x32x128xf32, #tpu.memory_space<vmem>>, vector<1x32x128xf32>
    %20 = vector.shape_cast %19 : vector<1x32x128xf32> to vector<32x128xf32>
    %cst_21 = arith.constant dense<0.000000e+00> : vector<24x128xf32>
    %21 = tpu.matmul %18, %20, %cst_21 {dimension_numbers = #tpu.dot_dimension_numbers<[1], [0], [0], [1], [0, 0, 1, 1], [], []>} : vector<24x32xf32>, vector<32x128xf32>, vector<24x128xf32> -> vector<24x128xf32>
    %22 = arith.addf %16, %21 : vector<24x128xf32>
    %c0_22 = arith.constant 0 : index
    %c7 = arith.constant 7 : index
    %c0_23 = arith.constant 0 : index
    %23 = vector.load %arg1[%c0_22, %c7, %c0_23] : memref<1x38x32xf32, #tpu.memory_space<vmem>>, vector<1x24x32xf32>
    %24 = vector.shape_cast %23 : vector<1x24x32xf32> to vector<24x32xf32>
    %c4 = arith.constant 4 : index
    %c0_24 = arith.constant 0 : index
    %c0_25 = arith.constant 0 : index
    %25 = vector.load %arg2[%c4, %c0_24, %c0_25] : memref<9x32x128xf32, #tpu.memory_space<vmem>>, vector<1x32x128xf32>
    %26 = vector.shape_cast %25 : vector<1x32x128xf32> to vector<32x128xf32>
    %cst_26 = arith.constant dense<0.000000e+00> : vector<24x128xf32>
    %27 = tpu.matmul %24, %26, %cst_26 {dimension_numbers = #tpu.dot_dimension_numbers<[1], [0], [0], [1], [0, 0, 1, 1], [], []>} : vector<24x32xf32>, vector<32x128xf32>, vector<24x128xf32> -> vector<24x128xf32>
    %28 = arith.addf %22, %27 : vector<24x128xf32>
    %c0_27 = arith.constant 0 : index
    %c8 = arith.constant 8 : index
    %c0_28 = arith.constant 0 : index
    %29 = vector.load %arg1[%c0_27, %c8, %c0_28] : memref<1x38x32xf32, #tpu.memory_space<vmem>>, vector<1x24x32xf32>
    %30 = vector.shape_cast %29 : vector<1x24x32xf32> to vector<24x32xf32>
    %c5 = arith.constant 5 : index
    %c0_29 = arith.constant 0 : index
    %c0_30 = arith.constant 0 : index
    %31 = vector.load %arg2[%c5, %c0_29, %c0_30] : memref<9x32x128xf32, #tpu.memory_space<vmem>>, vector<1x32x128xf32>
    %32 = vector.shape_cast %31 : vector<1x32x128xf32> to vector<32x128xf32>
    %cst_31 = arith.constant dense<0.000000e+00> : vector<24x128xf32>
    %33 = tpu.matmul %30, %32, %cst_31 {dimension_numbers = #tpu.dot_dimension_numbers<[1], [0], [0], [1], [0, 0, 1, 1], [], []>} : vector<24x32xf32>, vector<32x128xf32>, vector<24x128xf32> -> vector<24x128xf32>
    %34 = arith.addf %28, %33 : vector<24x128xf32>
    %c0_32 = arith.constant 0 : index
    %c12 = arith.constant 12 : index
    %c0_33 = arith.constant 0 : index
    %35 = vector.load %arg1[%c0_32, %c12, %c0_33] : memref<1x38x32xf32, #tpu.memory_space<vmem>>, vector<1x24x32xf32>
    %36 = vector.shape_cast %35 : vector<1x24x32xf32> to vector<24x32xf32>
    %c6_34 = arith.constant 6 : index
    %c0_35 = arith.constant 0 : index
    %c0_36 = arith.constant 0 : index
    %37 = vector.load %arg2[%c6_34, %c0_35, %c0_36] : memref<9x32x128xf32, #tpu.memory_space<vmem>>, vector<1x32x128xf32>
    %38 = vector.shape_cast %37 : vector<1x32x128xf32> to vector<32x128xf32>
    %cst_37 = arith.constant dense<0.000000e+00> : vector<24x128xf32>
    %39 = tpu.matmul %36, %38, %cst_37 {dimension_numbers = #tpu.dot_dimension_numbers<[1], [0], [0], [1], [0, 0, 1, 1], [], []>} : vector<24x32xf32>, vector<32x128xf32>, vector<24x128xf32> -> vector<24x128xf32>
    %40 = arith.addf %34, %39 : vector<24x128xf32>
    %c0_38 = arith.constant 0 : index
    %c13 = arith.constant 13 : index
    %c0_39 = arith.constant 0 : index
    %41 = vector.load %arg1[%c0_38, %c13, %c0_39] : memref<1x38x32xf32, #tpu.memory_space<vmem>>, vector<1x24x32xf32>
    %42 = vector.shape_cast %41 : vector<1x24x32xf32> to vector<24x32xf32>
    %c7_40 = arith.constant 7 : index
    %c0_41 = arith.constant 0 : index
    %c0_42 = arith.constant 0 : index
    %43 = vector.load %arg2[%c7_40, %c0_41, %c0_42] : memref<9x32x128xf32, #tpu.memory_space<vmem>>, vector<1x32x128xf32>
    %44 = vector.shape_cast %43 : vector<1x32x128xf32> to vector<32x128xf32>
    %cst_43 = arith.constant dense<0.000000e+00> : vector<24x128xf32>
    %45 = tpu.matmul %42, %44, %cst_43 {dimension_numbers = #tpu.dot_dimension_numbers<[1], [0], [0], [1], [0, 0, 1, 1], [], []>} : vector<24x32xf32>, vector<32x128xf32>, vector<24x128xf32> -> vector<24x128xf32>
    %46 = arith.addf %40, %45 : vector<24x128xf32>
    %c0_44 = arith.constant 0 : index
    %c14 = arith.constant 14 : index
    %c0_45 = arith.constant 0 : index
    %47 = vector.load %arg1[%c0_44, %c14, %c0_45] : memref<1x38x32xf32, #tpu.memory_space<vmem>>, vector<1x24x32xf32>
    %48 = vector.shape_cast %47 : vector<1x24x32xf32> to vector<24x32xf32>
    %c8_46 = arith.constant 8 : index
    %c0_47 = arith.constant 0 : index
    %c0_48 = arith.constant 0 : index
    %49 = vector.load %arg2[%c8_46, %c0_47, %c0_48] : memref<9x32x128xf32, #tpu.memory_space<vmem>>, vector<1x32x128xf32>
    %50 = vector.shape_cast %49 : vector<1x32x128xf32> to vector<32x128xf32>
    %cst_49 = arith.constant dense<0.000000e+00> : vector<24x128xf32>
    %51 = tpu.matmul %48, %50, %cst_49 {dimension_numbers = #tpu.dot_dimension_numbers<[1], [0], [0], [1], [0, 0, 1, 1], [], []>} : vector<24x32xf32>, vector<32x128xf32>, vector<24x128xf32> -> vector<24x128xf32>
    %52 = arith.addf %46, %51 : vector<24x128xf32>
    %c0_50 = arith.constant 0 : index
    %c0_51 = arith.constant 0 : index
    %53 = vector.load %arg3[%c0_50, %c0_51] : memref<1x128xf32, #tpu.memory_space<vmem>>, vector<1x128xf32>
    %54 = vector.broadcast %53 : vector<1x128xf32> to vector<24x128xf32>
    %55 = arith.addf %52, %54 : vector<24x128xf32>
    %cst_52 = arith.constant 0.000000e+00 : f32
    %56 = vector.broadcast %cst_52 : f32 to vector<24x128xf32>
    %57 = arith.maximumf %55, %56 : vector<24x128xf32>
    %c0_53 = arith.constant 0 : index
    %c0_54 = arith.constant 0 : index
    %c0_55 = arith.constant 0 : index
    %58 = vector.load %arg4[%c0_53, %c0_54, %c0_55] : memref<1x24x128xf32, #tpu.memory_space<vmem>>, vector<1x24x128xf32>
    %59 = vector.shape_cast %58 : vector<1x24x128xf32> to vector<24x128xf32>
    %60 = vector.shape_cast %57 : vector<24x128xf32> to vector<1x24x128xf32>
    tpu.vector_store %arg4[%c0_53, %c0_54, %c0_55], %60 {strides = array<i32>} : memref<1x24x128xf32, #tpu.memory_space<vmem>>, vector<1x24x128xf32>,
    return
  }
  func.func @transform_0(%arg0: i32) -> (i32, i32, i32) {
    %c0_i32 = arith.constant 0 : i32
    %c0_i32_0 = arith.constant 0 : i32
    %c0_i32_1 = arith.constant 0 : i32
    return %arg0, %c0_i32, %c0_i32_0 : i32, i32, i32
  }
  func.func @transform_1(%arg0: i32) -> (i32, i32, i32) {
    %c0_i32 = arith.constant 0 : i32
    %c0_i32_0 = arith.constant 0 : i32
    %c0_i32_1 = arith.constant 0 : i32
    %c0_i32_2 = arith.constant 0 : i32
    return %c0_i32, %c0_i32_0, %c0_i32_1 : i32, i32, i32
  }
  func.func @transform_2(%arg0: i32) -> (i32, i32) {
    %c0_i32 = arith.constant 0 : i32
    %c0_i32_0 = arith.constant 0 : i32
    %c0_i32_1 = arith.constant 0 : i32
    return %c0_i32, %c0_i32_0 : i32, i32
  }
  func.func @transform_3(%arg0: i32) -> (i32, i32, i32) {
    %c0_i32 = arith.constant 0 : i32
    %c0_i32_0 = arith.constant 0 : i32
    %c0_i32_1 = arith.constant 0 : i32
    return %arg0, %c0_i32, %c0_i32_0 : i32, i32, i32
  }
}

module attributes {stable_mosaic.version = 11 : i64} {
  func.func @_convt_phase_kernel(%arg0: i32, %arg1: memref<1x102x32xf32, #tpu.memory_space<vmem>>, %arg2: memref<9x32x128xf32, #tpu.memory_space<vmem>>, %arg3: memref<1x128xf32, #tpu.memory_space<vmem>>, %arg4: memref<1x80x128xf32, #tpu.memory_space<vmem>>) attributes {dimension_semantics = [#tpu.dimension_semantics<parallel>], iteration_bounds = array<i64: 2>, scalar_prefetch = 0 : i64, scratch_operands = 0 : i64, tpu.core_type = #tpu.core_type<tc>, window_params = [{transform_indices = @transform_0, window_bounds = array<i64: 1, 102, 32>}, {pipeline_mode = #tpu.pipeline_mode<synchronous>, transform_indices = @transform_1, window_bounds = array<i64: 9, 32, 128>}, {pipeline_mode = #tpu.pipeline_mode<synchronous>, transform_indices = @transform_2, window_bounds = array<i64: 1, 128>}, {transform_indices = @transform_3, window_bounds = array<i64: 1, 80, 128>}]} {
    %c0 = arith.constant 0 : index
    %c0_0 = arith.constant 0 : index
    %c0_1 = arith.constant 0 : index
    %0 = vector.load %arg1[%c0, %c0_0, %c0_1] : memref<1x102x32xf32, #tpu.memory_space<vmem>>, vector<1x80x32xf32>
    %1 = vector.shape_cast %0 : vector<1x80x32xf32> to vector<80x32xf32>
    %c0_2 = arith.constant 0 : index
    %c0_3 = arith.constant 0 : index
    %c0_4 = arith.constant 0 : index
    %2 = vector.load %arg2[%c0_2, %c0_3, %c0_4] : memref<9x32x128xf32, #tpu.memory_space<vmem>>, vector<1x32x128xf32>
    %3 = vector.shape_cast %2 : vector<1x32x128xf32> to vector<32x128xf32>
    %cst = arith.constant dense<0.000000e+00> : vector<80x128xf32>
    %4 = tpu.matmul %1, %3, %cst {dimension_numbers = #tpu.dot_dimension_numbers<[1], [0], [0], [1], [0, 0, 1, 1], [], []>} : vector<80x32xf32>, vector<32x128xf32>, vector<80x128xf32> -> vector<80x128xf32>
    %c0_5 = arith.constant 0 : index
    %c1 = arith.constant 1 : index
    %c0_6 = arith.constant 0 : index
    %5 = vector.load %arg1[%c0_5, %c1, %c0_6] : memref<1x102x32xf32, #tpu.memory_space<vmem>>, vector<1x80x32xf32>
    %6 = vector.shape_cast %5 : vector<1x80x32xf32> to vector<80x32xf32>
    %c1_7 = arith.constant 1 : index
    %c0_8 = arith.constant 0 : index
    %c0_9 = arith.constant 0 : index
    %7 = vector.load %arg2[%c1_7, %c0_8, %c0_9] : memref<9x32x128xf32, #tpu.memory_space<vmem>>, vector<1x32x128xf32>
    %8 = vector.shape_cast %7 : vector<1x32x128xf32> to vector<32x128xf32>
    %cst_10 = arith.constant dense<0.000000e+00> : vector<80x128xf32>
    %9 = tpu.matmul %6, %8, %cst_10 {dimension_numbers = #tpu.dot_dimension_numbers<[1], [0], [0], [1], [0, 0, 1, 1], [], []>} : vector<80x32xf32>, vector<32x128xf32>, vector<80x128xf32> -> vector<80x128xf32>
    %10 = arith.addf %4, %9 : vector<80x128xf32>
    %c0_11 = arith.constant 0 : index
    %c2 = arith.constant 2 : index
    %c0_12 = arith.constant 0 : index
    %11 = vector.load %arg1[%c0_11, %c2, %c0_12] : memref<1x102x32xf32, #tpu.memory_space<vmem>>, vector<1x80x32xf32>
    %12 = vector.shape_cast %11 : vector<1x80x32xf32> to vector<80x32xf32>
    %c2_13 = arith.constant 2 : index
    %c0_14 = arith.constant 0 : index
    %c0_15 = arith.constant 0 : index
    %13 = vector.load %arg2[%c2_13, %c0_14, %c0_15] : memref<9x32x128xf32, #tpu.memory_space<vmem>>, vector<1x32x128xf32>
    %14 = vector.shape_cast %13 : vector<1x32x128xf32> to vector<32x128xf32>
    %cst_16 = arith.constant dense<0.000000e+00> : vector<80x128xf32>
    %15 = tpu.matmul %12, %14, %cst_16 {dimension_numbers = #tpu.dot_dimension_numbers<[1], [0], [0], [1], [0, 0, 1, 1], [], []>} : vector<80x32xf32>, vector<32x128xf32>, vector<80x128xf32> -> vector<80x128xf32>
    %16 = arith.addf %10, %15 : vector<80x128xf32>
    %c0_17 = arith.constant 0 : index
    %c10 = arith.constant 10 : index
    %c0_18 = arith.constant 0 : index
    %17 = vector.load %arg1[%c0_17, %c10, %c0_18] : memref<1x102x32xf32, #tpu.memory_space<vmem>>, vector<1x80x32xf32>
    %18 = vector.shape_cast %17 : vector<1x80x32xf32> to vector<80x32xf32>
    %c3 = arith.constant 3 : index
    %c0_19 = arith.constant 0 : index
    %c0_20 = arith.constant 0 : index
    %19 = vector.load %arg2[%c3, %c0_19, %c0_20] : memref<9x32x128xf32, #tpu.memory_space<vmem>>, vector<1x32x128xf32>
    %20 = vector.shape_cast %19 : vector<1x32x128xf32> to vector<32x128xf32>
    %cst_21 = arith.constant dense<0.000000e+00> : vector<80x128xf32>
    %21 = tpu.matmul %18, %20, %cst_21 {dimension_numbers = #tpu.dot_dimension_numbers<[1], [0], [0], [1], [0, 0, 1, 1], [], []>} : vector<80x32xf32>, vector<32x128xf32>, vector<80x128xf32> -> vector<80x128xf32>
    %22 = arith.addf %16, %21 : vector<80x128xf32>
    %c0_22 = arith.constant 0 : index
    %c11 = arith.constant 11 : index
    %c0_23 = arith.constant 0 : index
    %23 = vector.load %arg1[%c0_22, %c11, %c0_23] : memref<1x102x32xf32, #tpu.memory_space<vmem>>, vector<1x80x32xf32>
    %24 = vector.shape_cast %23 : vector<1x80x32xf32> to vector<80x32xf32>
    %c4 = arith.constant 4 : index
    %c0_24 = arith.constant 0 : index
    %c0_25 = arith.constant 0 : index
    %25 = vector.load %arg2[%c4, %c0_24, %c0_25] : memref<9x32x128xf32, #tpu.memory_space<vmem>>, vector<1x32x128xf32>
    %26 = vector.shape_cast %25 : vector<1x32x128xf32> to vector<32x128xf32>
    %cst_26 = arith.constant dense<0.000000e+00> : vector<80x128xf32>
    %27 = tpu.matmul %24, %26, %cst_26 {dimension_numbers = #tpu.dot_dimension_numbers<[1], [0], [0], [1], [0, 0, 1, 1], [], []>} : vector<80x32xf32>, vector<32x128xf32>, vector<80x128xf32> -> vector<80x128xf32>
    %28 = arith.addf %22, %27 : vector<80x128xf32>
    %c0_27 = arith.constant 0 : index
    %c12 = arith.constant 12 : index
    %c0_28 = arith.constant 0 : index
    %29 = vector.load %arg1[%c0_27, %c12, %c0_28] : memref<1x102x32xf32, #tpu.memory_space<vmem>>, vector<1x80x32xf32>
    %30 = vector.shape_cast %29 : vector<1x80x32xf32> to vector<80x32xf32>
    %c5 = arith.constant 5 : index
    %c0_29 = arith.constant 0 : index
    %c0_30 = arith.constant 0 : index
    %31 = vector.load %arg2[%c5, %c0_29, %c0_30] : memref<9x32x128xf32, #tpu.memory_space<vmem>>, vector<1x32x128xf32>
    %32 = vector.shape_cast %31 : vector<1x32x128xf32> to vector<32x128xf32>
    %cst_31 = arith.constant dense<0.000000e+00> : vector<80x128xf32>
    %33 = tpu.matmul %30, %32, %cst_31 {dimension_numbers = #tpu.dot_dimension_numbers<[1], [0], [0], [1], [0, 0, 1, 1], [], []>} : vector<80x32xf32>, vector<32x128xf32>, vector<80x128xf32> -> vector<80x128xf32>
    %34 = arith.addf %28, %33 : vector<80x128xf32>
    %c0_32 = arith.constant 0 : index
    %c20 = arith.constant 20 : index
    %c0_33 = arith.constant 0 : index
    %35 = vector.load %arg1[%c0_32, %c20, %c0_33] : memref<1x102x32xf32, #tpu.memory_space<vmem>>, vector<1x80x32xf32>
    %36 = vector.shape_cast %35 : vector<1x80x32xf32> to vector<80x32xf32>
    %c6 = arith.constant 6 : index
    %c0_34 = arith.constant 0 : index
    %c0_35 = arith.constant 0 : index
    %37 = vector.load %arg2[%c6, %c0_34, %c0_35] : memref<9x32x128xf32, #tpu.memory_space<vmem>>, vector<1x32x128xf32>
    %38 = vector.shape_cast %37 : vector<1x32x128xf32> to vector<32x128xf32>
    %cst_36 = arith.constant dense<0.000000e+00> : vector<80x128xf32>
    %39 = tpu.matmul %36, %38, %cst_36 {dimension_numbers = #tpu.dot_dimension_numbers<[1], [0], [0], [1], [0, 0, 1, 1], [], []>} : vector<80x32xf32>, vector<32x128xf32>, vector<80x128xf32> -> vector<80x128xf32>
    %40 = arith.addf %34, %39 : vector<80x128xf32>
    %c0_37 = arith.constant 0 : index
    %c21 = arith.constant 21 : index
    %c0_38 = arith.constant 0 : index
    %41 = vector.load %arg1[%c0_37, %c21, %c0_38] : memref<1x102x32xf32, #tpu.memory_space<vmem>>, vector<1x80x32xf32>
    %42 = vector.shape_cast %41 : vector<1x80x32xf32> to vector<80x32xf32>
    %c7 = arith.constant 7 : index
    %c0_39 = arith.constant 0 : index
    %c0_40 = arith.constant 0 : index
    %43 = vector.load %arg2[%c7, %c0_39, %c0_40] : memref<9x32x128xf32, #tpu.memory_space<vmem>>, vector<1x32x128xf32>
    %44 = vector.shape_cast %43 : vector<1x32x128xf32> to vector<32x128xf32>
    %cst_41 = arith.constant dense<0.000000e+00> : vector<80x128xf32>
    %45 = tpu.matmul %42, %44, %cst_41 {dimension_numbers = #tpu.dot_dimension_numbers<[1], [0], [0], [1], [0, 0, 1, 1], [], []>} : vector<80x32xf32>, vector<32x128xf32>, vector<80x128xf32> -> vector<80x128xf32>
    %46 = arith.addf %40, %45 : vector<80x128xf32>
    %c0_42 = arith.constant 0 : index
    %c22 = arith.constant 22 : index
    %c0_43 = arith.constant 0 : index
    %47 = vector.load %arg1[%c0_42, %c22, %c0_43] : memref<1x102x32xf32, #tpu.memory_space<vmem>>, vector<1x80x32xf32>
    %48 = vector.shape_cast %47 : vector<1x80x32xf32> to vector<80x32xf32>
    %c8 = arith.constant 8 : index
    %c0_44 = arith.constant 0 : index
    %c0_45 = arith.constant 0 : index
    %49 = vector.load %arg2[%c8, %c0_44, %c0_45] : memref<9x32x128xf32, #tpu.memory_space<vmem>>, vector<1x32x128xf32>
    %50 = vector.shape_cast %49 : vector<1x32x128xf32> to vector<32x128xf32>
    %cst_46 = arith.constant dense<0.000000e+00> : vector<80x128xf32>
    %51 = tpu.matmul %48, %50, %cst_46 {dimension_numbers = #tpu.dot_dimension_numbers<[1], [0], [0], [1], [0, 0, 1, 1], [], []>} : vector<80x32xf32>, vector<32x128xf32>, vector<80x128xf32> -> vector<80x128xf32>
    %52 = arith.addf %46, %51 : vector<80x128xf32>
    %c0_47 = arith.constant 0 : index
    %c0_48 = arith.constant 0 : index
    %53 = vector.load %arg3[%c0_47, %c0_48] : memref<1x128xf32, #tpu.memory_space<vmem>>, vector<1x128xf32>
    %54 = vector.broadcast %53 : vector<1x128xf32> to vector<80x128xf32>
    %55 = arith.addf %52, %54 : vector<80x128xf32>
    %cst_49 = arith.constant 0.000000e+00 : f32
    %56 = vector.broadcast %cst_49 : f32 to vector<80x128xf32>
    %57 = arith.maximumf %55, %56 : vector<80x128xf32>
    %c0_50 = arith.constant 0 : index
    %c0_51 = arith.constant 0 : index
    %c0_52 = arith.constant 0 : index
    %58 = vector.load %arg4[%c0_50, %c0_51, %c0_52] : memref<1x80x128xf32, #tpu.memory_space<vmem>>, vector<1x80x128xf32>
    %59 = vector.shape_cast %58 : vector<1x80x128xf32> to vector<80x128xf32>
    %60 = vector.shape_cast %57 : vector<80x128xf32> to vector<1x80x128xf32>
    tpu.vector_store %arg4[%c0_50, %c0_51, %c0_52], %60 {strides = array<i32>} : memref<1x80x128xf32, #tpu.memory_space<vmem>>, vector<1x80x128xf32>,
    return
  }
  func.func @transform_0(%arg0: i32) -> (i32, i32, i32) {
    %c0_i32 = arith.constant 0 : i32
    %c0_i32_0 = arith.constant 0 : i32
    %c0_i32_1 = arith.constant 0 : i32
    return %arg0, %c0_i32, %c0_i32_0 : i32, i32, i32
  }
  func.func @transform_1(%arg0: i32) -> (i32, i32, i32) {
    %c0_i32 = arith.constant 0 : i32
    %c0_i32_0 = arith.constant 0 : i32
    %c0_i32_1 = arith.constant 0 : i32
    %c0_i32_2 = arith.constant 0 : i32
    return %c0_i32, %c0_i32_0, %c0_i32_1 : i32, i32, i32
  }
  func.func @transform_2(%arg0: i32) -> (i32, i32) {
    %c0_i32 = arith.constant 0 : i32
    %c0_i32_0 = arith.constant 0 : i32
    %c0_i32_1 = arith.constant 0 : i32
    return %c0_i32, %c0_i32_0 : i32, i32
  }
  func.func @transform_3(%arg0: i32) -> (i32, i32, i32) {
    %c0_i32 = arith.constant 0 : i32
    %c0_i32_0 = arith.constant 0 : i32
    %c0_i32_1 = arith.constant 0 : i32
    return %arg0, %c0_i32, %c0_i32_0 : i32, i32, i32
  }
}

module attributes {stable_mosaic.version = 11 : i64} {
  func.func @_convt_phase_kernel(%arg0: i32, %arg1: memref<1x326x32xf32, #tpu.memory_space<vmem>>, %arg2: memref<9x32x4xf32, #tpu.memory_space<vmem>>, %arg3: memref<1x4xf32, #tpu.memory_space<vmem>>, %arg4: memref<1x288x4xf32, #tpu.memory_space<vmem>>) attributes {dimension_semantics = [#tpu.dimension_semantics<parallel>], iteration_bounds = array<i64: 2>, scalar_prefetch = 0 : i64, scratch_operands = 0 : i64, tpu.core_type = #tpu.core_type<tc>, window_params = [{transform_indices = @transform_0, window_bounds = array<i64: 1, 326, 32>}, {pipeline_mode = #tpu.pipeline_mode<synchronous>, transform_indices = @transform_1, window_bounds = array<i64: 9, 32, 4>}, {pipeline_mode = #tpu.pipeline_mode<synchronous>, transform_indices = @transform_2, window_bounds = array<i64: 1, 4>}, {transform_indices = @transform_3, window_bounds = array<i64: 1, 288, 4>}]} {
    %c0 = arith.constant 0 : index
    %c0_0 = arith.constant 0 : index
    %c0_1 = arith.constant 0 : index
    %0 = vector.load %arg1[%c0, %c0_0, %c0_1] : memref<1x326x32xf32, #tpu.memory_space<vmem>>, vector<1x288x32xf32>
    %1 = vector.shape_cast %0 : vector<1x288x32xf32> to vector<288x32xf32>
    %c0_2 = arith.constant 0 : index
    %c0_3 = arith.constant 0 : index
    %c0_4 = arith.constant 0 : index
    %2 = vector.load %arg2[%c0_2, %c0_3, %c0_4] : memref<9x32x4xf32, #tpu.memory_space<vmem>>, vector<1x32x4xf32>
    %3 = vector.shape_cast %2 : vector<1x32x4xf32> to vector<32x4xf32>
    %cst = arith.constant dense<0.000000e+00> : vector<288x4xf32>
    %4 = tpu.matmul %1, %3, %cst {dimension_numbers = #tpu.dot_dimension_numbers<[1], [0], [0], [1], [0, 0, 1, 1], [], []>} : vector<288x32xf32>, vector<32x4xf32>, vector<288x4xf32> -> vector<288x4xf32>
    %c0_5 = arith.constant 0 : index
    %c1 = arith.constant 1 : index
    %c0_6 = arith.constant 0 : index
    %5 = vector.load %arg1[%c0_5, %c1, %c0_6] : memref<1x326x32xf32, #tpu.memory_space<vmem>>, vector<1x288x32xf32>
    %6 = vector.shape_cast %5 : vector<1x288x32xf32> to vector<288x32xf32>
    %c1_7 = arith.constant 1 : index
    %c0_8 = arith.constant 0 : index
    %c0_9 = arith.constant 0 : index
    %7 = vector.load %arg2[%c1_7, %c0_8, %c0_9] : memref<9x32x4xf32, #tpu.memory_space<vmem>>, vector<1x32x4xf32>
    %8 = vector.shape_cast %7 : vector<1x32x4xf32> to vector<32x4xf32>
    %cst_10 = arith.constant dense<0.000000e+00> : vector<288x4xf32>
    %9 = tpu.matmul %6, %8, %cst_10 {dimension_numbers = #tpu.dot_dimension_numbers<[1], [0], [0], [1], [0, 0, 1, 1], [], []>} : vector<288x32xf32>, vector<32x4xf32>, vector<288x4xf32> -> vector<288x4xf32>
    %10 = arith.addf %4, %9 : vector<288x4xf32>
    %c0_11 = arith.constant 0 : index
    %c2 = arith.constant 2 : index
    %c0_12 = arith.constant 0 : index
    %11 = vector.load %arg1[%c0_11, %c2, %c0_12] : memref<1x326x32xf32, #tpu.memory_space<vmem>>, vector<1x288x32xf32>
    %12 = vector.shape_cast %11 : vector<1x288x32xf32> to vector<288x32xf32>
    %c2_13 = arith.constant 2 : index
    %c0_14 = arith.constant 0 : index
    %c0_15 = arith.constant 0 : index
    %13 = vector.load %arg2[%c2_13, %c0_14, %c0_15] : memref<9x32x4xf32, #tpu.memory_space<vmem>>, vector<1x32x4xf32>
    %14 = vector.shape_cast %13 : vector<1x32x4xf32> to vector<32x4xf32>
    %cst_16 = arith.constant dense<0.000000e+00> : vector<288x4xf32>
    %15 = tpu.matmul %12, %14, %cst_16 {dimension_numbers = #tpu.dot_dimension_numbers<[1], [0], [0], [1], [0, 0, 1, 1], [], []>} : vector<288x32xf32>, vector<32x4xf32>, vector<288x4xf32> -> vector<288x4xf32>
    %16 = arith.addf %10, %15 : vector<288x4xf32>
    %c0_17 = arith.constant 0 : index
    %c18 = arith.constant 18 : index
    %c0_18 = arith.constant 0 : index
    %17 = vector.load %arg1[%c0_17, %c18, %c0_18] : memref<1x326x32xf32, #tpu.memory_space<vmem>>, vector<1x288x32xf32>
    %18 = vector.shape_cast %17 : vector<1x288x32xf32> to vector<288x32xf32>
    %c3 = arith.constant 3 : index
    %c0_19 = arith.constant 0 : index
    %c0_20 = arith.constant 0 : index
    %19 = vector.load %arg2[%c3, %c0_19, %c0_20] : memref<9x32x4xf32, #tpu.memory_space<vmem>>, vector<1x32x4xf32>
    %20 = vector.shape_cast %19 : vector<1x32x4xf32> to vector<32x4xf32>
    %cst_21 = arith.constant dense<0.000000e+00> : vector<288x4xf32>
    %21 = tpu.matmul %18, %20, %cst_21 {dimension_numbers = #tpu.dot_dimension_numbers<[1], [0], [0], [1], [0, 0, 1, 1], [], []>} : vector<288x32xf32>, vector<32x4xf32>, vector<288x4xf32> -> vector<288x4xf32>
    %22 = arith.addf %16, %21 : vector<288x4xf32>
    %c0_22 = arith.constant 0 : index
    %c19 = arith.constant 19 : index
    %c0_23 = arith.constant 0 : index
    %23 = vector.load %arg1[%c0_22, %c19, %c0_23] : memref<1x326x32xf32, #tpu.memory_space<vmem>>, vector<1x288x32xf32>
    %24 = vector.shape_cast %23 : vector<1x288x32xf32> to vector<288x32xf32>
    %c4 = arith.constant 4 : index
    %c0_24 = arith.constant 0 : index
    %c0_25 = arith.constant 0 : index
    %25 = vector.load %arg2[%c4, %c0_24, %c0_25] : memref<9x32x4xf32, #tpu.memory_space<vmem>>, vector<1x32x4xf32>
    %26 = vector.shape_cast %25 : vector<1x32x4xf32> to vector<32x4xf32>
    %cst_26 = arith.constant dense<0.000000e+00> : vector<288x4xf32>
    %27 = tpu.matmul %24, %26, %cst_26 {dimension_numbers = #tpu.dot_dimension_numbers<[1], [0], [0], [1], [0, 0, 1, 1], [], []>} : vector<288x32xf32>, vector<32x4xf32>, vector<288x4xf32> -> vector<288x4xf32>
    %28 = arith.addf %22, %27 : vector<288x4xf32>
    %c0_27 = arith.constant 0 : index
    %c20 = arith.constant 20 : index
    %c0_28 = arith.constant 0 : index
    %29 = vector.load %arg1[%c0_27, %c20, %c0_28] : memref<1x326x32xf32, #tpu.memory_space<vmem>>, vector<1x288x32xf32>
    %30 = vector.shape_cast %29 : vector<1x288x32xf32> to vector<288x32xf32>
    %c5 = arith.constant 5 : index
    %c0_29 = arith.constant 0 : index
    %c0_30 = arith.constant 0 : index
    %31 = vector.load %arg2[%c5, %c0_29, %c0_30] : memref<9x32x4xf32, #tpu.memory_space<vmem>>, vector<1x32x4xf32>
    %32 = vector.shape_cast %31 : vector<1x32x4xf32> to vector<32x4xf32>
    %cst_31 = arith.constant dense<0.000000e+00> : vector<288x4xf32>
    %33 = tpu.matmul %30, %32, %cst_31 {dimension_numbers = #tpu.dot_dimension_numbers<[1], [0], [0], [1], [0, 0, 1, 1], [], []>} : vector<288x32xf32>, vector<32x4xf32>, vector<288x4xf32> -> vector<288x4xf32>
    %34 = arith.addf %28, %33 : vector<288x4xf32>
    %c0_32 = arith.constant 0 : index
    %c36 = arith.constant 36 : index
    %c0_33 = arith.constant 0 : index
    %35 = vector.load %arg1[%c0_32, %c36, %c0_33] : memref<1x326x32xf32, #tpu.memory_space<vmem>>, vector<1x288x32xf32>
    %36 = vector.shape_cast %35 : vector<1x288x32xf32> to vector<288x32xf32>
    %c6 = arith.constant 6 : index
    %c0_34 = arith.constant 0 : index
    %c0_35 = arith.constant 0 : index
    %37 = vector.load %arg2[%c6, %c0_34, %c0_35] : memref<9x32x4xf32, #tpu.memory_space<vmem>>, vector<1x32x4xf32>
    %38 = vector.shape_cast %37 : vector<1x32x4xf32> to vector<32x4xf32>
    %cst_36 = arith.constant dense<0.000000e+00> : vector<288x4xf32>
    %39 = tpu.matmul %36, %38, %cst_36 {dimension_numbers = #tpu.dot_dimension_numbers<[1], [0], [0], [1], [0, 0, 1, 1], [], []>} : vector<288x32xf32>, vector<32x4xf32>, vector<288x4xf32> -> vector<288x4xf32>
    %40 = arith.addf %34, %39 : vector<288x4xf32>
    %c0_37 = arith.constant 0 : index
    %c37 = arith.constant 37 : index
    %c0_38 = arith.constant 0 : index
    %41 = vector.load %arg1[%c0_37, %c37, %c0_38] : memref<1x326x32xf32, #tpu.memory_space<vmem>>, vector<1x288x32xf32>
    %42 = vector.shape_cast %41 : vector<1x288x32xf32> to vector<288x32xf32>
    %c7 = arith.constant 7 : index
    %c0_39 = arith.constant 0 : index
    %c0_40 = arith.constant 0 : index
    %43 = vector.load %arg2[%c7, %c0_39, %c0_40] : memref<9x32x4xf32, #tpu.memory_space<vmem>>, vector<1x32x4xf32>
    %44 = vector.shape_cast %43 : vector<1x32x4xf32> to vector<32x4xf32>
    %cst_41 = arith.constant dense<0.000000e+00> : vector<288x4xf32>
    %45 = tpu.matmul %42, %44, %cst_41 {dimension_numbers = #tpu.dot_dimension_numbers<[1], [0], [0], [1], [0, 0, 1, 1], [], []>} : vector<288x32xf32>, vector<32x4xf32>, vector<288x4xf32> -> vector<288x4xf32>
    %46 = arith.addf %40, %45 : vector<288x4xf32>
    %c0_42 = arith.constant 0 : index
    %c38 = arith.constant 38 : index
    %c0_43 = arith.constant 0 : index
    %47 = vector.load %arg1[%c0_42, %c38, %c0_43] : memref<1x326x32xf32, #tpu.memory_space<vmem>>, vector<1x288x32xf32>
    %48 = vector.shape_cast %47 : vector<1x288x32xf32> to vector<288x32xf32>
    %c8 = arith.constant 8 : index
    %c0_44 = arith.constant 0 : index
    %c0_45 = arith.constant 0 : index
    %49 = vector.load %arg2[%c8, %c0_44, %c0_45] : memref<9x32x4xf32, #tpu.memory_space<vmem>>, vector<1x32x4xf32>
    %50 = vector.shape_cast %49 : vector<1x32x4xf32> to vector<32x4xf32>
    %cst_46 = arith.constant dense<0.000000e+00> : vector<288x4xf32>
    %51 = tpu.matmul %48, %50, %cst_46 {dimension_numbers = #tpu.dot_dimension_numbers<[1], [0], [0], [1], [0, 0, 1, 1], [], []>} : vector<288x32xf32>, vector<32x4xf32>, vector<288x4xf32> -> vector<288x4xf32>
    %52 = arith.addf %46, %51 : vector<288x4xf32>
    %c0_47 = arith.constant 0 : index
    %c0_48 = arith.constant 0 : index
    %53 = vector.load %arg3[%c0_47, %c0_48] : memref<1x4xf32, #tpu.memory_space<vmem>>, vector<1x4xf32>
    %54 = vector.broadcast %53 : vector<1x4xf32> to vector<288x4xf32>
    %55 = arith.addf %52, %54 : vector<288x4xf32>
    %56 = arith.negf %55 : vector<288x4xf32>
    %57 = math.exp %56 : vector<288x4xf32>
    %cst_49 = arith.constant 1.000000e+00 : f32
    %58 = vector.broadcast %cst_49 : f32 to vector<288x4xf32>
    %59 = arith.addf %58, %57 : vector<288x4xf32>
    %60 = arith.divf %58, %59 : vector<288x4xf32>
    %c0_50 = arith.constant 0 : index
    %c0_51 = arith.constant 0 : index
    %c0_52 = arith.constant 0 : index
    %61 = vector.load %arg4[%c0_50, %c0_51, %c0_52] : memref<1x288x4xf32, #tpu.memory_space<vmem>>, vector<1x288x4xf32>
    %62 = vector.shape_cast %61 : vector<1x288x4xf32> to vector<288x4xf32>
    %63 = vector.shape_cast %60 : vector<288x4xf32> to vector<1x288x4xf32>
    tpu.vector_store %arg4[%c0_50, %c0_51, %c0_52], %63 {strides = array<i32>} : memref<1x288x4xf32, #tpu.memory_space<vmem>>, vector<1x288x4xf32>,
    return
  }
  func.func @transform_0(%arg0: i32) -> (i32, i32, i32) {
    %c0_i32 = arith.constant 0 : i32
    %c0_i32_0 = arith.constant 0 : i32
    %c0_i32_1 = arith.constant 0 : i32
    return %arg0, %c0_i32, %c0_i32_0 : i32, i32, i32
  }
  func.func @transform_1(%arg0: i32) -> (i32, i32, i32) {
    %c0_i32 = arith.constant 0 : i32
    %c0_i32_0 = arith.constant 0 : i32
    %c0_i32_1 = arith.constant 0 : i32
    %c0_i32_2 = arith.constant 0 : i32
    return %c0_i32, %c0_i32_0, %c0_i32_1 : i32, i32, i32
  }
  func.func @transform_2(%arg0: i32) -> (i32, i32) {
    %c0_i32 = arith.constant 0 : i32
    %c0_i32_0 = arith.constant 0 : i32
    %c0_i32_1 = arith.constant 0 : i32
    return %c0_i32, %c0_i32_0 : i32, i32
  }
  func.func @transform_3(%arg0: i32) -> (i32, i32, i32) {
    %c0_i32 = arith.constant 0 : i32
    %c0_i32_0 = arith.constant 0 : i32
    %c0_i32_1 = arith.constant 0 : i32
    return %arg0, %c0_i32, %c0_i32_0 : i32, i32, i32
  }
}

</mosaic_0001>

<bundles_post_ra>
// kernel: decoder_burgess_forward.4
= control target key start
LH: loop header
LB: loop body
LE: loop exit
PB: predicated region body
PF: predicated region fallthrough
CT: control target
= control target key end

     0   :  { %vm47_vm0 = vcmask 1041408   ;;  %v604_v3 = vmov 0.0   ;;  %vm43_vm1 = vcmask 80896   ;;  %s1266_s1 = inlined_call_operand.vmem [shape: f32[10,256], index: 1, kind: input, shape index: {}]   ;;  %s1267_s0 = inlined_call_operand.vmem [shape: f32[2,10], index: 0, kind: input, shape index: {}]   ;;  %s1268_s3 = inlined_call_operand.vmem [shape: f32[256,256], index: 3, kind: input, shape index: {}]   ;;  %s1269_s5 = inlined_call_operand.vmem [shape: f32[256,512], index: 5, kind: input, shape index: {}]   ;;  %s1270_s2 = inlined_call_operand.vmem [shape: f32[1,256], index: 2, kind: input, shape index: {}]   ;;  %s1271_s4 = inlined_call_operand.vmem [shape: f32[1,256], index: 4, kind: input, shape index: {}]   ;;  %s1272_s6 = inlined_call_operand.vmem [shape: f32[1,512], index: 6, kind: input, shape index: {}]   ;;  %s1273_s7 = inlined_call_operand.vmem [shape: f32[2,512], index: 7, kind: output, shape index: {}]  }
   0x1   :  { %v30_v0 = vld [vmem:[%s1266_s1 + $0x18] sm:$0x3]  ;;  %v29_v1 = vld [vmem:[%s1266_s1 + $0x10] sm:$0x3]  ;;  %v28_v2 = vld [vmem:[%s1266_s1 + $0x8] sm:$0xff]  ;;  %118 = vmatprep.mubr.f32.mxu0 %v604_v3 }
   0x2   :  { %599 = vmatprep.subr.msk.mxu0 %vm47_vm0, %v30_v0  ;;  %v27_v4 = vld [vmem:[%s1266_s1] sm:$0xff]  ;;  %v158_v6 = vld [vmem:[%s1268_s3 + $0xf8] sm:$0xff]  ;;  %v157_v7 = vld [vmem:[%s1268_s3 + $0xf0] sm:$0xff] }
   0x3   :  { %v26_v5 = vld [vmem:[%s1267_s0] sm:$0x3]  ;;  %600 = vmatpush1.msk.msra.mxu0 %vm47_vm0, %v29_v1  ;;  %203 = vmatprep.subr.mxu1 %v158_v6  ;;  %v156_v8 = vld [vmem:[%s1268_s3 + $0xe8] sm:$0xff]  ;;  %v154_v10 = vld [vmem:[%s1268_s3 + $0xd8] sm:$0xff] }
   0x4   :  { %v155_v9 = vld [vmem:[%s1268_s3 + $0xe0] sm:$0xff]  ;;  %84 = vmatprep.subr.mxu0 %v28_v2  ;;  %204 = vmatpush1.msra.mxu1 %v157_v7  ;;  %v153_v11 = vld [vmem:[%s1268_s3 + $0xd0] sm:$0xff]  ;;  %v152_v12 = vld [vmem:[%s1268_s3 + $0xc8] sm:$0xff] }
   0x5   :  { %85 = vmatpush1.msra.mxu0 %v27_v4  ;;  %205 = vmatprep.subr.mxu1 %v156_v8  ;;  %v151_v13 = vld [vmem:[%s1268_s3 + $0xc0] sm:$0xff]  ;;  %v150_v14 = vld [vmem:[%s1268_s3 + $0xb8] sm:$0xff]  ;;  %v149_v15 = vld [vmem:[%s1268_s3 + $0xb0] sm:$0xff] }
   0x6   :  { %601 = vmatmul.mubr.msk.f32.vlgmr.msra.gmra.mxu0 %vm43_vm1, %v26_v5  ;;  %206 = vmatpush1.msra.mxu1 %v155_v9  ;;  %v148_v16 = vld [vmem:[%s1268_s3 + $0xa8] sm:$0xff]  ;;  %v147_v17 = vld [vmem:[%s1268_s3 + $0xa0] sm:$0xff]  ;;  %v146_v18 = vld [vmem:[%s1268_s3 + $0x98] sm:$0xff] }
   0x7   :  { %207 = vmatprep.subr.mxu1 %v154_v10  ;;  %v145_v19 = vld [vmem:[%s1268_s3 + $0x90] sm:$0xff]  ;;  %v144_v20 = vld [vmem:[%s1268_s3 + $0x88] sm:$0xff]  ;;  %v143_v21 = vld [vmem:[%s1268_s3 + $0x80] sm:$0xff] }
   0x8   :  { %208 = vmatpush1.msra.mxu1 %v153_v11  ;;  %v142_v22 = vld [vmem:[%s1268_s3 + $0x78] sm:$0xff]  ;;  %v141_v23 = vld [vmem:[%s1268_s3 + $0x70] sm:$0xff]  ;;  %v140_v24 = vld [vmem:[%s1268_s3 + $0x68] sm:$0xff] }
   0x9   :  { %209 = vmatprep.subr.mxu1 %v152_v12  ;;  %v139_v25 = vld [vmem:[%s1268_s3 + $0x60] sm:$0xff]  ;;  %v138_v26 = vld [vmem:[%s1268_s3 + $0x58] sm:$0xff]  ;;  %v137_v27 = vld [vmem:[%s1268_s3 + $0x50] sm:$0xff] }
   0xa   :  { %210 = vmatpush1.msra.mxu1 %v151_v13  ;;  %v136_v28 = vld [vmem:[%s1268_s3 + $0x48] sm:$0xff]  ;;  %v135_v29 = vld [vmem:[%s1268_s3 + $0x40] sm:$0xff]  ;;  %v134_v30 = vld [vmem:[%s1268_s3 + $0x38] sm:$0xff] }
   0xb   :  { %211 = vmatprep.subr.mxu1 %v150_v14  ;;  %v133_v31 = vld [vmem:[%s1268_s3 + $0x30] sm:$0xff]  ;;  %v132_v32 = vld [vmem:[%s1268_s3 + $0x28] sm:$0xff]  ;;  %v131_v33 = vld [vmem:[%s1268_s3 + $0x20] sm:$0xff] }
   0xc   :  { %212 = vmatpush1.msra.mxu1 %v149_v15  ;;  %v130_v34 = vld [vmem:[%s1268_s3 + $0x18] sm:$0xff]  ;;  %v129_v35 = vld [vmem:[%s1268_s3 + $0x10] sm:$0xff]  ;;  %v128_v36 = vld [vmem:[%s1268_s3 + $0x8] sm:$0xff] }
   0xd   :  { %213 = vmatprep.subr.mxu1 %v148_v16  ;;  %v127_v37 = vld [vmem:[%s1268_s3] sm:$0xff]  ;;  %v190_v38 = vld [vmem:[%s1268_s3 + $0x1f8] sm:$0xff]  ;;  %v189_v39 = vld [vmem:[%s1268_s3 + $0x1f0] sm:$0xff] }
   0xe   :  { %214 = vmatpush1.msra.mxu1 %v147_v17  ;;  %v188_v40 = vld [vmem:[%s1268_s3 + $0x1e8] sm:$0xff]  ;;  %v187_v41 = vld [vmem:[%s1268_s3 + $0x1e0] sm:$0xff]  ;;  %v186_v42 = vld [vmem:[%s1268_s3 + $0x1d8] sm:$0xff] }
   0xf   :  { %215 = vmatprep.subr.mxu1 %v146_v18  ;;  %v185_v43 = vld [vmem:[%s1268_s3 + $0x1d0] sm:$0xff]  ;;  %v184_v44 = vld [vmem:[%s1268_s3 + $0x1c8] sm:$0xff]  ;;  %v183_v45 = vld [vmem:[%s1268_s3 + $0x1c0] sm:$0xff] }
  0x10   :  { %216 = vmatpush1.msra.mxu1 %v145_v19  ;;  %v182_v46 = vld [vmem:[%s1268_s3 + $0x1b8] sm:$0xff]  ;;  %v181_v47 = vld [vmem:[%s1268_s3 + $0x1b0] sm:$0xff]  ;;  %v180_v48 = vld [vmem:[%s1268_s3 + $0x1a8] sm:$0xff] }
  0x11   :  { %217 = vmatprep.subr.mxu1 %v144_v20  ;;  %v179_v49 = vld [vmem:[%s1268_s3 + $0x1a0] sm:$0xff]  ;;  %v178_v50 = vld [vmem:[%s1268_s3 + $0x198] sm:$0xff]  ;;  %v177_v51 = vld [vmem:[%s1268_s3 + $0x190] sm:$0xff] }
  0x12   :  { %218 = vmatpush1.msra.mxu1 %v143_v21  ;;  %v176_v52 = vld [vmem:[%s1268_s3 + $0x188] sm:$0xff]  ;;  %v175_v53 = vld [vmem:[%s1268_s3 + $0x180] sm:$0xff]  ;;  %v174_v54 = vld [vmem:[%s1268_s3 + $0x178] sm:$0xff] }
  0x13   :  { %219 = vmatprep.subr.mxu1 %v142_v22  ;;  %v173_v55 = vld [vmem:[%s1268_s3 + $0x170] sm:$0xff]  ;;  %v172_v56 = vld [vmem:[%s1268_s3 + $0x168] sm:$0xff]  ;;  %v171_v57 = vld [vmem:[%s1268_s3 + $0x160] sm:$0xff] }
  0x14   :  { %220 = vmatpush1.msra.mxu1 %v141_v23  ;;  %v170_v58 = vld [vmem:[%s1268_s3 + $0x158] sm:$0xff]  ;;  %v169_v59 = vld [vmem:[%s1268_s3 + $0x150] sm:$0xff]  ;;  %v168_v60 = vld [vmem:[%s1268_s3 + $0x148] sm:$0xff] }
  0x15   :  { %221 = vmatprep.subr.mxu1 %v140_v24  ;;  %v167_v61 = vld [vmem:[%s1268_s3 + $0x140] sm:$0xff]  ;;  %v166_v62 = vld [vmem:[%s1268_s3 + $0x138] sm:$0xff]  ;;  %v165_v63 = vld [vmem:[%s1268_s3 + $0x130] sm:$0xff] }
  0x16   :  { %222 = vmatpush1.msra.mxu1 %v139_v25  ;;  %v164_v0 = vld [vmem:[%s1268_s3 + $0x128] sm:$0xff]  ;;  %v163_v1 = vld [vmem:[%s1268_s3 + $0x120] sm:$0xff]  ;;  %v162_v2 = vld [vmem:[%s1268_s3 + $0x118] sm:$0xff] }
  0x17   :  { %223 = vmatprep.subr.mxu1 %v138_v26  ;;  %v161_v3 = vld [vmem:[%s1268_s3 + $0x110] sm:$0xff]  ;;  %v160_v4 = vld [vmem:[%s1268_s3 + $0x108] sm:$0xff]  ;;  %v159_v5 = vld [vmem:[%s1268_s3 + $0x100] sm:$0xff] }
  0x18   :  { %224 = vmatpush1.msra.mxu1 %v137_v27  ;;  %v337_v6 = vld [vmem:[%s1269_s5 + $0x1e8] sm:$0xff]  ;;  %v339_v7 = vld [vmem:[%s1269_s5 + $0x1f8] sm:$0xff]  ;;  %v336_v8 = vld [vmem:[%s1269_s5 + $0x1e0] sm:$0xff] }
  0x19   :  { %225 = vmatprep.subr.mxu1 %v136_v28  ;;  %426 = vmatprep.subr.mxu0 %v337_v6  ;;  %v333_v9 = vld [vmem:[%s1269_s5 + $0x1c8] sm:$0xff]  ;;  %v332_v10 = vld [vmem:[%s1269_s5 + $0x1c0] sm:$0xff] }
  0x1a   :  { %226 = vmatpush1.msra.mxu1 %v135_v29  ;;  %427 = vmatpush1.msra.mxu0 %v336_v8  ;;  %v329_v11 = vld [vmem:[%s1269_s5 + $0x1a8] sm:$0xff]  ;;  %v328_v12 = vld [vmem:[%s1269_s5 + $0x1a0] sm:$0xff] }
  0x1b   :  { %227 = vmatprep.subr.mxu1 %v134_v30  ;;  %428 = vmatprep.subr.mxu0 %v333_v9  ;;  %v325_v13 = vld [vmem:[%s1269_s5 + $0x188] sm:$0xff]  ;;  %v324_v14 = vld [vmem:[%s1269_s5 + $0x180] sm:$0xff] }
  0x1c   :  { %228 = vmatpush1.msra.mxu1 %v133_v31  ;;  %429 = vmatpush1.msra.mxu0 %v332_v10  ;;  %v321_v15 = vld [vmem:[%s1269_s5 + $0x168] sm:$0xff]  ;;  %v320_v16 = vld [vmem:[%s1269_s5 + $0x160] sm:$0xff] }
  0x1d   :  { %229 = vmatprep.subr.mxu1 %v132_v32  ;;  %430 = vmatprep.subr.mxu0 %v329_v11  ;;  %v317_v17 = vld [vmem:[%s1269_s5 + $0x148] sm:$0xff]  ;;  %v316_v18 = vld [vmem:[%s1269_s5 + $0x140] sm:$0xff] }
  0x1e   :  { %230 = vmatpush1.msra.mxu1 %v131_v33  ;;  %431 = vmatpush1.msra.mxu0 %v328_v12  ;;  %v313_v19 = vld [vmem:[%s1269_s5 + $0x128] sm:$0xff]  ;;  %v312_v20 = vld [vmem:[%s1269_s5 + $0x120] sm:$0xff]  ;;  %v338_v12 = vld [vmem:[%s1269_s5 + $0x1f0] sm:$0xff] }
  0x1f   :  { %231 = vmatprep.subr.mxu1 %v130_v34  ;;  %432 = vmatprep.subr.mxu0 %v325_v13  ;;  %v309_v21 = vld [vmem:[%s1269_s5 + $0x108] sm:$0xff]  ;;  %v308_v22 = vld [vmem:[%s1269_s5 + $0x100] sm:$0xff]  ;;  %v335_v13 = vld [vmem:[%s1269_s5 + $0x1d8] sm:$0xff] }
  0x20   :  { %232 = vmatpush1.msra.mxu1 %v129_v35  ;;  %433 = vmatpush1.msra.mxu0 %v324_v14  ;;  %v305_v23 = vld [vmem:[%s1269_s5 + $0xe8] sm:$0xff]  ;;  %v304_v24 = vld [vmem:[%s1269_s5 + $0xe0] sm:$0xff]  ;;  %v334_v14 = vld [vmem:[%s1269_s5 + $0x1d0] sm:$0xff] }
  0x21   :  { %233 = vmatprep.subr.mxu1 %v128_v36  ;;  %434 = vmatprep.subr.mxu0 %v321_v15  ;;  %v301_v25 = vld [vmem:[%s1269_s5 + $0xc8] sm:$0xff]  ;;  %v300_v26 = vld [vmem:[%s1269_s5 + $0xc0] sm:$0xff]  ;;  %v331_v15 = vld [vmem:[%s1269_s5 + $0x1b8] sm:$0xff] }
  0x22   :  { %234 = vmatpush1.msra.mxu1 %v127_v37  ;;  %435 = vmatpush1.msra.mxu0 %v320_v16  ;;  %v297_v27 = vld [vmem:[%s1269_s5 + $0xa8] sm:$0xff]  ;;  %v296_v28 = vld [vmem:[%s1269_s5 + $0xa0] sm:$0xff]  ;;  %v330_v16 = vld [vmem:[%s1269_s5 + $0x1b0] sm:$0xff] }
  0x23   :  { %235 = vmatprep.subr.mxu1 %v190_v38  ;;  %436 = vmatprep.subr.mxu0 %v317_v17  ;;  %v293_v29 = vld [vmem:[%s1269_s5 + $0x88] sm:$0xff]  ;;  %v292_v30 = vld [vmem:[%s1269_s5 + $0x80] sm:$0xff]  ;;  %v327_v17 = vld [vmem:[%s1269_s5 + $0x198] sm:$0xff] }
  0x24   :  { %236 = vmatpush2.msra.mxu1 %v189_v39  ;;  %437 = vmatpush1.msra.mxu0 %v316_v18  ;;  %v289_v31 = vld [vmem:[%s1269_s5 + $0x68] sm:$0xff]  ;;  %v288_v32 = vld [vmem:[%s1269_s5 + $0x60] sm:$0xff]  ;;  %v326_v18 = vld [vmem:[%s1269_s5 + $0x190] sm:$0xff] }
  0x25   :  { %237 = vmatprep.subr.mxu1 %v188_v40  ;;  %438 = vmatprep.subr.mxu0 %v313_v19  ;;  %v285_v33 = vld [vmem:[%s1269_s5 + $0x48] sm:$0xff]  ;;  %v284_v34 = vld [vmem:[%s1269_s5 + $0x40] sm:$0xff]  ;;  %v323_v19 = vld [vmem:[%s1269_s5 + $0x178] sm:$0xff] }
  0x26   :  { %238 = vmatpush2.msra.mxu1 %v187_v41  ;;  %439 = vmatpush1.msra.mxu0 %v312_v20  ;;  %v281_v35 = vld [vmem:[%s1269_s5 + $0x28] sm:$0xff]  ;;  %v280_v36 = vld [vmem:[%s1269_s5 + $0x20] sm:$0xff]  ;;  %v322_v20 = vld [vmem:[%s1269_s5 + $0x170] sm:$0xff] }
  0x27   :  { %239 = vmatprep.subr.mxu1 %v186_v42  ;;  %440 = vmatprep.subr.mxu0 %v309_v21  ;;  %v277_v37 = vld [vmem:[%s1269_s5 + $0x8] sm:$0xff]  ;;  %v276_v38 = vld [vmem:[%s1269_s5] sm:$0xff]  ;;  %v319_v21 = vld [vmem:[%s1269_s5 + $0x158] sm:$0xff] }
  0x28   :  { %240 = vmatpush2.msra.mxu1 %v185_v43  ;;  %441 = vmatpush1.msra.mxu0 %v308_v22  ;;  %v401_v39 = vld [vmem:[%s1269_s5 + $0x3e8] sm:$0xff]  ;;  %v400_v40 = vld [vmem:[%s1269_s5 + $0x3e0] sm:$0xff]  ;;  %v318_v22 = vld [vmem:[%s1269_s5 + $0x150] sm:$0xff] }
  0x29   :  { %241 = vmatprep.subr.mxu1 %v184_v44  ;;  %442 = vmatprep.subr.mxu0 %v305_v23  ;;  %v397_v41 = vld [vmem:[%s1269_s5 + $0x3c8] sm:$0xff]  ;;  %v396_v42 = vld [vmem:[%s1269_s5 + $0x3c0] sm:$0xff]  ;;  %v315_v23 = vld [vmem:[%s1269_s5 + $0x138] sm:$0xff] }
  0x2a   :  { %242 = vmatpush2.msra.mxu1 %v183_v45  ;;  %443 = vmatpush1.msra.mxu0 %v304_v24  ;;  %v393_v43 = vld [vmem:[%s1269_s5 + $0x3a8] sm:$0xff]  ;;  %v392_v44 = vld [vmem:[%s1269_s5 + $0x3a0] sm:$0xff]  ;;  %v314_v24 = vld [vmem:[%s1269_s5 + $0x130] sm:$0xff] }
  0x2b   :  { %243 = vmatprep.subr.mxu1 %v182_v46  ;;  %444 = vmatprep.subr.mxu0 %v301_v25  ;;  %v389_v45 = vld [vmem:[%s1269_s5 + $0x388] sm:$0xff]  ;;  %v388_v46 = vld [vmem:[%s1269_s5 + $0x380] sm:$0xff]  ;;  %v311_v25 = vld [vmem:[%s1269_s5 + $0x118] sm:$0xff] }
  0x2c   :  { %244 = vmatpush2.msra.mxu1 %v181_v47  ;;  %445 = vmatpush1.msra.mxu0 %v300_v26  ;;  %v385_v47 = vld [vmem:[%s1269_s5 + $0x368] sm:$0xff]  ;;  %v310_v26 = vld [vmem:[%s1269_s5 + $0x110] sm:$0xff] }
  0x2d   :  { %245 = vmatprep.subr.mxu1 %v180_v48  ;;  %446 = vmatprep.subr.mxu0 %v297_v27  ;;  %v384_v48 = vld [vmem:[%s1269_s5 + $0x360] sm:$0xff]  ;;  %v307_v27 = vld [vmem:[%s1269_s5 + $0xf8] sm:$0xff] }
  0x2e   :  { %246 = vmatpush2.msra.mxu1 %v179_v49  ;;  %447 = vmatpush1.msra.mxu0 %v296_v28  ;;  %v381_v49 = vld [vmem:[%s1269_s5 + $0x348] sm:$0xff]  ;;  %v306_v28 = vld [vmem:[%s1269_s5 + $0xf0] sm:$0xff] }
  0x2f   :  { %247 = vmatprep.subr.mxu1 %v178_v50  ;;  %448 = vmatprep.subr.mxu0 %v293_v29  ;;  %v380_v50 = vld [vmem:[%s1269_s5 + $0x340] sm:$0xff]  ;;  %v303_v29 = vld [vmem:[%s1269_s5 + $0xd8] sm:$0xff] }
  0x30   :  { %248 = vmatpush2.msra.mxu1 %v177_v51  ;;  %449 = vmatpush1.msra.mxu0 %v292_v30  ;;  %v377_v51 = vld [vmem:[%s1269_s5 + $0x328] sm:$0xff]  ;;  %v302_v30 = vld [vmem:[%s1269_s5 + $0xd0] sm:$0xff] }
  0x31   :  { %249 = vmatprep.subr.mxu1 %v176_v52  ;;  %450 = vmatprep.subr.mxu0 %v289_v31  ;;  %v376_v52 = vld [vmem:[%s1269_s5 + $0x320] sm:$0xff]  ;;  %v299_v31 = vld [vmem:[%s1269_s5 + $0xb8] sm:$0xff] }
  0x32   :  { %250 = vmatpush2.msra.mxu1 %v175_v53  ;;  %451 = vmatpush1.msra.mxu0 %v288_v32  ;;  %v373_v53 = vld [vmem:[%s1269_s5 + $0x308] sm:$0xff]  ;;  %v298_v32 = vld [vmem:[%s1269_s5 + $0xb0] sm:$0xff] }
  0x33   :  { %251 = vmatprep.subr.mxu1 %v174_v54  ;;  %452 = vmatprep.subr.mxu0 %v285_v33  ;;  %v372_v54 = vld [vmem:[%s1269_s5 + $0x300] sm:$0xff]  ;;  %v295_v33 = vld [vmem:[%s1269_s5 + $0x98] sm:$0xff] }
  0x34   :  { %252 = vmatpush2.msra.mxu1 %v173_v55  ;;  %453 = vmatpush1.msra.mxu0 %v284_v34  ;;  %v369_v55 = vld [vmem:[%s1269_s5 + $0x2e8] sm:$0xff]  ;;  %v294_v34 = vld [vmem:[%s1269_s5 + $0x90] sm:$0xff] }
  0x35   :  { %253 = vmatprep.subr.mxu1 %v172_v56  ;;  %454 = vmatprep.subr.mxu0 %v281_v35  ;;  %v368_v56 = vld [vmem:[%s1269_s5 + $0x2e0] sm:$0xff]  ;;  %v291_v35 = vld [vmem:[%s1269_s5 + $0x78] sm:$0xff] }
  0x36   :  { %254 = vmatpush2.msra.mxu1 %v171_v57  ;;  %455 = vmatpush1.msra.mxu0 %v280_v36  ;;  %v365_v57 = vld [vmem:[%s1269_s5 + $0x2c8] sm:$0xff]  ;;  %v290_v36 = vld [vmem:[%s1269_s5 + $0x70] sm:$0xff] }
  0x37   :  { %255 = vmatprep.subr.mxu1 %v170_v58  ;;  %456 = vmatprep.subr.mxu0 %v277_v37  ;;  %v364_v58 = vld [vmem:[%s1269_s5 + $0x2c0] sm:$0xff]  ;;  %v287_v37 = vld [vmem:[%s1269_s5 + $0x58] sm:$0xff] }
  0x38   :  { %256 = vmatpush2.msra.mxu1 %v169_v59  ;;  %457 = vmatpush1.msra.mxu0 %v276_v38  ;;  %v361_v59 = vld [vmem:[%s1269_s5 + $0x2a8] sm:$0xff]  ;;  %v286_v38 = vld [vmem:[%s1269_s5 + $0x50] sm:$0xff] }
  0x39   :  { %257 = vmatprep.subr.mxu1 %v168_v60  ;;  %458 = vmatprep.subr.mxu0 %v401_v39  ;;  %v360_v60 = vld [vmem:[%s1269_s5 + $0x2a0] sm:$0xff]  ;;  %v283_v39 = vld [vmem:[%s1269_s5 + $0x38] sm:$0xff] }
  0x3a   :  { %258 = vmatpush2.msra.mxu1 %v167_v61  ;;  %459 = vmatpush2.msra.mxu0 %v400_v40  ;;  %v357_v61 = vld [vmem:[%s1269_s5 + $0x288] sm:$0xff]  ;;  %v282_v40 = vld [vmem:[%s1269_s5 + $0x30] sm:$0xff] }
  0x3b   :  { %259 = vmatprep.subr.mxu1 %v166_v62  ;;  %460 = vmatprep.subr.mxu0 %v397_v41  ;;  %v356_v62 = vld [vmem:[%s1269_s5 + $0x280] sm:$0xff]  ;;  %v279_v41 = vld [vmem:[%s1269_s5 + $0x18] sm:$0xff] }
  0x3c   :  { %260 = vmatpush2.msra.mxu1 %v165_v63  ;;  %461 = vmatpush2.msra.mxu0 %v396_v42  ;;  %v33_v63 = vlaneseq  ;;  %v278_v42 = vld [vmem:[%s1269_s5 + $0x10] sm:$0xff] }
  0x3d   :  { %261 = vmatprep.subr.mxu1 %v164_v0  ;;  %462 = vmatprep.subr.mxu0 %v393_v43  ;;  %v403_v43 = vld [vmem:[%s1269_s5 + $0x3f8] sm:$0xff] }
  0x3e   :  { %262 = vmatpush2.msra.mxu1 %v163_v1  ;;  %463 = vmatpush2.msra.mxu0 %v392_v44  ;;  %v1024_v0 = vshrl.u32 %v33_v63, 7  ;;  %v402_v44 = vld [vmem:[%s1269_s5 + $0x3f0] sm:$0xff]  ;;  %v363_v63 = vld [vmem:[%s1269_s5 + $0x2b8] sm:$0xff] }
  0x3f   :  { %263 = vmatprep.subr.mxu1 %v162_v2  ;;  %464 = vmatprep.subr.mxu0 %v389_v45  ;;  %v31_v2 = vld [vmem:[%s1270_s2] sm:$0x3]  ;;  %v399_v45 = vld [vmem:[%s1269_s5 + $0x3d8] sm:$0xff] }
  0x40   :  { %264 = vmatpush2.msra.mxu1 %v161_v3  ;;  %465 = vmatpush2.msra.mxu0 %v388_v46  ;;  %v1027_v1 = vsub.s32 0, %v1024_v0  ;;  %v1033_v3 = vsub.s32 1, %v1024_v0  ;;  %v398_v46 = vld [vmem:[%s1269_s5 + $0x3d0] sm:$0xff] }
  0x41   :  { %265 = vmatprep.subr.mxu1 %v160_v4  ;;  %466 = vmatprep.subr.mxu0 %v385_v47  ;;  %v395_v47 = vld [vmem:[%s1269_s5 + $0x3b8] sm:$0xff] }
  0x42   :  { %266 = vmatpush2.msra.mxu1 %v159_v5  ;;  %467 = vmatpush2.msra.mxu0 %v384_v48  ;;  %v36_v4 = vrot.slane %v31_v2, %v1027_v1  ;;  %v40_v5 = vrot.slane %v31_v2, %v1033_v3  ;;  %v394_v48 = vld [vmem:[%s1269_s5 + $0x3b0] sm:$0xff] }
  0x43   :  { %497 = vmatprep.subr.mxu1 %v339_v7  ;;  %468 = vmatprep.subr.mxu0 %v381_v49  ;;  %v391_v49 = vld [vmem:[%s1269_s5 + $0x398] sm:$0xff]  ;;  %v362_v2 = vld [vmem:[%s1269_s5 + $0x2b0] sm:$0xff] }
  0x44   :  { %469 = vmatpush2.msra.mxu0 %v380_v50  ;;  %v390_v50 = vld [vmem:[%s1269_s5 + $0x390] sm:$0xff] }
  0x45   :  { %470 = vmatprep.subr.mxu0 %v377_v51  ;;  %v387_v51 = vld [vmem:[%s1269_s5 + $0x378] sm:$0xff] }
  0x46   :  { %471 = vmatpush2.msra.mxu0 %v376_v52  ;;  %v386_v52 = vld [vmem:[%s1269_s5 + $0x370] sm:$0xff] }
  0x47   :  { %472 = vmatprep.subr.mxu0 %v373_v53  ;;  %v383_v53 = vld [vmem:[%s1269_s5 + $0x358] sm:$0xff] }
  0x48   :  { %473 = vmatpush2.msra.mxu0 %v372_v54  ;;  %v382_v54 = vld [vmem:[%s1269_s5 + $0x350] sm:$0xff] }
  0x49   :  { %474 = vmatprep.subr.mxu0 %v369_v55  ;;  %v379_v55 = vld [vmem:[%s1269_s5 + $0x338] sm:$0xff] }
  0x4a   :  { %475 = vmatpush2.msra.mxu0 %v368_v56  ;;  %v378_v56 = vld [vmem:[%s1269_s5 + $0x330] sm:$0xff] }
  0x4b   :  { %476 = vmatprep.subr.mxu0 %v365_v57  ;;  %v375_v57 = vld [vmem:[%s1269_s5 + $0x318] sm:$0xff] }
  0x4c   :  { %477 = vmatpush2.msra.mxu0 %v364_v58  ;;  %v374_v58 = vld [vmem:[%s1269_s5 + $0x310] sm:$0xff] }
  0x4d   :  { %478 = vmatprep.subr.mxu0 %v361_v59  ;;  %v371_v59 = vld [vmem:[%s1269_s5 + $0x2f8] sm:$0xff] }
  0x4e   :  { %479 = vmatpush2.msra.mxu0 %v360_v60  ;;  %v370_v60 = vld [vmem:[%s1269_s5 + $0x2f0] sm:$0xff] }
  0x4f   :  { %480 = vmatprep.subr.mxu0 %v357_v61  ;;  %v367_v61 = vld [vmem:[%s1269_s5 + $0x2d8] sm:$0xff] }
  0x50   :  { %481 = vmatpush2.msra.mxu0 %v356_v62  ;;  %v366_v62 = vld [vmem:[%s1269_s5 + $0x2d0] sm:$0xff] }
  0xc6   :  { %v120_v6 = vpop.f32.mrf.mxu0 }
  0xc7   :  { %v121_v7 = vadd.f32 %v120_v6, %v36_v4  ;;  %v359_v4 = vld [vmem:[%s1269_s5 + $0x298] sm:$0xff]  ;;  %v353_v6 = vld [vmem:[%s1269_s5 + $0x268] sm:$0xff] }
  0xc8   :  { %v122_v8 = vpop.f32.mrf.mxu0  ;;  %482 = vmatprep.subr.mxu0 %v353_v6 }
  0xc9   :  { %v123_v9 = vadd.f32 %v122_v8, %v40_v5  ;;  %v125_v11 = vmax.f32 %v121_v7, 0.0  ;;  %v358_v5 = vld [vmem:[%s1269_s5 + $0x290] sm:$0xff]  ;;  %v355_v7 = vld [vmem:[%s1269_s5 + $0x278] sm:$0xff]  ;;  %v352_v8 = vld [vmem:[%s1269_s5 + $0x260] sm:$0xff] }
  0xca   :  { %483 = vmatpush2.msra.mxu0 %v352_v8 }
  0xcb   :  { %v126_v10 = vmax.f32 %v123_v9, 0.0  ;;  %v354_v9 = vld [vmem:[%s1269_s5 + $0x270] sm:$0xff] }
  0xcd   :  { %267 = vmatprep.mubr.f32.mxu1 %v126_v10  ;;  %v349_v10 = vld [vmem:[%s1269_s5 + $0x248] sm:$0xff] }
  0xce   :  { %268 = vmatmul.mubr.f32.vlgmr.msra.gmra.mxu1 %v125_v11  ;;  %v351_v11 = vld [vmem:[%s1269_s5 + $0x258] sm:$0xff]  ;;  %484 = vmatprep.subr.mxu0 %v349_v10 }
  0xcf   :  { %498 = vmatpush1.msra.mxu1 %v338_v12  ;;  %v348_v12 = vld [vmem:[%s1269_s5 + $0x240] sm:$0xff] }
  0xd0   :  { %499 = vmatprep.subr.mxu1 %v335_v13  ;;  %v350_v13 = vld [vmem:[%s1269_s5 + $0x250] sm:$0xff]  ;;  %485 = vmatpush2.msra.mxu0 %v348_v12 }
  0xd1   :  { %500 = vmatpush1.msra.mxu1 %v334_v14  ;;  %v345_v14 = vld [vmem:[%s1269_s5 + $0x228] sm:$0xff] }
  0xd2   :  { %501 = vmatprep.subr.mxu1 %v331_v15  ;;  %v347_v15 = vld [vmem:[%s1269_s5 + $0x238] sm:$0xff]  ;;  %486 = vmatprep.subr.mxu0 %v345_v14 }
  0xd3   :  { %502 = vmatpush1.msra.mxu1 %v330_v16  ;;  %v344_v16 = vld [vmem:[%s1269_s5 + $0x220] sm:$0xff] }
  0xd4   :  { %503 = vmatprep.subr.mxu1 %v327_v17  ;;  %v346_v17 = vld [vmem:[%s1269_s5 + $0x230] sm:$0xff]  ;;  %487 = vmatpush2.msra.mxu0 %v344_v16 }
  0xd5   :  { %504 = vmatpush1.msra.mxu1 %v326_v18  ;;  %v341_v18 = vld [vmem:[%s1269_s5 + $0x208] sm:$0xff] }
  0xd6   :  { %505 = vmatprep.subr.mxu1 %v323_v19  ;;  %v343_v19 = vld [vmem:[%s1269_s5 + $0x218] sm:$0xff]  ;;  %488 = vmatprep.subr.mxu0 %v341_v18 }
  0xd7   :  { %506 = vmatpush1.msra.mxu1 %v322_v20  ;;  %v340_v20 = vld [vmem:[%s1269_s5 + $0x200] sm:$0xff] }
  0xd8   :  { %507 = vmatprep.subr.mxu1 %v319_v21  ;;  %v342_v21 = vld [vmem:[%s1269_s5 + $0x210] sm:$0xff]  ;;  %489 = vmatpush2.msra.mxu0 %v340_v20 }
  0xd9   :  { %508 = vmatpush1.msra.mxu1 %v318_v22  ;;  %v191_v22 = vld [vmem:[%s1271_s4] sm:$0x3] }
  0xda   :  { %509 = vmatprep.subr.mxu1 %v315_v23  ;;  %v196_v23 = vrot.slane %v191_v22, %v1027_v1 }
  0xdb   :  { %510 = vmatpush1.msra.mxu1 %v314_v24  ;;  %v200_v24 = vrot.slane %v191_v22, %v1033_v3 }
  0xdc   :  { %511 = vmatprep.subr.mxu1 %v311_v25 }
  0xdd   :  { %512 = vmatpush1.msra.mxu1 %v310_v26 }
  0xde   :  { %513 = vmatprep.subr.mxu1 %v307_v27 }
  0xdf   :  { %514 = vmatpush1.msra.mxu1 %v306_v28 }
  0xe0   :  { %515 = vmatprep.subr.mxu1 %v303_v29 }
  0xe1   :  { %516 = vmatpush1.msra.mxu1 %v302_v30 }
  0xe2   :  { %517 = vmatprep.subr.mxu1 %v299_v31  ;;  %v416_v31 = vsub.s32 2, %v1024_v0 }
  0xe3   :  { %518 = vmatpush1.msra.mxu1 %v298_v32  ;;  %v404_v32 = vld [vmem:[%s1272_s6] sm:$0xf] }
  0xe4   :  { %519 = vmatprep.subr.mxu1 %v295_v33  ;;  %v420_v33 = vsub.s32 3, %v1024_v0 }
  0xe5   :  { %520 = vmatpush1.msra.mxu1 %v294_v34  ;;  %v605_v34 = vmov 1983009808  }
  0xe6   :  { %521 = vmatprep.subr.mxu1 %v291_v35  ;;  %v579_v35 = vunpack.c.l.s4 %v605_v34 }
  0xe7   :  { %522 = vmatpush1.msra.mxu1 %v290_v36  ;;  %v409_v36 = vrot.slane %v404_v32, %v1027_v1 }
  0xe8   :  { %523 = vmatprep.subr.mxu1 %v287_v37  ;;  %v417_v37 = vrot.slane %v404_v32, %v416_v31 }
  0xe9   :  { %524 = vmatpush1.msra.mxu1 %v286_v38  ;;  %v413_v38 = vrot.slane %v404_v32, %v1033_v3 }
  0xea   :  { %525 = vmatprep.subr.mxu1 %v283_v39  ;;  %v421_v39 = vrot.slane %v404_v32, %v420_v33 }
  0xeb   :  { %526 = vmatpush1.msra.mxu1 %v282_v40 }
  0xec   :  { %527 = vmatprep.subr.mxu1 %v279_v41 }
  0xed   :  { %528 = vmatpush1.msra.mxu1 %v278_v42  ;;  %v580_v42 = vunpack.c.0.s8 %v579_v35 }
  0xee   :  { %529 = vmatprep.subr.mxu1 %v403_v43 }
  0xef   :  { %530 = vmatpush2.msra.mxu1 %v402_v44 }
  0xf0   :  { %531 = vmatprep.subr.mxu1 %v399_v45 }
  0xf1   :  { %532 = vmatpush2.msra.mxu1 %v398_v46 }
  0xf2   :  { %533 = vmatprep.subr.mxu1 %v395_v47 }
  0xf3   :  { %534 = vmatpush2.msra.mxu1 %v394_v48 }
  0xf4   :  { %535 = vmatprep.subr.mxu1 %v391_v49  ;;  %v583_v49 = vsub.s32 %v580_v42, %v1024_v0 }
  0xf5   :  { %536 = vmatpush2.msra.mxu1 %v390_v50 }
  0xf6   :  { %537 = vmatprep.subr.mxu1 %v387_v51 }
  0xf7   :  { %538 = vmatpush2.msra.mxu1 %v386_v52 }
  0xf8   :  { %539 = vmatprep.subr.mxu1 %v383_v53 }
  0xf9   :  { %540 = vmatpush2.msra.mxu1 %v382_v54 }
  0xfa   :  { %541 = vmatprep.subr.mxu1 %v379_v55 }
  0xfb   :  { %542 = vmatpush2.msra.mxu1 %v378_v56 }
  0xfc   :  { %543 = vmatprep.subr.mxu1 %v375_v57 }
  0xfd   :  { %544 = vmatpush2.msra.mxu1 %v374_v58 }
  0xfe   :  { %545 = vmatprep.subr.mxu1 %v371_v59 }
  0xff   :  { %546 = vmatpush2.msra.mxu1 %v370_v60 }
 0x100   :  { %547 = vmatprep.subr.mxu1 %v367_v61 }
 0x101   :  { %548 = vmatpush2.msra.mxu1 %v366_v62 }
 0x102   :  { %549 = vmatprep.subr.mxu1 %v363_v63 }
 0x103   :  { %550 = vmatpush2.msra.mxu1 %v362_v2 }
 0x104   :  { %551 = vmatprep.subr.mxu1 %v359_v4 }
 0x105   :  { %552 = vmatpush2.msra.mxu1 %v358_v5 }
 0x106   :  { %553 = vmatprep.subr.mxu1 %v355_v7 }
 0x107   :  { %554 = vmatpush2.msra.mxu1 %v354_v9 }
 0x108   :  { %555 = vmatprep.subr.mxu1 %v351_v11 }
 0x109   :  { %556 = vmatpush2.msra.mxu1 %v350_v13 }
 0x10a   :  { %557 = vmatprep.subr.mxu1 %v347_v15 }
 0x10b   :  { %558 = vmatpush2.msra.mxu1 %v346_v17 }
 0x10c   :  { %559 = vmatprep.subr.mxu1 %v343_v19 }
 0x10d   :  { %560 = vmatpush2.msra.mxu1 %v342_v21 }
 0x18e   :  { %v269_v25 = vpop.f32.mrf.mxu1 }
 0x18f   :  { %v270_v26 = vadd.f32 %v269_v25, %v196_v23 }
 0x190   :  { %v271_v27 = vpop.f32.mrf.mxu1 }
 0x191   :  { %v272_v28 = vadd.f32 %v271_v27, %v200_v24  ;;  %v274_v30 = vmax.f32 %v270_v26, 0.0 }
 0x193   :  { %v275_v29 = vmax.f32 %v272_v28, 0.0 }
 0x195   :  { %490 = vmatprep.mubr.f32.mxu0 %v275_v29  ;;  %561 = vmatprep.mubr.f32.mxu1 %v275_v29 }
 0x196   :  { %491 = vmatmul.mubr.f32.vlgmr.msra.gmra.mxu0 %v274_v30  ;;  %562 = vmatmul.mubr.f32.vlgmr.msra.gmra.mxu1 %v274_v30 }
 0x256   :  { %v492_v40 = vpop.f32.mrf.mxu0  ;;  %v563_v41 = vpop.f32.mrf.mxu1 }
 0x257   :  { %v493_v43 = vadd.f32 %v492_v40, %v409_v36  ;;  %v564_v44 = vadd.f32 %v563_v41, %v417_v37 }
 0x258   :  { %v494_v45 = vpop.f32.mrf.mxu0  ;;  %v565_v46 = vpop.f32.mrf.mxu1 }
 0x259   :  { %v495_v47 = vadd.f32 %v494_v45, %v413_v38  ;;  %v566_v48 = vadd.f32 %v565_v46, %v421_v39  ;;  %v568_v50 = vmax.f32 %v493_v43, 0.0  ;;  %v570_v51 = vmax.f32 %v564_v44, 0.0 }
 0x25b   :  { %v569_v52 = vmax.f32 %v495_v47, 0.0  ;;  %v571_v53 = vmax.f32 %v566_v48, 0.0 }
 0x25d   :  { %v576_v1 = vcombine.low %v568_v50, %v569_v52  ;;  %v577_v54 = vcombine.low %v570_v51, %v571_v53 }
 0x25f   :  { %v584_v55 = vrot.slane %v576_v1, %v583_v49  ;;  %v591_v3 = vrot.slane %v577_v54, %v583_v49 }
 0x261   :  { %v592_v56 = vcombine.low %v584_v55, %v591_v3 }
 0x263   :  { %594 = vst [vmem:[%s1273_s7] sm:$0xff] %v592_v56 }

// kernel: tile.18
= control target key start
LH: loop header
LB: loop body
LE: loop exit
PB: predicated region body
PF: predicated region fallthrough
CT: control target
= control target key end

     0   :  { %s22_s0 = inlined_call_operand.vmem [shape: f32[32], index: 0, kind: input, shape index: {}]   ;;  %s23_s1 = inlined_call_operand.vmem [shape: f32[4,32], index: 1, kind: output, shape index: {}]  }
   0x1   :  { %v4_v0 = vld [vmem:[%s22_s0] ss:$0 sm:$0xff] }
   0x2   :  { %5 = vst [vmem:[%s23_s1] sm:$0xf] %v4_v0 }

// kernel: tile.19
= control target key start
LH: loop header
LB: loop body
LE: loop exit
PB: predicated region body
PF: predicated region fallthrough
CT: control target
= control target key end

     0   :  { %vm8_vm0 = vcmask 261120   ;;  %s40_s8 = smov 32   ;;  %s41_s9 = smov 64   ;;  %vm14_vm1 = vcmask 1048320   ;;  %vm20_vm2 = vcmask 785920   ;;  %vm26_vm3 = vcmask 523520   ;;  %s58_s0 = inlined_call_operand.vmem [shape: f32[4,32], index: 0, kind: input, shape index: {}]   ;;  %s59_s1 = inlined_call_operand.vmem [shape: f32[1,128], index: 1, kind: output, shape index: {}]  }
   0x1   :  { %v5_v0 = vld [vmem:[%s58_s0] sm:$0xf]  ;;  %s39_s0 = smov 96  }
   0x2   :  { %6 = vst [vmem:[#allocation1] sm:$0xf] %v5_v0 }
   0x9   :  { %v11_v1 = vld [vmem:[#allocation1 + $0x3] sm:$0x1]   ;;  %v23_v2 = vld [vmem:[#allocation1 + $0x1] sm:$0x1]   ;;  %v7_v3 = vld [vmem:[#allocation1] sm:$0x1]  }
   0xa   :  { %12 = vrot.lane.b32.xlu0 %v11_v1, %s39_s0  ;;  %24 = vrot.lane.b32.xlu1 %v23_v2, %s40_s8  ;;  %v17_v4 = vld [vmem:[#allocation1 + $0x2] sm:$0x1]   ;;  %9 = vst.msk [vmem:[#allocation0] sm:$0x1] %vm8_vm0, %v7_v3  }
   0xe   :  { %18 = vrot.lane.b32.xlu0 %v17_v4, %s41_s9 }
  0x7c   :  { %v13_v5 = vpop.permute.xlu0 %12   ;;  %v25_v6 = vpop.permute.xlu1 %24  }
  0x7d   :  { %15 = vst.msk [vmem:[#allocation0] sm:$0x1] %vm14_vm1, %v13_v5  }
  0x80   :  { %v19_v7 = vpop.permute.xlu0 %18  }
  0x81   :  { %21 = vst.msk [vmem:[#allocation0] sm:$0x1] %vm20_vm2, %v19_v7  }
  0x82   :  { %27 = vst.msk [vmem:[#allocation0] sm:$0x1] %vm26_vm3, %v25_v6  }
  0x89   :  { %v32_v8 = vld [vmem:[#allocation0] sm:$0x1] }
  0x8a   :  { %35 = vst [vmem:[%s59_s1] sm:$0x1] %v32_v8 }

// kernel: decoder_burgess_forward.5
= control target key start
LH: loop header
LB: loop body
LE: loop exit
PB: predicated region body
PF: predicated region fallthrough
CT: control target
= control target key end

     0   :  { %s1471_s12 = smov 0   ;;  %s1765_s0 = inlined_call_operand.vmem [shape: f32[2,38,32], index: 0, kind: input, shape index: {}]   ;;  %s1766_s1 = inlined_call_operand.vmem [shape: f32[9,32,128], index: 1, kind: input, shape index: {}]   ;;  %s1767_s2 = inlined_call_operand.vmem [shape: f32[1,128], index: 2, kind: input, shape index: {}]   ;;  %s1768_s3 = inlined_call_operand.vmem [shape: f32[2,24,128], index: 3, kind: output, shape index: {}]  }
   0x1 LB: > { %s1136_s13 = sadd.s32 4294967295, %s1447_s12   ;;  %p1140_p0 = scmp.ge.s32.totalorder %s1447_s12, 1  ;;  %s1447_s12 = sphi %s1471_s12, %s13_s12  }
   0x2   : > { %p137_p1 = scmp.lt.s32.totalorder %s1447_s12, 3 }
   0x4   : > { %p138_p2 = pnand %p1140_p0, %p137_p1 }
   0x5   : > { %p161_p3 = scmp.lt.s32.totalorder (!%p138_p2), %s1136_s13, 1 }
   0x6   : > { %141 = sbr.rel (%p138_p2) target bundleno = 283 (0x11b), region = 32 }
   0xb   : > { %v1146_v0 = vld [vmem:[%s1766_s1 + $0x38] sm:$0xff]  ;;  %v1449_v1 = vmov 0.0   ;;  %v1145_v2 = vld [vmem:[%s1766_s1 + $0x30] sm:$0xff]  ;;  %s1770_s13 = smov (!%p161_p3, %s1136_s13), 1  ;;  %v1144_v3 = vld [vmem:[%s1766_s1 + $0x28] sm:$0xff]  ;;  %vm186_vm0 = vcmask 261120  }
   0xc   : > { %1421 = vmatprep.subr.mxu1 %v1449_v1  ;;  %1268 = vmatprep.subr.mxu0 %v1449_v1  ;;  %s1429_s20 = smul.u32 40, %s1770_s13  ;;  %v1143_v4 = vld [vmem:[%s1766_s1 + $0x20] sm:$0xff]  ;;  %vm1450_vm1 = vmmov 0   ;;  %v177_v7 = vld [vmem:[%s1766_s1 + $0x18] sm:$0xff]  ;;  %v176_v9 = vld [vmem:[%s1766_s1 + $0x10] sm:$0xff] }
   0xd   : > { %1425 = vmatpush3.msra.mxu1 %v1146_v0  ;;  %1269 = vmatpush3.msra.mxu0 %v1146_v0  ;;  %v1156_v8 = vld [vmem:[%s1766_s1 + $0x58] sm:$0xff]  ;;  %v1155_v10 = vld [vmem:[%s1766_s1 + $0x50] sm:$0xff]  ;;  %v175_v12 = vld [vmem:[%s1766_s1 + $0x8] sm:$0xff] }
   0xe   : > { %1422 = vmatprep.subr.mxu1 %v1449_v1  ;;  %1270 = vmatprep.subr.mxu0 %v1449_v1  ;;  %s1503_s25 = scalar_lea.vmem %s1765_s0, %s1429_s20  ;;  %v1154_v13 = vld [vmem:[%s1766_s1 + $0x48] sm:$0xff]  ;;  %v174_v14 = vld [vmem:[%s1766_s1] sm:$0xff]  ;;  %v1163_v18 = vld [vmem:[%s1766_s1 + $0x78] sm:$0xff] }
   0xf   : > { %1426 = vmatpush3.msra.mxu1 %v1145_v2  ;;  %1271 = vmatpush3.msra.mxu0 %v1145_v2  ;;  %v180_v5 = vld [vmem:[%s1503_s25 + $0x11] sm:$0xff]  ;;  %v178_v6 = vld [vmem:[%s1503_s25 + $0x1] sm:$0xff]  ;;  %v179_v11 = vld [vmem:[%s1503_s25 + $0x9] sm:$0xff] }
  0x10   : > { %1423 = vmatprep.subr.mxu1 %v1449_v1  ;;  %1272 = vmatprep.subr.mxu0 %v1449_v1  ;;  %v171_v15 = vld [vmem:[%s1503_s25] sm:$0xff]  ;;  %v1170_v19 = vld [vmem:[%s1766_s1 + $0x98] sm:$0xff]  ;;  %v1567_v20 = vld [vmem:[%s1503_s25 + $0x8] sm:$0xff] }
  0x11   : > { %1427 = vmatpush3.msra.mxu1 %v1144_v3  ;;  %1273 = vmatpush3.msra.mxu0 %v1144_v3  ;;  %v1153_v16 = vld [vmem:[%s1766_s1 + $0x40] sm:$0xff]  ;;  %v1162_v21 = vld [vmem:[%s1766_s1 + $0x70] sm:$0xff]  ;;  %v1161_v24 = vld [vmem:[%s1766_s1 + $0x68] sm:$0xff] }
  0x12   : > { %1424 = vmatprep.subr.mxu1 %v1449_v1  ;;  %1274 = vmatprep.subr.mxu0 %v1449_v1  ;;  %v365_v17 = vld [vmem:[%s1503_s25 + $0x2] sm:$0xff]  ;;  %v366_v22 = vld [vmem:[%s1503_s25 + $0xa] sm:$0xff]  ;;  %v367_v26 = vld [vmem:[%s1503_s25 + $0x12] sm:$0xff] }
  0x13   : > { %1428 = vmatpush3.msra.mxu1 %v1143_v4  ;;  %1282 = vmatprep.mubr.msk.f32.mxu1 %vm1450_vm1, %v1449_v1  ;;  %v1169_v23 = vld [vmem:[%s1766_s1 + $0x90] sm:$0xff]  ;;  %v1168_v27 = vld [vmem:[%s1766_s1 + $0x88] sm:$0xff]  ;;  %v1160_v28 = vld [vmem:[%s1766_s1 + $0x60] sm:$0xff] }
  0x14   : > { %1275 = vmatpush3.msra.mxu0 %v1143_v4  ;;  %1276 = vmatprep.mubr.msk.f32.mxu0 %vm1450_vm1, %v1449_v1  ;;  %v1591_v25 = vld [vmem:[%s1503_s25 + $0x10] sm:$0xff]  ;;  %v465_v29 = vld [vmem:[%s1503_s25 + $0x6] sm:$0xff]  ;;  %v1177_v32 = vld [vmem:[%s1766_s1 + $0xb8] sm:$0xff] }
  0x15   : > { %1283 = vmatmul.mubr.msk.f32.vlgmr.msra.gmra.mxu1 %vm186_vm0, %v180_v5  ;;  %1285 = vmatprep.subr.mxu1 %v1449_v1  ;;  %v1167_v30 = vld [vmem:[%s1766_s1 + $0x80] sm:$0xff]  ;;  %v1184_v33 = vld [vmem:[%s1766_s1 + $0xd8] sm:$0xff]  ;;  %v1629_v34 = vld [vmem:[%s1503_s25 + $0xe] sm:$0xff] }
  0x16   : > { %1277 = vmatmul.mubr.msk.f32.vlgmr.msra.gmra.mxu0 %vm186_vm0, %v178_v6  ;;  %1286 = vmatpush3.msra.mxu1 %v177_v7  ;;  %v565_v31 = vld [vmem:[%s1503_s25 + $0x7] sm:$0xff]  ;;  %v1176_v35 = vld [vmem:[%s1766_s1 + $0xb0] sm:$0xff]  ;;  %v1191_v45 = vld [vmem:[%s1766_s1 + $0xf8] sm:$0xff] }
  0x17   : > { %1302 = vmatprep.subr.mxu0 %v1449_v1  ;;  %1287 = vmatprep.subr.mxu1 %v1449_v1  ;;  %v566_v36 = vld [vmem:[%s1503_s25 + $0xf] sm:$0xff]  ;;  %v567_v40 = vld [vmem:[%s1503_s25 + $0x17] sm:$0xff]  ;;  %v1174_v42 = vld [vmem:[%s1766_s1 + $0xa0] sm:$0xff] }
  0x18   : > { %1303 = vmatpush3.msra.mxu0 %v1156_v8  ;;  %1288 = vmatpush3.msra.mxu1 %v176_v9  ;;  %v1183_v37 = vld [vmem:[%s1766_s1 + $0xd0] sm:$0xff]  ;;  %v1175_v38 = vld [vmem:[%s1766_s1 + $0xa8] sm:$0xff]  ;;  %v1181_v43 = vld [vmem:[%s1766_s1 + $0xc0] sm:$0xff] }
  0x19   : > { %1304 = vmatprep.subr.mxu0 %v1449_v1  ;;  %1279 = vmatprep.mubr.msk.f32.mxu0 %vm1450_vm1, %v1449_v1  ;;  %v1653_v39 = vld [vmem:[%s1503_s25 + $0x16] sm:$0xff]  ;;  %v1182_v41 = vld [vmem:[%s1766_s1 + $0xc8] sm:$0xff]  ;;  %v1188_v54 = vld [vmem:[%s1766_s1 + $0xe0] sm:$0xff] }
  0x1a   : > { %1289 = vmatprep.subr.mxu1 %v1449_v1  ;;  %1305 = vmatpush3.msra.mxu0 %v1155_v10  ;;  %v765_v44 = vld [vmem:[%s1503_s25 + $0xc] sm:$0xff]  ;;  %v1198_v46 = vld [vmem:[%s1766_s1 + $0x118] sm:$0xff]  ;;  %v1195_v56 = vld [vmem:[%s1766_s1 + $0x100] sm:$0xff] }
  0x1b   : > { %1280 = vmatmul.mubr.msk.f32.gmra.mxu0 %vm186_vm0, %v179_v11  ;;  %1290 = vmatpush3.msra.mxu1 %v175_v12  ;;  %v1190_v47 = vld [vmem:[%s1766_s1 + $0xf0] sm:$0xff]  ;;  %v1189_v50 = vld [vmem:[%s1766_s1 + $0xe8] sm:$0xff]  ;;  %v667_v51 = vld [vmem:[%s1503_s25 + $0x18] sm:$0xff] }
  0x1c   : > { %1306 = vmatprep.subr.mxu0 %v1449_v1  ;;  %1291 = vmatprep.subr.mxu1 %v1449_v1  ;;  %v766_v48 = vld [vmem:[%s1503_s25 + $0x14] sm:$0xff]  ;;  %v767_v52 = vld [vmem:[%s1503_s25 + $0x1c] sm:$0xff]  ;;  %v1196_v53 = vld [vmem:[%s1766_s1 + $0x108] sm:$0xff] }
  0x1d   : > { %1307 = vmatpush3.msra.mxu0 %v1154_v13  ;;  %1292 = vmatpush3.msra.mxu1 %v174_v14  ;;  %v1197_v49 = vld [vmem:[%s1766_s1 + $0x110] sm:$0xff]  ;;  %v867_v58 = vld [vmem:[%s1503_s25 + $0x1d] sm:$0xff] }
  0x1e   : > { %1293 = vmatprep.mubr.msk.f32.mxu1 %vm1450_vm1, %v1449_v1  ;;  %1308 = vmatprep.subr.mxu0 %v1449_v1  ;;  %v865_v55 = vld [vmem:[%s1503_s25 + $0xd] sm:$0xff]  ;;  %v866_v57 = vld [vmem:[%s1503_s25 + $0x15] sm:$0xff]  ;;  %v967_v59 = vld [vmem:[%s1503_s25 + $0x1e] sm:$0xff]  ;;  %s1430_s25 = smul.u32 24, %s1770_s13 }
  0x1f   : > { %1294 = vmatmul.mubr.msk.f32.vlgmr.msra.gmra.mxu1 %vm186_vm0, %v171_v15  ;;  %1309 = vmatpush3.msra.mxu0 %v1153_v16 }
  0x20   : > { %1310 = vmatprep.mubr.msk.f32.mxu0 %vm1450_vm1, %v1449_v1  ;;  %1319 = vmatprep.subr.mxu1 %v1449_v1  ;;  %s170_s21 = scalar_lea.vmem %s1768_s3, %s1430_s25 }
  0x21   : > { %1311 = vmatmul.mubr.msk.f32.vlgmr.msra.gmra.mxu0 %vm186_vm0, %v365_v17  ;;  %1320 = vmatpush3.msra.mxu1 %v1163_v18 }
  0x22   : > { %1336 = vmatprep.subr.mxu0 %v1449_v1  ;;  %1296 = vmatprep.mubr.msk.f32.mxu1 %vm1450_vm1, %v1449_v1 }
  0x23   : > { %1321 = vmatprep.subr.mxu1 %v1449_v1  ;;  %1337 = vmatpush3.msra.mxu0 %v1170_v19 }
  0x24   : > { %1297 = vmatmul.mubr.msk.f32.gmra.mxu1 %vm186_vm0, %v1567_v20  ;;  %1313 = vmatprep.mubr.msk.f32.mxu0 %vm1450_vm1, %v1449_v1 }
  0x25   : > { %1322 = vmatpush3.msra.mxu1 %v1162_v21  ;;  %1314 = vmatmul.mubr.msk.f32.gmra.mxu0 %vm186_vm0, %v366_v22 }
  0x26   : > { %1338 = vmatprep.subr.mxu0 %v1449_v1  ;;  %1323 = vmatprep.subr.mxu1 %v1449_v1 }
  0x27   : > { %1339 = vmatpush3.msra.mxu0 %v1169_v23  ;;  %1299 = vmatprep.mubr.msk.f32.mxu1 %vm1450_vm1, %v1449_v1 }
  0x28   : > { %1324 = vmatpush3.msra.mxu1 %v1161_v24  ;;  %1316 = vmatprep.mubr.msk.f32.mxu0 %vm1450_vm1, %v1449_v1 }
  0x29   : > { %1300 = vmatmul.mubr.msk.f32.gmra.mxu1 %vm186_vm0, %v1591_v25  ;;  %1340 = vmatprep.subr.mxu0 %v1449_v1 }
  0x2a   : > { %1317 = vmatmul.mubr.msk.f32.gmra.mxu0 %vm186_vm0, %v367_v26  ;;  %1325 = vmatprep.subr.mxu1 %v1449_v1 }
  0x2b   : > { %1341 = vmatpush3.msra.mxu0 %v1168_v27  ;;  %1326 = vmatpush3.msra.mxu1 %v1160_v28 }
  0x2c   : > { %1327 = vmatprep.mubr.msk.f32.mxu1 %vm1450_vm1, %v1449_v1  ;;  %1342 = vmatprep.subr.mxu0 %v1449_v1 }
  0x2d   : > { %1328 = vmatmul.mubr.msk.f32.vlgmr.msra.gmra.mxu1 %vm186_vm0, %v465_v29  ;;  %1343 = vmatpush3.msra.mxu0 %v1167_v30 }
  0x2e   : > { %1344 = vmatprep.mubr.msk.f32.mxu0 %vm1450_vm1, %v1449_v1  ;;  %1353 = vmatprep.subr.mxu1 %v1449_v1 }
  0x2f   : > { %1345 = vmatmul.mubr.msk.f32.vlgmr.msra.gmra.mxu0 %vm186_vm0, %v565_v31  ;;  %1354 = vmatpush3.msra.mxu1 %v1177_v32 }
  0x30   : > { %1370 = vmatprep.subr.mxu0 %v1449_v1  ;;  %1330 = vmatprep.mubr.msk.f32.mxu1 %vm1450_vm1, %v1449_v1 }
  0x31   : > { %1355 = vmatprep.subr.mxu1 %v1449_v1  ;;  %1371 = vmatpush3.msra.mxu0 %v1184_v33 }
  0x32   : > { %1331 = vmatmul.mubr.msk.f32.gmra.mxu1 %vm186_vm0, %v1629_v34  ;;  %1347 = vmatprep.mubr.msk.f32.mxu0 %vm1450_vm1, %v1449_v1 }
  0x33   : > { %1356 = vmatpush3.msra.mxu1 %v1176_v35  ;;  %1348 = vmatmul.mubr.msk.f32.gmra.mxu0 %vm186_vm0, %v566_v36 }
  0x34   : > { %1372 = vmatprep.subr.mxu0 %v1449_v1  ;;  %1357 = vmatprep.subr.mxu1 %v1449_v1 }
  0x35   : > { %1373 = vmatpush3.msra.mxu0 %v1183_v37  ;;  %1333 = vmatprep.mubr.msk.f32.mxu1 %vm1450_vm1, %v1449_v1 }
  0x36   : > { %1358 = vmatpush3.msra.mxu1 %v1175_v38  ;;  %1350 = vmatprep.mubr.msk.f32.mxu0 %vm1450_vm1, %v1449_v1 }
  0x37   : > { %1334 = vmatmul.mubr.msk.f32.gmra.mxu1 %vm186_vm0, %v1653_v39  ;;  %1374 = vmatprep.subr.mxu0 %v1449_v1 }
  0x38   : > { %1351 = vmatmul.mubr.msk.f32.gmra.mxu0 %vm186_vm0, %v567_v40  ;;  %1359 = vmatprep.subr.mxu1 %v1449_v1 }
  0x39   : > { %1375 = vmatpush3.msra.mxu0 %v1182_v41  ;;  %1360 = vmatpush3.msra.mxu1 %v1174_v42 }
  0x3a   : > { %1361 = vmatprep.mubr.msk.f32.mxu1 %vm1450_vm1, %v1449_v1  ;;  %1376 = vmatprep.subr.mxu0 %v1449_v1 }
  0x3b   : > { %1362 = vmatmul.mubr.msk.f32.vlgmr.msra.gmra.mxu1 %vm186_vm0, %v1567_v20  ;;  %1377 = vmatpush3.msra.mxu0 %v1181_v43 }
  0x3c   : > { %1378 = vmatprep.mubr.msk.f32.mxu0 %vm1450_vm1, %v1449_v1  ;;  %1387 = vmatprep.subr.mxu1 %v1449_v1 }
  0x3d   : > { %1379 = vmatmul.mubr.msk.f32.vlgmr.msra.gmra.mxu0 %vm186_vm0, %v765_v44  ;;  %1388 = vmatpush3.msra.mxu1 %v1191_v45 }
  0x3e   : > { %1404 = vmatprep.subr.mxu0 %v1449_v1  ;;  %1364 = vmatprep.mubr.msk.f32.mxu1 %vm1450_vm1, %v1449_v1 }
  0x3f   : > { %1389 = vmatprep.subr.mxu1 %v1449_v1  ;;  %1405 = vmatpush3.msra.mxu0 %v1198_v46 }
  0x40   : > { %1365 = vmatmul.mubr.msk.f32.gmra.mxu1 %vm186_vm0, %v1591_v25  ;;  %1381 = vmatprep.mubr.msk.f32.mxu0 %vm1450_vm1, %v1449_v1 }
  0x41   : > { %1390 = vmatpush3.msra.mxu1 %v1190_v47  ;;  %1382 = vmatmul.mubr.msk.f32.gmra.mxu0 %vm186_vm0, %v766_v48 }
  0x42   : > { %1406 = vmatprep.subr.mxu0 %v1449_v1  ;;  %1391 = vmatprep.subr.mxu1 %v1449_v1 }
  0x43   : > { %1407 = vmatpush3.msra.mxu0 %v1197_v49  ;;  %1367 = vmatprep.mubr.msk.f32.mxu1 %vm1450_vm1, %v1449_v1 }
  0x44   : > { %1392 = vmatpush3.msra.mxu1 %v1189_v50  ;;  %1384 = vmatprep.mubr.msk.f32.mxu0 %vm1450_vm1, %v1449_v1 }
  0x45   : > { %1368 = vmatmul.mubr.msk.f32.gmra.mxu1 %vm186_vm0, %v667_v51  ;;  %1408 = vmatprep.subr.mxu0 %v1449_v1 }
  0x46   : > { %1385 = vmatmul.mubr.msk.f32.gmra.mxu0 %vm186_vm0, %v767_v52  ;;  %1393 = vmatprep.subr.mxu1 %v1449_v1 }
  0x47   : > { %1409 = vmatpush3.msra.mxu0 %v1196_v53  ;;  %1394 = vmatpush3.msra.mxu1 %v1188_v54 }
  0x48   : > { %1395 = vmatprep.mubr.msk.f32.mxu1 %vm1450_vm1, %v1449_v1  ;;  %1410 = vmatprep.subr.mxu0 %v1449_v1 }
  0x49   : > { %1396 = vmatmul.mubr.msk.f32.vlgmr.msra.gmra.mxu1 %vm186_vm0, %v865_v55  ;;  %1411 = vmatpush3.msra.mxu0 %v1195_v56  ;;  %v1202_v56 = vld [vmem:[%s1767_s2] ss:$0 sm:$0xff] }
  0x4a   : > { %1412 = vmatprep.mubr.msk.f32.mxu0 %vm1450_vm1, %v1449_v1  ;;  %1398 = vmatprep.mubr.msk.f32.mxu1 %vm1450_vm1, %v1449_v1 }
  0x4b   : > { %1413 = vmatmul.mubr.msk.f32.vlgmr.msra.gmra.mxu0 %vm186_vm0, %v1629_v34 }
  0x4c   : > { %1415 = vmatprep.mubr.msk.f32.mxu0 %vm1450_vm1, %v1449_v1 }
  0x4d   : > { %1399 = vmatmul.mubr.msk.f32.gmra.mxu1 %vm186_vm0, %v866_v57 }
  0x4e   : > { %1401 = vmatprep.mubr.msk.f32.mxu1 %vm1450_vm1, %v1449_v1 }
  0x4f   : > { %1416 = vmatmul.mubr.msk.f32.gmra.mxu0 %vm186_vm0, %v1653_v39 }
  0x50   : > { %1418 = vmatprep.mubr.msk.f32.mxu0 %vm1450_vm1, %v1449_v1 }
  0x51   : > { %1402 = vmatmul.mubr.msk.f32.gmra.mxu1 %vm186_vm0, %v867_v58 }
  0x53   : > { %1419 = vmatmul.mubr.msk.f32.gmra.mxu0 %vm186_vm0, %v967_v59 }
  0xd5   : > { %v272_v60 = vpop.f32.mrf.mxu1 }
  0xd6   : > { %v262_v61 = vpop.f32.mrf.mxu0 }
  0xd7   : > { %v1284_v62 = vpop.f32.mrf.mxu1 }
  0xd8   : > { %v1278_v63 = vpop.f32.mrf.mxu0 }
  0xdb   : > { %v267_v0 = vpop.f32.mrf.mxu0 }
  0xdd   : > { %v1281_v2 = vpop.f32.mrf.mxu0 }
  0xdf   : > { %v351_v3 = vpop.f32.mrf.mxu1 }
  0xe0   : > { %v352_v23 = vadd.f32 %v351_v3, %v262_v61 }
  0xe1   : > { %v448_v4 = vpop.f32.mrf.mxu0  ;;  %v1295_v5 = vpop.f32.mrf.mxu1 }
  0xe2   : > { %v462_v28 = vadd.f32 %v448_v4, %v352_v23 }
  0xe3   : > { %v1312_v6 = vpop.f32.mrf.mxu0 }
  0xe4   : > { %v356_v7 = vpop.f32.mrf.mxu1 }
  0xe5   : > { %v453_v8 = vpop.f32.mrf.mxu0  ;;  %v357_v29 = vadd.f32 %v356_v7, %v267_v0 }
  0xe6   : > { %v1298_v9 = vpop.f32.mrf.mxu1 }
  0xe7   : > { %v1315_v10 = vpop.f32.mrf.mxu0  ;;  %v463_v34 = vadd.f32 %v453_v8, %v357_v29 }
  0xe9   : > { %v361_v1 = vpop.f32.mrf.mxu1 }
  0xea   : > { %v458_v11 = vpop.f32.mrf.mxu0  ;;  %v362_v35 = vadd.f32 %v361_v1, %v272_v60 }
  0xeb   : > { %v1301_v12 = vpop.f32.mrf.mxu1 }
  0xec   : > { %v1318_v13 = vpop.f32.mrf.mxu0  ;;  %v464_v42 = vadd.f32 %v458_v11, %v362_v35 }
  0xed   : > { %v548_v14 = vpop.f32.mrf.mxu1 }
  0xee   : > { %v562_v32 = vadd.f32 %v548_v14, %v462_v28 }
  0xef   : > { %v648_v15 = vpop.f32.mrf.mxu0  ;;  %v1329_v16 = vpop.f32.mrf.mxu1 }
  0xf0   : > { %v662_v38 = vadd.f32 %v648_v15, %v562_v32 }
  0xf1   : > { %v1346_v17 = vpop.f32.mrf.mxu0 }
  0xf2   : > { %v553_v18 = vpop.f32.mrf.mxu1 }
  0xf3   : > { %v653_v19 = vpop.f32.mrf.mxu0  ;;  %v563_v39 = vadd.f32 %v553_v18, %v463_v34 }
  0xf4   : > { %v1332_v20 = vpop.f32.mrf.mxu1 }
  0xf5   : > { %v1349_v21 = vpop.f32.mrf.mxu0  ;;  %v663_v45 = vadd.f32 %v653_v19, %v563_v39 }
  0xf7   : > { %v558_v22 = vpop.f32.mrf.mxu1 }
  0xf8   : > { %v658_v24 = vpop.f32.mrf.mxu0  ;;  %v564_v46 = vadd.f32 %v558_v22, %v464_v42 }
  0xf9   : > { %v1335_v25 = vpop.f32.mrf.mxu1 }
  0xfa   : > { %v1352_v26 = vpop.f32.mrf.mxu0  ;;  %v664_v53 = vadd.f32 %v658_v24, %v564_v46 }
  0xfb   : > { %v748_v27 = vpop.f32.mrf.mxu1 }
  0xfc   : > { %v762_v43 = vadd.f32 %v748_v27, %v662_v38 }
  0xfd   : > { %v848_v30 = vpop.f32.mrf.mxu0  ;;  %v1363_v31 = vpop.f32.mrf.mxu1 }
  0xfe   : > { %v862_v49 = vadd.f32 %v848_v30, %v762_v43 }
  0xff   : > { %v1380_v33 = vpop.f32.mrf.mxu0 }
 0x100   : > { %v753_v36 = vpop.f32.mrf.mxu1 }
 0x101   : > { %v853_v37 = vpop.f32.mrf.mxu0  ;;  %v763_v50 = vadd.f32 %v753_v36, %v663_v45 }
 0x102   : > { %v1366_v40 = vpop.f32.mrf.mxu1 }
 0x103   : > { %v1383_v41 = vpop.f32.mrf.mxu0  ;;  %v863_v58 = vadd.f32 %v853_v37, %v763_v50 }
 0x105   : > { %v758_v44 = vpop.f32.mrf.mxu1 }
 0x106   : > { %v858_v47 = vpop.f32.mrf.mxu0  ;;  %v764_v59 = vadd.f32 %v758_v44, %v664_v53 }
 0x107   : > { %v1369_v48 = vpop.f32.mrf.mxu1 }
 0x108   : > { %v1386_v51 = vpop.f32.mrf.mxu0  ;;  %v864_v4 = vadd.f32 %v858_v47, %v764_v59 }
 0x109   : > { %v948_v52 = vpop.f32.mrf.mxu1 }
 0x10a   : > { %v962_v54 = vadd.f32 %v948_v52, %v862_v49 }
 0x10b   : > { %v1048_v55 = vpop.f32.mrf.mxu0  ;;  %v1397_v57 = vpop.f32.mrf.mxu1 }
 0x10c   : > { %v1062_v60 = vadd.f32 %v1048_v55, %v962_v54 }
 0x10d   : > { %v1414_v61 = vpop.f32.mrf.mxu0  ;;  %v953_v62 = vpop.f32.mrf.mxu1 }
 0x10e   : > { %v1072_v63 = vadd.f32 %v1202_v56, %v1062_v60  ;;  %v963_v0 = vadd.f32 %v953_v62, %v863_v58 }
 0x10f   : > { %v1053_v2 = vpop.f32.mrf.mxu0  ;;  %v1400_v3 = vpop.f32.mrf.mxu1 }
 0x110   : > { %v1075_v5 = vmax.f32 %v1072_v63, 0.0  ;;  %v1063_v6 = vadd.f32 %v1053_v2, %v963_v0 }
 0x111   : > { %v1417_v7 = vpop.f32.mrf.mxu0  ;;  %v958_v8 = vpop.f32.mrf.mxu1 }
 0x112   : > { %1078 = vst [vmem:[%s170_s21] sm:$0xff] %v1075_v5  ;;  %v1073_v9 = vadd.f32 %v1202_v56, %v1063_v6  ;;  %v964_v10 = vadd.f32 %v958_v8, %v864_v4 }
 0x113   : > { %v1058_v1 = vpop.f32.mrf.mxu0  ;;  %v1403_v11 = vpop.f32.mrf.mxu1 }
 0x114   : > { %v1076_v12 = vmax.f32 %v1073_v9, 0.0  ;;  %v1064_v13 = vadd.f32 %v1058_v1, %v964_v10 }
 0x115   : > { %v1420_v14 = vpop.f32.mrf.mxu0 }
 0x116   : > { %1079 = vst [vmem:[%s170_s21 + $0x8] sm:$0xff] %v1076_v12  ;;  %v1074_v15 = vadd.f32 %v1202_v56, %v1064_v13 }
 0x118   : > { %v1077_v16 = vmax.f32 %v1074_v15, 0.0 }
 0x11a   : > { %1080 = vst [vmem:[%s170_s21 + $0x10] sm:$0xff] %v1077_v16 }
 0x11b PF: > { %s13_s12 = sadd.s32 1, %s1447_s12  }
 0x11c   : > { %p10_p4 = scmp.ge.s32.totalorder %s13_s12, 4  }
 0x11e   :  { %12 = sbr.rel (!%p10_p4) target bundleno = 1 (0x1), region = 70 }

// kernel: decoder_burgess_forward.6
= control target key start
LH: loop header
LB: loop body
LE: loop exit
PB: predicated region body
PF: predicated region fallthrough
CT: control target
= control target key end

     0   :  { %s2284_s12 = smov 0   ;;  %s2694_s0 = inlined_call_operand.vmem [shape: f32[2,102,32], index: 0, kind: input, shape index: {}]   ;;  %s2695_s1 = inlined_call_operand.vmem [shape: f32[9,32,128], index: 1, kind: input, shape index: {}]   ;;  %s2696_s2 = inlined_call_operand.vmem [shape: f32[1,128], index: 2, kind: input, shape index: {}]   ;;  %s2697_s3 = inlined_call_operand.vmem [shape: f32[2,80,128], index: 3, kind: output, shape index: {}]  }
   0x1 LB: > { %s1773_s13 = sadd.s32 4294967295, %s2262_s12   ;;  %p1777_p0 = scmp.ge.s32.totalorder %s2262_s12, 1  ;;  %s2262_s12 = sphi %s2284_s12, %s13_s12  }
   0x2   : > { %p137_p1 = scmp.lt.s32.totalorder %s2262_s12, 3 }
   0x4   : > { %p138_p2 = pnand %p1777_p0, %p137_p1 }
   0x6   : > { %141 = sbr.rel (%p138_p2) target bundleno = 313 (0x139), region = 32 }
   0xb   : > { %v1783_v0 = vld [vmem:[%s2695_s1 + $0x38] sm:$0xff]  ;;  %v1782_v1 = vld [vmem:[%s2695_s1 + $0x30] sm:$0xff]  ;;  %p161_p3 = scmp.lt.s32.totalorder %s1773_s13, 1  ;;  %v1781_v2 = vld [vmem:[%s2695_s1 + $0x28] sm:$0xff]  ;;  %vm200_vm0 = vcmask 261120  }
   0xc   : > { %2238 = vmatprep.subr.mxu1 %v1783_v0  ;;  %2031 = vmatprep.subr.mxu0 %v1783_v0  ;;  %v1780_v3 = vld [vmem:[%s2695_s1 + $0x20] sm:$0xff]  ;;  %v184_v4 = vld [vmem:[%s2695_s1 + $0x18] sm:$0xff]  ;;  %v183_v8 = vld [vmem:[%s2695_s1 + $0x10] sm:$0xff] }
   0xd   : > { %2242 = vmatpush3.msra.mxu1 %v1783_v0  ;;  %2032 = vmatpush3.msra.mxu0 %v1783_v0  ;;  %s2711_s13 = smov (!%p161_p3, %s1773_s13), 1  ;;  %v1807_v12 = vld [vmem:[%s2695_s1 + $0x58] sm:$0xff]  ;;  %v182_v13 = vld [vmem:[%s2695_s1 + $0x8] sm:$0xff]  ;;  %v1806_v15 = vld [vmem:[%s2695_s1 + $0x50] sm:$0xff] }
   0xe   : > { %2239 = vmatprep.subr.mxu1 %v1782_v1  ;;  %2033 = vmatprep.subr.mxu0 %v1782_v1  ;;  %s2246_s22 = smul.u32 104, %s2711_s13  ;;  %v181_v18 = vld [vmem:[%s2695_s1] sm:$0xff]  ;;  %v1805_v20 = vld [vmem:[%s2695_s1 + $0x48] sm:$0xff]  ;;  %v1821_v25 = vld [vmem:[%s2695_s1 + $0x78] sm:$0xff] }
   0xf   : > { %2243 = vmatpush3.msra.mxu1 %v1782_v1  ;;  %2034 = vmatpush3.msra.mxu0 %v1782_v1  ;;  %v1804_v22 = vld [vmem:[%s2695_s1 + $0x40] sm:$0xff]  ;;  %v1835_v27 = vld [vmem:[%s2695_s1 + $0x98] sm:$0xff]  ;;  %v1820_v31 = vld [vmem:[%s2695_s1 + $0x70] sm:$0xff] }
  0x10   : > { %2240 = vmatprep.subr.mxu1 %v1781_v2  ;;  %2035 = vmatprep.subr.mxu0 %v1781_v2  ;;  %s2310_s25 = scalar_lea.vmem %s2694_s0, %s2246_s22  ;;  %v1834_v34 = vld [vmem:[%s2695_s1 + $0x90] sm:$0xff]  ;;  %v1819_v37 = vld [vmem:[%s2695_s1 + $0x68] sm:$0xff]  ;;  %v1818_v45 = vld [vmem:[%s2695_s1 + $0x60] sm:$0xff] }
  0x11   : > { %2244 = vmatpush3.msra.mxu1 %v1781_v2  ;;  %2036 = vmatpush3.msra.mxu0 %v1781_v2  ;;  %v189_v5 = vld [vmem:[%s2310_s25 + $0x21] sm:$0xff]  ;;  %v190_v6 = vld [vmem:[%s2310_s25 + $0x29] sm:$0xff]  ;;  %v191_v7 = vld [vmem:[%s2310_s25 + $0x31] sm:$0xff] }
  0x12   : > { %2241 = vmatprep.subr.mxu1 %v1780_v3  ;;  %2037 = vmatprep.subr.mxu0 %v1780_v3  ;;  %v185_v9 = vld [vmem:[%s2310_s25 + $0x1] sm:$0xff]  ;;  %v192_v10 = vld [vmem:[%s2310_s25 + $0x39] sm:$0xff]  ;;  %v186_v11 = vld [vmem:[%s2310_s25 + $0x9] sm:$0xff] }
  0x13   : > { %2245 = vmatpush3.msra.mxu1 %v1780_v3  ;;  %2045 = vmatprep.mubr.msk.f32.mxu1 %vm200_vm0, %v189_v5  ;;  %v193_v14 = vld [vmem:[%s2310_s25 + $0x41] sm:$0xff]  ;;  %v187_v16 = vld [vmem:[%s2310_s25 + $0x11] sm:$0xff]  ;;  %v194_v17 = vld [vmem:[%s2310_s25 + $0x49] sm:$0xff] }
  0x14   : > { %2046 = vmatmul.mubr.msk.f32.vlgmr.msra.gmra.mxu1 %vm200_vm0, %v190_v6  ;;  %2054 = vmatprep.subr.mxu1 %v184_v4  ;;  %v188_v19 = vld [vmem:[%s2310_s25 + $0x19] sm:$0xff]  ;;  %v172_v23 = vld [vmem:[%s2310_s25 + $0x8] sm:$0xff]  ;;  %v173_v28 = vld [vmem:[%s2310_s25 + $0x10] sm:$0xff] }
  0x15   : > { %2055 = vmatpush3.msra.mxu1 %v184_v4  ;;  %2048 = vmatprep.mubr.msk.f32.mxu1 %vm200_vm0, %v191_v7  ;;  %v171_v21 = vld [vmem:[%s2310_s25] sm:$0xff]  ;;  %v492_v26 = vld [vmem:[%s2310_s25 + $0xa] sm:$0xff]  ;;  %v174_v29 = vld [vmem:[%s2310_s25 + $0x18] sm:$0xff] }
  0x16   : > { %2056 = vmatprep.subr.mxu1 %v183_v8  ;;  %2038 = vmatpush3.msra.mxu0 %v1780_v3  ;;  %v491_v24 = vld [vmem:[%s2310_s25 + $0x2] sm:$0xff]  ;;  %v493_v30 = vld [vmem:[%s2310_s25 + $0x12] sm:$0xff]  ;;  %v494_v32 = vld [vmem:[%s2310_s25 + $0x1a] sm:$0xff] }
  0x17   : > { %2039 = vmatprep.mubr.msk.f32.mxu0 %vm200_vm0, %v185_v9  ;;  %2057 = vmatpush3.msra.mxu1 %v183_v8  ;;  %v175_v33 = vld [vmem:[%s2310_s25 + $0x20] sm:$0xff]  ;;  %v176_v35 = vld [vmem:[%s2310_s25 + $0x28] sm:$0xff]  ;;  %v177_v39 = vld [vmem:[%s2310_s25 + $0x30] sm:$0xff] }
  0x18   : > { %2049 = vmatmul.mubr.msk.f32.gmra.mxu1 %vm200_vm0, %v192_v10  ;;  %2040 = vmatmul.mubr.msk.f32.vlgmr.msra.gmra.mxu0 %vm200_vm0, %v186_v11  ;;  %v495_v36 = vld [vmem:[%s2310_s25 + $0x22] sm:$0xff]  ;;  %v496_v38 = vld [vmem:[%s2310_s25 + $0x2a] sm:$0xff]  ;;  %v497_v40 = vld [vmem:[%s2310_s25 + $0x32] sm:$0xff] }
  0x19   : > { %2077 = vmatprep.subr.mxu0 %v1807_v12  ;;  %2058 = vmatprep.subr.mxu1 %v182_v13  ;;  %v178_v41 = vld [vmem:[%s2310_s25 + $0x38] sm:$0xff]  ;;  %v1833_v42 = vld [vmem:[%s2695_s1 + $0x88] sm:$0xff]  ;;  %v179_v43 = vld [vmem:[%s2310_s25 + $0x40] sm:$0xff] }
  0x1a   : > { %2078 = vmatpush3.msra.mxu0 %v1807_v12  ;;  %2051 = vmatprep.mubr.msk.f32.mxu1 %vm200_vm0, %v193_v14  ;;  %v498_v44 = vld [vmem:[%s2310_s25 + $0x3a] sm:$0xff]  ;;  %v499_v46 = vld [vmem:[%s2310_s25 + $0x42] sm:$0xff]  ;;  %v500_v49 = vld [vmem:[%s2310_s25 + $0x4a] sm:$0xff] }
  0x1b   : > { %2059 = vmatpush3.msra.mxu1 %v182_v13  ;;  %2079 = vmatprep.subr.mxu0 %v1806_v15  ;;  %v180_v47 = vld [vmem:[%s2310_s25 + $0x48] sm:$0xff]  ;;  %v1832_v48 = vld [vmem:[%s2695_s1 + $0x80] sm:$0xff]  ;;  %v1849_v50 = vld [vmem:[%s2695_s1 + $0xb8] sm:$0xff] }
  0x1c   : > { %2042 = vmatprep.mubr.msk.f32.mxu0 %vm200_vm0, %v187_v16  ;;  %2052 = vmatmul.mubr.msk.f32.gmra.mxu1 %vm200_vm0, %v194_v17  ;;  %v831_v51 = vld [vmem:[%s2310_s25 + $0xb] sm:$0xff]  ;;  %v1863_v52 = vld [vmem:[%s2695_s1 + $0xd8] sm:$0xff]  ;;  %v834_v57 = vld [vmem:[%s2310_s25 + $0x23] sm:$0xff] }
  0x1d   : > { %2080 = vmatpush3.msra.mxu0 %v1806_v15  ;;  %2060 = vmatprep.subr.mxu1 %v181_v18  ;;  %v832_v53 = vld [vmem:[%s2310_s25 + $0x13] sm:$0xff]  ;;  %v833_v55 = vld [vmem:[%s2310_s25 + $0x1b] sm:$0xff]  ;;  %v1847_v58 = vld [vmem:[%s2695_s1 + $0xa8] sm:$0xff] }
  0x1e   : > { %2043 = vmatmul.mubr.msk.f32.gmra.mxu0 %vm200_vm0, %v188_v19  ;;  %2081 = vmatprep.subr.mxu0 %v1805_v20  ;;  %v1848_v54 = vld [vmem:[%s2695_s1 + $0xb0] sm:$0xff]  ;;  %v1861_v60 = vld [vmem:[%s2695_s1 + $0xc8] sm:$0xff]  ;;  %v1846_v62 = vld [vmem:[%s2695_s1 + $0xa0] sm:$0xff] }
  0x1f   : > { %2061 = vmatpush3.msra.mxu1 %v181_v18  ;;  %2082 = vmatpush3.msra.mxu0 %v1805_v20  ;;  %v1862_v56 = vld [vmem:[%s2695_s1 + $0xd0] sm:$0xff]  ;;  %v837_v63 = vld [vmem:[%s2310_s25 + $0x3b] sm:$0xff]  ;;  %v838_v1 = vld [vmem:[%s2310_s25 + $0x43] sm:$0xff] }
  0x20   : > { %2062 = vmatprep.mubr.msk.f32.mxu1 %vm200_vm0, %v171_v21  ;;  %2083 = vmatprep.subr.mxu0 %v1804_v22  ;;  %v835_v59 = vld [vmem:[%s2310_s25 + $0x2b] sm:$0xff]  ;;  %v836_v61 = vld [vmem:[%s2310_s25 + $0x33] sm:$0xff]  ;;  %v1860_v0 = vld [vmem:[%s2695_s1 + $0xc0] sm:$0xff] }
  0x21   : > { %2063 = vmatmul.mubr.msk.f32.vlgmr.msra.gmra.mxu1 %vm200_vm0, %v172_v23  ;;  %2084 = vmatpush3.msra.mxu0 %v1804_v22  ;;  %v1877_v2 = vld [vmem:[%s2695_s1 + $0xf8] sm:$0xff]  ;;  %v839_v3 = vld [vmem:[%s2310_s25 + $0x4b] sm:$0xff]  ;;  %v1874_v18 = vld [vmem:[%s2695_s1 + $0xe0] sm:$0xff] }
  0x22   : > { %2085 = vmatprep.mubr.msk.f32.mxu0 %vm200_vm0, %v491_v24  ;;  %2100 = vmatprep.subr.mxu1 %v1821_v25  ;;  %v670_v4 = vld [vmem:[%s2310_s25 + $0x52] sm:$0xff]  ;;  %v1172_v9 = vld [vmem:[%s2310_s25 + $0x1c] sm:$0xff]  ;;  %v1004_v11 = vld [vmem:[%s2310_s25 + $0x24] sm:$0xff] }
  0x23   : > { %2086 = vmatmul.mubr.msk.f32.vlgmr.msra.gmra.mxu0 %vm200_vm0, %v492_v26  ;;  %2101 = vmatpush3.msra.mxu1 %v1821_v25  ;;  %v1891_v5 = vld [vmem:[%s2695_s1 + $0x118] sm:$0xff]  ;;  %v1001_v6 = vld [vmem:[%s2310_s25 + $0xc] sm:$0xff]  ;;  %v1008_v19 = vld [vmem:[%s2310_s25 + $0x44] sm:$0xff] }
  0x24   : > { %2123 = vmatprep.subr.mxu0 %v1835_v27  ;;  %2065 = vmatprep.mubr.msk.f32.mxu1 %vm200_vm0, %v173_v28  ;;  %v840_v7 = vld [vmem:[%s2310_s25 + $0x53] sm:$0xff]  ;;  %v1875_v14 = vld [vmem:[%s2695_s1 + $0xe8] sm:$0xff]  ;;  %v1176_v17 = vld [vmem:[%s2310_s25 + $0x3c] sm:$0xff] }
  0x25   : > { %2124 = vmatpush3.msra.mxu0 %v1835_v27  ;;  %2066 = vmatmul.mubr.msk.f32.gmra.mxu1 %vm200_vm0, %v174_v29  ;;  %v1002_v8 = vld [vmem:[%s2310_s25 + $0x14] sm:$0xff]  ;;  %v1174_v13 = vld [vmem:[%s2310_s25 + $0x2c] sm:$0xff]  ;;  %v1888_v20 = vld [vmem:[%s2695_s1 + $0x100] sm:$0xff] }
  0x26   : > { %2088 = vmatprep.mubr.msk.f32.mxu0 %vm200_vm0, %v493_v30  ;;  %2102 = vmatprep.subr.mxu1 %v1820_v31  ;;  %v1876_v10 = vld [vmem:[%s2695_s1 + $0xf0] sm:$0xff]  ;;  %v1889_v16 = vld [vmem:[%s2695_s1 + $0x108] sm:$0xff]  ;;  %v1180_v24 = vld [vmem:[%s2310_s25 + $0x5c] sm:$0xff] }
  0x27   : > { %2089 = vmatmul.mubr.msk.f32.gmra.mxu0 %vm200_vm0, %v494_v32  ;;  %2103 = vmatpush3.msra.mxu1 %v1820_v31  ;;  %v1890_v12 = vld [vmem:[%s2695_s1 + $0x110] sm:$0xff]  ;;  %v1343_v27 = vld [vmem:[%s2310_s25 + $0x25] sm:$0xff] }
  0x28   : > { %2068 = vmatprep.mubr.msk.f32.mxu1 %vm200_vm0, %v175_v33  ;;  %2125 = vmatprep.subr.mxu0 %v1834_v34  ;;  %v1006_v15 = vld [vmem:[%s2310_s25 + $0x34] sm:$0xff]  ;;  %v1178_v21 = vld [vmem:[%s2310_s25 + $0x4c] sm:$0xff]  ;;  %v1512_v28 = vld [vmem:[%s2310_s25 + $0x1e] sm:$0xff] }
  0x29   : > { %2069 = vmatmul.mubr.msk.f32.gmra.mxu1 %vm200_vm0, %v176_v35  ;;  %2091 = vmatprep.mubr.msk.f32.mxu0 %vm200_vm0, %v495_v36  ;;  %v1010_v22 = vld [vmem:[%s2310_s25 + $0x54] sm:$0xff]  ;;  %v1513_v29 = vld [vmem:[%s2310_s25 + $0x26] sm:$0xff] }
  0x2a   : > { %2126 = vmatpush3.msra.mxu0 %v1834_v34  ;;  %2104 = vmatprep.subr.mxu1 %v1819_v37  ;;  %v1341_v23 = vld [vmem:[%s2310_s25 + $0x15] sm:$0xff]  ;;  %v1346_v34 = vld [vmem:[%s2310_s25 + $0x3d] sm:$0xff]  ;;  %v1347_v35 = vld [vmem:[%s2310_s25 + $0x45] sm:$0xff] }
  0x2b   : > { %2092 = vmatmul.mubr.msk.f32.gmra.mxu0 %vm200_vm0, %v496_v38  ;;  %2071 = vmatprep.mubr.msk.f32.mxu1 %vm200_vm0, %v177_v39  ;;  %v1511_v25 = vld [vmem:[%s2310_s25 + $0x16] sm:$0xff] }
  0x2c   : > { %2105 = vmatpush3.msra.mxu1 %v1819_v37  ;;  %2094 = vmatprep.mubr.msk.f32.mxu0 %vm200_vm0, %v497_v40  ;;  %v1345_v31 = vld [vmem:[%s2310_s25 + $0x35] sm:$0xff]  ;;  %v1517_v37 = vld [vmem:[%s2310_s25 + $0x46] sm:$0xff] }
  0x2d   : > { %2072 = vmatmul.mubr.msk.f32.gmra.mxu1 %vm200_vm0, %v178_v41  ;;  %2127 = vmatprep.subr.mxu0 %v1833_v42  ;;  %v1515_v33 = vld [vmem:[%s2310_s25 + $0x36] sm:$0xff] }
  0x2e   : > { %2128 = vmatpush3.msra.mxu0 %v1833_v42  ;;  %2074 = vmatprep.mubr.msk.f32.mxu1 %vm200_vm0, %v179_v43  ;;  %v1349_v39 = vld [vmem:[%s2310_s25 + $0x55] sm:$0xff]  ;;  %v1350_v42 = vld [vmem:[%s2310_s25 + $0x5d] sm:$0xff] }
  0x2f   : > { %2095 = vmatmul.mubr.msk.f32.gmra.mxu0 %vm200_vm0, %v498_v44  ;;  %2106 = vmatprep.subr.mxu1 %v1818_v45  ;;  %v1519_v41 = vld [vmem:[%s2310_s25 + $0x56] sm:$0xff]  ;;  %v1520_v43 = vld [vmem:[%s2310_s25 + $0x5e] sm:$0xff] }
  0x30   : > { %2097 = vmatprep.mubr.msk.f32.mxu0 %vm200_vm0, %v499_v46  ;;  %2107 = vmatpush3.msra.mxu1 %v1818_v45 }
  0x31   : > { %2075 = vmatmul.mubr.msk.f32.gmra.mxu1 %vm200_vm0, %v180_v47  ;;  %2129 = vmatprep.subr.mxu0 %v1832_v48 }
  0x32   : > { %2130 = vmatpush3.msra.mxu0 %v1832_v48  ;;  %2108 = vmatprep.mubr.msk.f32.mxu1 %vm200_vm0, %v492_v26  ;;  %v1342_v26 = vld [vmem:[%s2310_s25 + $0x1d] sm:$0xff] }
  0x33   : > { %2098 = vmatmul.mubr.msk.f32.gmra.mxu0 %vm200_vm0, %v500_v49  ;;  %2146 = vmatprep.subr.mxu1 %v1849_v50 }
  0x34   : > { %2131 = vmatprep.mubr.msk.f32.mxu0 %vm200_vm0, %v831_v51  ;;  %2169 = vmatprep.subr.mxu0 %v1863_v52 }
  0x35   : > { %2109 = vmatmul.mubr.msk.f32.vlgmr.msra.gmra.mxu1 %vm200_vm0, %v493_v30  ;;  %v1344_v30 = vld [vmem:[%s2310_s25 + $0x2d] sm:$0xff] }
  0x36   : > { %2147 = vmatpush3.msra.mxu1 %v1849_v50  ;;  %2111 = vmatprep.mubr.msk.f32.mxu1 %vm200_vm0, %v494_v32  ;;  %v1514_v32 = vld [vmem:[%s2310_s25 + $0x2e] sm:$0xff] }
  0x37   : > { %2132 = vmatmul.mubr.msk.f32.vlgmr.msra.gmra.mxu0 %vm200_vm0, %v832_v53  ;;  %2148 = vmatprep.subr.mxu1 %v1848_v54 }
  0x38   : > { %2170 = vmatpush3.msra.mxu0 %v1863_v52  ;;  %2134 = vmatprep.mubr.msk.f32.mxu0 %vm200_vm0, %v833_v55 }
  0x39   : > { %2112 = vmatmul.mubr.msk.f32.gmra.mxu1 %vm200_vm0, %v495_v36  ;;  %2171 = vmatprep.subr.mxu0 %v1862_v56  ;;  %v1516_v36 = vld [vmem:[%s2310_s25 + $0x3e] sm:$0xff] }
  0x3a   : > { %2149 = vmatpush3.msra.mxu1 %v1848_v54  ;;  %2114 = vmatprep.mubr.msk.f32.mxu1 %vm200_vm0, %v496_v38  ;;  %v1348_v38 = vld [vmem:[%s2310_s25 + $0x4d] sm:$0xff] }
  0x3b   : > { %2135 = vmatmul.mubr.msk.f32.gmra.mxu0 %vm200_vm0, %v834_v57  ;;  %2150 = vmatprep.subr.mxu1 %v1847_v58 }
  0x3c   : > { %2137 = vmatprep.mubr.msk.f32.mxu0 %vm200_vm0, %v835_v59  ;;  %2172 = vmatpush3.msra.mxu0 %v1862_v56 }
  0x3d   : > { %2115 = vmatmul.mubr.msk.f32.gmra.mxu1 %vm200_vm0, %v497_v40  ;;  %2173 = vmatprep.subr.mxu0 %v1861_v60  ;;  %v1518_v40 = vld [vmem:[%s2310_s25 + $0x4e] sm:$0xff]  ;;  %s2247_s25 = smul.u32 80, %s2711_s13 }
  0x3e   : > { %2117 = vmatprep.mubr.msk.f32.mxu1 %vm200_vm0, %v498_v44  ;;  %2151 = vmatpush3.msra.mxu1 %v1847_v58 }
  0x3f   : > { %2138 = vmatmul.mubr.msk.f32.gmra.mxu0 %vm200_vm0, %v836_v61  ;;  %2152 = vmatprep.subr.mxu1 %v1846_v62  ;;  %s2661_s20 = scalar_lea.vmem %s2697_s3, %s2247_s25 }
  0x40   : > { %2140 = vmatprep.mubr.msk.f32.mxu0 %vm200_vm0, %v837_v63  ;;  %2174 = vmatpush3.msra.mxu0 %v1861_v60 }
  0x41   : > { %2118 = vmatmul.mubr.msk.f32.gmra.mxu1 %vm200_vm0, %v499_v46  ;;  %2175 = vmatprep.subr.mxu0 %v1860_v0 }
  0x42   : > { %2120 = vmatprep.mubr.msk.f32.mxu1 %vm200_vm0, %v500_v49  ;;  %2153 = vmatpush3.msra.mxu1 %v1846_v62 }
  0x43   : > { %2141 = vmatmul.mubr.msk.f32.gmra.mxu0 %vm200_vm0, %v838_v1  ;;  %2192 = vmatprep.subr.mxu1 %v1877_v2 }
  0x44   : > { %2143 = vmatprep.mubr.msk.f32.mxu0 %vm200_vm0, %v839_v3  ;;  %2176 = vmatpush3.msra.mxu0 %v1860_v0 }
  0x45   : > { %2121 = vmatmul.mubr.msk.f32.gmra.mxu1 %vm200_vm0, %v670_v4  ;;  %2215 = vmatprep.subr.mxu0 %v1891_v5 }
  0x46   : > { %2154 = vmatprep.mubr.msk.f32.mxu1 %vm200_vm0, %v1001_v6 }
  0x47   : > { %2144 = vmatmul.mubr.msk.f32.gmra.mxu0 %vm200_vm0, %v840_v7 }
  0x48   : > { %2177 = vmatprep.mubr.msk.f32.mxu0 %vm200_vm0, %v1002_v8 }
  0x49   : > { %2155 = vmatmul.mubr.msk.f32.vlgmr.msra.gmra.mxu1 %vm200_vm0, %v1002_v8 }
  0x4a   : > { %2193 = vmatpush3.msra.mxu1 %v1877_v2  ;;  %2157 = vmatprep.mubr.msk.f32.mxu1 %vm200_vm0, %v1172_v9 }
  0x4b   : > { %2178 = vmatmul.mubr.msk.f32.vlgmr.msra.gmra.mxu0 %vm200_vm0, %v1172_v9  ;;  %2194 = vmatprep.subr.mxu1 %v1876_v10 }
  0x4c   : > { %2216 = vmatpush3.msra.mxu0 %v1891_v5  ;;  %2180 = vmatprep.mubr.msk.f32.mxu0 %vm200_vm0, %v1004_v11 }
  0x4d   : > { %2158 = vmatmul.mubr.msk.f32.gmra.mxu1 %vm200_vm0, %v1004_v11  ;;  %2217 = vmatprep.subr.mxu0 %v1890_v12 }
  0x4e   : > { %2195 = vmatpush3.msra.mxu1 %v1876_v10  ;;  %2160 = vmatprep.mubr.msk.f32.mxu1 %vm200_vm0, %v1174_v13 }
  0x4f   : > { %2181 = vmatmul.mubr.msk.f32.gmra.mxu0 %vm200_vm0, %v1174_v13  ;;  %2196 = vmatprep.subr.mxu1 %v1875_v14 }
  0x50   : > { %2183 = vmatprep.mubr.msk.f32.mxu0 %vm200_vm0, %v1006_v15  ;;  %2218 = vmatpush3.msra.mxu0 %v1890_v12 }
  0x51   : > { %2161 = vmatmul.mubr.msk.f32.gmra.mxu1 %vm200_vm0, %v1006_v15  ;;  %2219 = vmatprep.subr.mxu0 %v1889_v16 }
  0x52   : > { %2163 = vmatprep.mubr.msk.f32.mxu1 %vm200_vm0, %v1176_v17  ;;  %2197 = vmatpush3.msra.mxu1 %v1875_v14 }
  0x53   : > { %2184 = vmatmul.mubr.msk.f32.gmra.mxu0 %vm200_vm0, %v1176_v17  ;;  %2198 = vmatprep.subr.mxu1 %v1874_v18 }
  0x54   : > { %2186 = vmatprep.mubr.msk.f32.mxu0 %vm200_vm0, %v1008_v19  ;;  %2220 = vmatpush3.msra.mxu0 %v1889_v16 }
  0x55   : > { %2164 = vmatmul.mubr.msk.f32.gmra.mxu1 %vm200_vm0, %v1008_v19  ;;  %2221 = vmatprep.subr.mxu0 %v1888_v20 }
  0x56   : > { %2166 = vmatprep.mubr.msk.f32.mxu1 %vm200_vm0, %v1178_v21  ;;  %2199 = vmatpush3.msra.mxu1 %v1874_v18 }
  0x57   : > { %2187 = vmatmul.mubr.msk.f32.gmra.mxu0 %vm200_vm0, %v1178_v21 }
  0x58   : > { %2189 = vmatprep.mubr.msk.f32.mxu0 %vm200_vm0, %v1010_v22  ;;  %2222 = vmatpush3.msra.mxu0 %v1888_v20 }
  0x59   : > { %2167 = vmatmul.mubr.msk.f32.gmra.mxu1 %vm200_vm0, %v1010_v22 }
  0x5a   : > { %2200 = vmatprep.mubr.msk.f32.mxu1 %vm200_vm0, %v1341_v23 }
  0x5b   : > { %2190 = vmatmul.mubr.msk.f32.gmra.mxu0 %vm200_vm0, %v1180_v24 }
  0x5c   : > { %2223 = vmatprep.mubr.msk.f32.mxu0 %vm200_vm0, %v1511_v25 }
  0x5d   : > { %2201 = vmatmul.mubr.msk.f32.vlgmr.msra.gmra.mxu1 %vm200_vm0, %v1342_v26 }
  0x5e   : > { %2203 = vmatprep.mubr.msk.f32.mxu1 %vm200_vm0, %v1343_v27 }
  0x5f   : > { %2224 = vmatmul.mubr.msk.f32.vlgmr.msra.gmra.mxu0 %vm200_vm0, %v1512_v28 }
  0x60   : > { %2226 = vmatprep.mubr.msk.f32.mxu0 %vm200_vm0, %v1513_v29 }
  0x61   : > { %2204 = vmatmul.mubr.msk.f32.gmra.mxu1 %vm200_vm0, %v1344_v30 }
  0x62   : > { %2206 = vmatprep.mubr.msk.f32.mxu1 %vm200_vm0, %v1345_v31 }
  0x63   : > { %2227 = vmatmul.mubr.msk.f32.gmra.mxu0 %vm200_vm0, %v1514_v32 }
  0x64   : > { %2229 = vmatprep.mubr.msk.f32.mxu0 %vm200_vm0, %v1515_v33 }
  0x65   : > { %2207 = vmatmul.mubr.msk.f32.gmra.mxu1 %vm200_vm0, %v1346_v34 }
  0x66   : > { %2209 = vmatprep.mubr.msk.f32.mxu1 %vm200_vm0, %v1347_v35 }
  0x67   : > { %2230 = vmatmul.mubr.msk.f32.gmra.mxu0 %vm200_vm0, %v1516_v36 }
  0x68   : > { %2232 = vmatprep.mubr.msk.f32.mxu0 %vm200_vm0, %v1517_v37 }
  0x69   : > { %2210 = vmatmul.mubr.msk.f32.gmra.mxu1 %vm200_vm0, %v1348_v38 }
  0x6a   : > { %2212 = vmatprep.mubr.msk.f32.mxu1 %vm200_vm0, %v1349_v39 }
  0x6b   : > { %2233 = vmatmul.mubr.msk.f32.gmra.mxu0 %vm200_vm0, %v1518_v40 }
  0x6c   : > { %2235 = vmatprep.mubr.msk.f32.mxu0 %vm200_vm0, %v1519_v41 }
  0x6d   : > { %2213 = vmatmul.mubr.msk.f32.gmra.mxu1 %vm200_vm0, %v1350_v42 }
  0x6f   : > { %2236 = vmatmul.mubr.msk.f32.gmra.mxu0 %vm200_vm0, %v1520_v43 }
  0xd4   : > { %v2570_v44 = vpop.f32.mrf.mxu1 }
  0xd6   : > { %v2572_v45 = vpop.f32.mrf.mxu1 }
  0xd8   : > { %v2574_v46 = vpop.f32.mrf.mxu1  ;;  %v2041_v47 = vpop.f32.mrf.mxu0 }
  0xda   : > { %v2576_v48 = vpop.f32.mrf.mxu1  ;;  %v297_v49 = vpop.f32.mrf.mxu0 }
  0xdc   : > { %v2578_v50 = vpop.f32.mrf.mxu1 }
  0xde   : > { %v2044_v51 = vpop.f32.mrf.mxu0  ;;  %v2580_v52 = vpop.f32.mrf.mxu1 }
  0xe0   : > { %v307_v53 = vpop.f32.mrf.mxu0 }
  0xe1   : > { %v2064_v54 = vpop.f32.mrf.mxu1 }
  0xe2   : > { %v448_v33 = vadd.f32 %v2064_v54, %v2041_v47 }
  0xe3   : > { %v2087_v55 = vpop.f32.mrf.mxu0  ;;  %v442_v56 = vpop.f32.mrf.mxu1 }
  0xe4   : > { %v443_v36 = vadd.f32 %v442_v56, %v297_v49  ;;  %v652_v39 = vadd.f32 %v2087_v55, %v448_v33 }
  0xe5   : > { %v602_v57 = vpop.f32.mrf.mxu0  ;;  %v2067_v58 = vpop.f32.mrf.mxu1 }
  0xe6   : > { %v458_v40 = vadd.f32 %v2067_v58, %v2044_v51  ;;  %v651_v43 = vadd.f32 %v602_v57, %v443_v36 }
  0xe7   : > { %v2090_v59 = vpop.f32.mrf.mxu0  ;;  %v452_v60 = vpop.f32.mrf.mxu1 }
  0xe9   : > { %v612_v61 = vpop.f32.mrf.mxu0  ;;  %v2070_v62 = vpop.f32.mrf.mxu1 }
  0xeb   : > { %v2093_v63 = vpop.f32.mrf.mxu0  ;;  %v462_v0 = vpop.f32.mrf.mxu1 }
  0xec   : > { %v463_v54 = vadd.f32 %v462_v0, %v2572_v45 }
  0xed   : > { %v2582_v1 = vpop.f32.mrf.mxu0  ;;  %v2073_v2 = vpop.f32.mrf.mxu1 }
  0xee   : > { %v478_v57 = vadd.f32 %v2073_v2, %v2574_v46 }
  0xef   : > { %v2584_v3 = vpop.f32.mrf.mxu0  ;;  %v472_v4 = vpop.f32.mrf.mxu1 }
  0xf1   : > { %v2586_v5 = vpop.f32.mrf.mxu0  ;;  %v2588_v6 = vpop.f32.mrf.mxu1 }
  0xf2   : > { %v488_v46 = vadd.f32 %v2588_v6, %v2578_v50 }
  0xf3   : > { %v2590_v7 = vpop.f32.mrf.mxu0  ;;  %v2592_v8 = vpop.f32.mrf.mxu1 }
  0xf5   : > { %v2594_v9 = vpop.f32.mrf.mxu0  ;;  %v2110_v10 = vpop.f32.mrf.mxu1 }
  0xf7   : > { %v2133_v11 = vpop.f32.mrf.mxu0  ;;  %v772_v12 = vpop.f32.mrf.mxu1 }
  0xf8   : > { %v821_v47 = vadd.f32 %v772_v12, %v651_v43  ;;  %v473_v12 = vadd.f32 %v472_v4, %v2576_v48 }
  0xf9   : > { %v942_v13 = vpop.f32.mrf.mxu0  ;;  %v2113_v14 = vpop.f32.mrf.mxu1 }
  0xfb   : > { %v2136_v15 = vpop.f32.mrf.mxu0  ;;  %v782_v16 = vpop.f32.mrf.mxu1 }
  0xfd   : > { %v952_v17 = vpop.f32.mrf.mxu0  ;;  %v2116_v18 = vpop.f32.mrf.mxu1 }
  0xff   : > { %v2139_v19 = vpop.f32.mrf.mxu0  ;;  %v792_v20 = vpop.f32.mrf.mxu1 }
 0x101   : > { %v2596_v21 = vpop.f32.mrf.mxu0  ;;  %v2119_v22 = vpop.f32.mrf.mxu1 }
 0x103   : > { %v2598_v23 = vpop.f32.mrf.mxu0  ;;  %v2600_v24 = vpop.f32.mrf.mxu1 }
 0x104   : > { %2698 = vst [vmem:[#allocation2_spill] sm:$0xff] %v2598_v23  ;;  %v654_v23 = vadd.f32 %v2090_v59, %v458_v40  ;;  %v655_v59 = vadd.f32 %v2582_v1, %v463_v54 }
 0x105   : > { %v2602_v25 = vpop.f32.mrf.mxu0  ;;  %v2604_v26 = vpop.f32.mrf.mxu1 }
 0x106   : > { %2699 = vst [vmem:[#allocation3_spill] sm:$0xff] %v2602_v25  ;;  %2700 = vst [vmem:[#allocation4_spill] sm:$0xff] %v2604_v26  ;;  %v822_v25 = vadd.f32 %v2110_v10, %v652_v39  ;;  %v824_v58 = vadd.f32 %v2113_v14, %v654_v23  ;;  %v825_v2 = vadd.f32 %v792_v20, %v655_v59 }
 0x107   : > { %v2606_v27 = vpop.f32.mrf.mxu0  ;;  %v2608_v28 = vpop.f32.mrf.mxu1 }
 0x108   : > { %2701 = vst [vmem:[#allocation5_spill] sm:$0xff] %v2606_v27  ;;  %2702 = vst [vmem:[#allocation6_spill] sm:$0xff] %v2608_v28  ;;  %v453_v27 = vadd.f32 %v452_v60, %v307_v53  ;;  %v468_v28 = vadd.f32 %v2070_v62, %v2570_v44  ;;  %v992_v51 = vadd.f32 %v2133_v11, %v822_v25 }
 0x109   : > { %v2610_v29 = vpop.f32.mrf.mxu0  ;;  %v2156_v30 = vpop.f32.mrf.mxu1  ;;  %v991_v44 = vadd.f32 %v942_v13, %v821_v47 }
 0x10a   : > { %2703 = vst [vmem:[#allocation7_spill] sm:$0xff] %v2610_v29  ;;  %v653_v55 = vadd.f32 %v612_v61, %v453_v27  ;;  %v656_v33 = vadd.f32 %v2093_v63, %v468_v28  ;;  %v1162_v10 = vadd.f32 %v2156_v30, %v992_v51  ;;  %v994_v61 = vadd.f32 %v2136_v15, %v824_v58 }
 0x10b   : > { %v2179_v31 = vpop.f32.mrf.mxu0  ;;  %v1112_v32 = vpop.f32.mrf.mxu1  ;;  %v658_v63 = vadd.f32 %v2584_v3, %v478_v57  ;;  %v483_v15 = vadd.f32 %v2592_v8, %v2580_v52  ;;  %v660_v27 = vadd.f32 %v2590_v7, %v488_v46  ;;  %v2648_v52 = vld [vmem:[%s2696_s2] ss:$0 sm:$0xff] }
 0x10c   : > { %v823_v62 = vadd.f32 %v782_v16, %v653_v55  ;;  %v826_v45 = vadd.f32 %v2116_v18, %v656_v33  ;;  %v1161_v11 = vadd.f32 %v1112_v32, %v991_v44  ;;  %v1332_v48 = vadd.f32 %v2179_v31, %v1162_v10 }
 0x10d   : > { %v1282_v34 = vpop.f32.mrf.mxu0  ;;  %v2159_v35 = vpop.f32.mrf.mxu1  ;;  %v657_v16 = vadd.f32 %v2586_v5, %v473_v12  ;;  %v828_v23 = vadd.f32 %v2119_v22, %v658_v63  ;;  %v659_v32 = vadd.f32 %v2594_v9, %v483_v15  ;;  %v2706_v54 = vld [vmem:[#allocation3_spill] sm:$0xff] }
 0x10e   : > { %v993_v1 = vadd.f32 %v952_v17, %v823_v62  ;;  %v1164_v4 = vadd.f32 %v2159_v35, %v994_v61  ;;  %v996_v18 = vadd.f32 %v2139_v19, %v826_v45  ;;  %v1331_v50 = vadd.f32 %v1282_v34, %v1161_v11  ;;  %v2704_v34 = vld [vmem:[#allocation2_spill] sm:$0xff]  ;;  %v2705_v35 = vld [vmem:[#allocation4_spill] sm:$0xff] }
 0x10f   : > { %v2182_v37 = vpop.f32.mrf.mxu0  ;;  %v1122_v38 = vpop.f32.mrf.mxu1  ;;  %v995_v17 = vadd.f32 %v2596_v21, %v825_v2  ;;  %v827_v28 = vadd.f32 %v2600_v24, %v657_v16  ;;  %v998_v7 = vadd.f32 %v2704_v34, %v828_v23  ;;  %v830_v21 = vadd.f32 %v2705_v35, %v660_v27  ;;  %v2708_v10 = vld [vmem:[#allocation5_spill] sm:$0xff] }
 0x110   : > { %v1163_v6 = vadd.f32 %v1122_v38, %v993_v1  ;;  %v1334_v19 = vadd.f32 %v2182_v37, %v1164_v4  ;;  %v2707_v37 = vld [vmem:[#allocation6_spill] sm:$0xff] }
 0x111   : > { %v2612_v41 = vpop.f32.mrf.mxu0  ;;  %v2162_v42 = vpop.f32.mrf.mxu1  ;;  %v997_v55 = vadd.f32 %v2706_v54, %v827_v28  ;;  %v829_v51 = vadd.f32 %v2707_v37, %v659_v32  ;;  %v1000_v59 = vadd.f32 %v2708_v10, %v830_v21  ;;  %v2709_v2 = vld [vmem:[#allocation7_spill] sm:$0xff] }
 0x112   : > { %v1166_v30 = vadd.f32 %v2162_v42, %v996_v18  ;;  %v1333_v40 = vadd.f32 %v2612_v41, %v1163_v6 }
 0x113   : > { %v2615_v29 = vpop.f32.mrf.mxu0  ;;  %v1132_v26 = vpop.f32.mrf.mxu1  ;;  %v999_v1 = vadd.f32 %v2709_v2, %v829_v51 }
 0x114   : > { %v1165_v38 = vadd.f32 %v1132_v26, %v995_v17  ;;  %v1336_v58 = vadd.f32 %v2615_v29, %v1166_v30 }
 0x115   : > { %v2618_v49 = vpop.f32.mrf.mxu0  ;;  %v2165_v56 = vpop.f32.mrf.mxu1 }
 0x116   : > { %v1168_v9 = vadd.f32 %v2165_v56, %v998_v7  ;;  %v1335_v12 = vadd.f32 %v2618_v49, %v1165_v38 }
 0x117   : > { %v2621_v53 = vpop.f32.mrf.mxu0  ;;  %v1142_v60 = vpop.f32.mrf.mxu1 }
 0x118   : > { %v1167_v29 = vadd.f32 %v1142_v60, %v997_v55 }
 0x119   : > { %v2625_v0 = vpop.f32.mrf.mxu0  ;;  %v2627_v36 = vpop.f32.mrf.mxu1 }
 0x11a   : > { %v1170_v4 = vadd.f32 %v2627_v36, %v1000_v59 }
 0x11b   : > { %v2632_v13 = vpop.f32.mrf.mxu0  ;;  %v2634_v14 = vpop.f32.mrf.mxu1 }
 0x11c   : > { %v1340_v28 = vadd.f32 %v2632_v13, %v1170_v4 }
 0x11d   : > { %v2639_v3 = vpop.f32.mrf.mxu0  ;;  %v2202_v25 = vpop.f32.mrf.mxu1 }
 0x11e   : > { %v1502_v20 = vadd.f32 %v2202_v25, %v1332_v48  ;;  %v1338_v48 = vadd.f32 %v2621_v53, %v1168_v9  ;;  %v1337_v25 = vadd.f32 %v2625_v0, %v1167_v29 }
 0x11f   : > { %v2225_v5 = vpop.f32.mrf.mxu0  ;;  %v1452_v8 = vpop.f32.mrf.mxu1 }
 0x120   : > { %v1672_v22 = vadd.f32 %v2225_v5, %v1502_v20  ;;  %v1501_v31 = vadd.f32 %v1452_v8, %v1331_v50  ;;  %v1169_v50 = vadd.f32 %v2634_v14, %v999_v1 }
 0x121   : > { %v1622_v24 = vpop.f32.mrf.mxu0  ;;  %v2205_v39 = vpop.f32.mrf.mxu1 }
 0x122   : > { %v1689_v42 = vadd.f32 %v2648_v52, %v1672_v22  ;;  %v1671_v43 = vadd.f32 %v1622_v24, %v1501_v31  ;;  %v1504_v47 = vadd.f32 %v2205_v39, %v1334_v19  ;;  %v1339_v22 = vadd.f32 %v2639_v3, %v1169_v50 }
 0x123   : > { %v2228_v26 = vpop.f32.mrf.mxu0  ;;  %v1462_v33 = vpop.f32.mrf.mxu1 }
 0x124   : > { %v1699_v41 = vmax.f32 %v1689_v42, 0.0  ;;  %v1688_v57 = vadd.f32 %v2648_v52, %v1671_v43  ;;  %v1674_v44 = vadd.f32 %v2228_v26, %v1504_v47  ;;  %v1503_v62 = vadd.f32 %v1462_v33, %v1333_v40 }
 0x125   : > { %v1632_v56 = vpop.f32.mrf.mxu0  ;;  %v2208_v45 = vpop.f32.mrf.mxu1 }
 0x126   : > { %1709 = vst [vmem:[%s2661_s20 + $0x8] sm:$0xff] %v1699_v41  ;;  %v1698_v61 = vmax.f32 %v1688_v57, 0.0  ;;  %v1691_v11 = vadd.f32 %v2648_v52, %v1674_v44  ;;  %v1673_v63 = vadd.f32 %v1632_v56, %v1503_v62  ;;  %v1506_v46 = vadd.f32 %v2208_v45, %v1336_v58 }
 0x127   : > { %v2231_v16 = vpop.f32.mrf.mxu0  ;;  %v1472_v15 = vpop.f32.mrf.mxu1 }
 0x128   : > { %1708 = vst [vmem:[%s2661_s20] sm:$0xff] %v1698_v61  ;;  %v1701_v49 = vmax.f32 %v1691_v11, 0.0  ;;  %v1690_v60 = vadd.f32 %v2648_v52, %v1673_v63  ;;  %v1676_v18 = vadd.f32 %v2231_v16, %v1506_v46  ;;  %v1505_v23 = vadd.f32 %v1472_v15, %v1335_v12 }
 0x129   : > { %v1642_v6 = vpop.f32.mrf.mxu0  ;;  %v2211_v20 = vpop.f32.mrf.mxu1 }
 0x12a   : > { %1711 = vst [vmem:[%s2661_s20 + $0x18] sm:$0xff] %v1701_v49  ;;  %v1700_v53 = vmax.f32 %v1690_v60, 0.0  ;;  %v1693_v36 = vadd.f32 %v2648_v52, %v1676_v18  ;;  %v1675_v27 = vadd.f32 %v1642_v6, %v1505_v23  ;;  %v1508_v17 = vadd.f32 %v2211_v20, %v1338_v48 }
 0x12b   : > { %v2234_v30 = vpop.f32.mrf.mxu0  ;;  %v1482_v5 = vpop.f32.mrf.mxu1 }
 0x12c   : > { %1710 = vst [vmem:[%s2661_s20 + $0x10] sm:$0xff] %v1700_v53  ;;  %v1703_v8 = vmax.f32 %v1693_v36, 0.0  ;;  %v1692_v0 = vadd.f32 %v2648_v52, %v1675_v27  ;;  %v1678_v19 = vadd.f32 %v2234_v30, %v1508_v17  ;;  %v1507_v14 = vadd.f32 %v1482_v5, %v1337_v25 }
 0x12d   : > { %v1652_v31 = vpop.f32.mrf.mxu0  ;;  %v2214_v32 = vpop.f32.mrf.mxu1 }
 0x12e   : > { %1713 = vst [vmem:[%s2661_s20 + $0x28] sm:$0xff] %v1703_v8  ;;  %v1702_v34 = vmax.f32 %v1692_v0, 0.0  ;;  %v1695_v7 = vadd.f32 %v2648_v52, %v1678_v19  ;;  %v1677_v13 = vadd.f32 %v1652_v31, %v1507_v14  ;;  %v1510_v35 = vadd.f32 %v2214_v32, %v1340_v28 }
 0x12f   : > { %v2237_v21 = vpop.f32.mrf.mxu0  ;;  %v1492_v38 = vpop.f32.mrf.mxu1 }
 0x130   : > { %1712 = vst [vmem:[%s2661_s20 + $0x20] sm:$0xff] %v1702_v34  ;;  %v1705_v24 = vmax.f32 %v1695_v7, 0.0  ;;  %v1694_v39 = vadd.f32 %v2648_v52, %v1677_v13  ;;  %v1680_v40 = vadd.f32 %v2237_v21, %v1510_v35  ;;  %v1509_v3 = vadd.f32 %v1492_v38, %v1339_v22 }
 0x131   : > { %v1662_v42 = vpop.f32.mrf.mxu0 }
 0x132   : > { %1715 = vst [vmem:[%s2661_s20 + $0x38] sm:$0xff] %v1705_v24  ;;  %v1704_v43 = vmax.f32 %v1694_v39, 0.0  ;;  %v1697_v47 = vadd.f32 %v2648_v52, %v1680_v40  ;;  %v1679_v54 = vadd.f32 %v1662_v42, %v1509_v3 }
 0x134   : > { %1714 = vst [vmem:[%s2661_s20 + $0x30] sm:$0xff] %v1704_v43  ;;  %v1707_v55 = vmax.f32 %v1697_v47, 0.0  ;;  %v1696_v37 = vadd.f32 %v2648_v52, %v1679_v54 }
 0x136   : > { %1717 = vst [vmem:[%s2661_s20 + $0x48] sm:$0xff] %v1707_v55  ;;  %v1706_v51 = vmax.f32 %v1696_v37, 0.0 }
 0x138   : > { %1716 = vst [vmem:[%s2661_s20 + $0x40] sm:$0xff] %v1706_v51 }
 0x139 PF: > { %s13_s12 = sadd.s32 1, %s2262_s12  }
 0x13a   : > { %p10_p4 = scmp.ge.s32.totalorder %s13_s12, 4  }
 0x13c   :  { %12 = sbr.rel (!%p10_p4) target bundleno = 1 (0x1), region = 70 }

// kernel: decoder_burgess_forward.7
= control target key start
LH: loop header
LB: loop body
LE: loop exit
PB: predicated region body
PF: predicated region fallthrough
CT: control target
= control target key end

     0   :  { %s5830_s12 = smov 0   ;;  %s7240_s0 = inlined_call_operand.vmem [shape: f32[2,326,32], index: 0, kind: input, shape index: {}]   ;;  %s7241_s1 = inlined_call_operand.vmem [shape: f32[9,32,4], index: 1, kind: input, shape index: {}]   ;;  %s7242_s2 = inlined_call_operand.vmem [shape: f32[1,4], index: 2, kind: input, shape index: {}]   ;;  %s7243_s3 = inlined_call_operand.vmem [shape: f32[2,288,4], index: 3, kind: output, shape index: {}]  }
   0x1 LB: > { %s4320_s13 = sadd.s32 4294967295, %s5808_s12   ;;  %p4324_p0 = scmp.ge.s32.totalorder %s5808_s12, 1  ;;  %s5808_s12 = sphi %s5830_s12, %s13_s12  }
   0x2   : > { %p137_p1 = scmp.lt.s32.totalorder %s5808_s12, 3 }
   0x4   : > { %p138_p2 = pnand %p4324_p0, %p137_p1 }
   0x5   : > { %p161_p3 = scmp.lt.s32.totalorder (!%p138_p2), %s4320_s13, 1 }
   0x6   : > { %141 = sbr.rel (%p138_p2) target bundleno = 578 (0x242), region = 32 }
   0xb   : > { %v4330_v0 = vld [vmem:[%s7241_s1 + $0x38] sm:$0xff]  ;;  %v4329_v1 = vld [vmem:[%s7241_s1 + $0x30] sm:$0xff]  ;;  %v4328_v2 = vld [vmem:[%s7241_s1 + $0x28] sm:$0xff]  ;;  %s7245_s13 = smov (!%p161_p3, %s4320_s13), 1  ;;  %vm252_vm0 = vcmask 261120   ;;  %vm4228_vm1 = vcmask 31744  }
   0xc   : > { %5640 = vmatprep.subr.mxu1 %v4330_v0  ;;  %5082 = vmatprep.subr.mxu0 %v4330_v0  ;;  %v4327_v3 = vld [vmem:[%s7241_s1 + $0x20] sm:$0xff]  ;;  %s5648_s22 = smul.u32 328, %s7245_s13  ;;  %v210_v4 = vld [vmem:[%s7241_s1 + $0x18] sm:$0xff]  ;;  %v209_v13 = vld [vmem:[%s7241_s1 + $0x10] sm:$0xff] }
   0xd   : > { %5644 = vmatpush3.msra.mxu1 %v4330_v0  ;;  %5083 = vmatpush3.msra.mxu0 %v4330_v0  ;;  %v4406_v9 = vld [vmem:[%s7241_s1 + $0x58] sm:$0xff]  ;;  %v4405_v17 = vld [vmem:[%s7241_s1 + $0x50] sm:$0xff]  ;;  %v208_v18 = vld [vmem:[%s7241_s1 + $0x8] sm:$0xff]  ;;  %s5649_s18 = smul.u32 288, %s7245_s13 }
   0xe   : > { %5641 = vmatprep.subr.mxu1 %v4329_v1  ;;  %5084 = vmatprep.subr.mxu0 %v4329_v1  ;;  %s5856_s25 = scalar_lea.vmem %s7240_s0, %s5648_s22  ;;  %v4404_v23 = vld [vmem:[%s7241_s1 + $0x48] sm:$0xff]  ;;  %v207_v24 = vld [vmem:[%s7241_s1] sm:$0xff]  ;;  %v4446_v30 = vld [vmem:[%s7241_s1 + $0x78] sm:$0xff] }
   0xf   : > { %5645 = vmatpush3.msra.mxu1 %v4329_v1  ;;  %5085 = vmatpush3.msra.mxu0 %v4329_v1  ;;  %v229_v5 = vld [vmem:[%s5856_s25 + $0x91] sm:$0xff]  ;;  %v211_v6 = vld [vmem:[%s5856_s25 + $0x1] sm:$0xff]  ;;  %v230_v7 = vld [vmem:[%s5856_s25 + $0x99] sm:$0xff]  ;;  %s7124_s20 = scalar_lea.vmem %s7243_s3, %s5649_s18 }
  0x10   : > { %5642 = vmatprep.subr.mxu1 %v4328_v2  ;;  %5086 = vmatprep.subr.mxu0 %v4328_v2  ;;  %v212_v8 = vld [vmem:[%s5856_s25 + $0x9] sm:$0xff]  ;;  %v231_v10 = vld [vmem:[%s5856_s25 + $0xa1] sm:$0xff]  ;;  %v213_v11 = vld [vmem:[%s5856_s25 + $0x11] sm:$0xff] }
  0x11   : > { %5646 = vmatpush3.msra.mxu1 %v4328_v2  ;;  %5087 = vmatpush3.msra.mxu0 %v4328_v2  ;;  %v232_v12 = vld [vmem:[%s5856_s25 + $0xa9] sm:$0xff]  ;;  %v214_v14 = vld [vmem:[%s5856_s25 + $0x19] sm:$0xff]  ;;  %v233_v15 = vld [vmem:[%s5856_s25 + $0xb1] sm:$0xff] }
  0x12   : > { %5643 = vmatprep.subr.mxu1 %v4327_v3  ;;  %5088 = vmatprep.subr.mxu0 %v4327_v3  ;;  %v215_v16 = vld [vmem:[%s5856_s25 + $0x21] sm:$0xff]  ;;  %v234_v19 = vld [vmem:[%s5856_s25 + $0xb9] sm:$0xff]  ;;  %v216_v20 = vld [vmem:[%s5856_s25 + $0x29] sm:$0xff] }
  0x13   : > { %5647 = vmatpush3.msra.mxu1 %v4327_v3  ;;  %5117 = vmatprep.mubr.msk.f32.mxu1 %vm252_vm0, %v229_v5  ;;  %v235_v21 = vld [vmem:[%s5856_s25 + $0xc1] sm:$0xff]  ;;  %v217_v22 = vld [vmem:[%s5856_s25 + $0x31] sm:$0xff]  ;;  %v236_v25 = vld [vmem:[%s5856_s25 + $0xc9] sm:$0xff] }
  0x14   : > { %5089 = vmatpush3.msra.mxu0 %v4327_v3  ;;  %5090 = vmatprep.mubr.msk.f32.mxu0 %vm252_vm0, %v211_v6  ;;  %v218_v26 = vld [vmem:[%s5856_s25 + $0x39] sm:$0xff]  ;;  %v237_v27 = vld [vmem:[%s5856_s25 + $0xd1] sm:$0xff]  ;;  %v219_v28 = vld [vmem:[%s5856_s25 + $0x41] sm:$0xff] }
  0x15   : > { %5118 = vmatmul.mubr.msk.f32.vlgmr.msra.gmra.mxu1 %vm252_vm0, %v230_v7  ;;  %5144 = vmatprep.subr.mxu1 %v210_v4  ;;  %v4403_v29 = vld [vmem:[%s7241_s1 + $0x40] sm:$0xff]  ;;  %v220_v32 = vld [vmem:[%s5856_s25 + $0x49] sm:$0xff]  ;;  %v221_v34 = vld [vmem:[%s5856_s25 + $0x51] sm:$0xff] }
  0x16   : > { %5091 = vmatmul.mubr.msk.f32.vlgmr.msra.gmra.mxu0 %vm252_vm0, %v212_v8  ;;  %5145 = vmatpush3.msra.mxu1 %v210_v4  ;;  %v238_v31 = vld [vmem:[%s5856_s25 + $0xd9] sm:$0xff]  ;;  %v239_v33 = vld [vmem:[%s5856_s25 + $0xe1] sm:$0xff]  ;;  %v240_v36 = vld [vmem:[%s5856_s25 + $0xe9] sm:$0xff] }
  0x17   : > { %5206 = vmatprep.subr.mxu0 %v4406_v9  ;;  %5120 = vmatprep.mubr.msk.f32.mxu1 %vm252_vm0, %v231_v10  ;;  %v4486_v35 = vld [vmem:[%s7241_s1 + $0x98] sm:$0xff]  ;;  %v223_v39 = vld [vmem:[%s5856_s25 + $0x61] sm:$0xff]  ;;  %v224_v41 = vld [vmem:[%s5856_s25 + $0x69] sm:$0xff] }
  0x18   : > { %5207 = vmatpush3.msra.mxu0 %v4406_v9  ;;  %5093 = vmatprep.mubr.msk.f32.mxu0 %vm252_vm0, %v213_v11  ;;  %v222_v37 = vld [vmem:[%s5856_s25 + $0x59] sm:$0xff]  ;;  %v241_v38 = vld [vmem:[%s5856_s25 + $0xf1] sm:$0xff]  ;;  %v243_v42 = vld [vmem:[%s5856_s25 + $0x101] sm:$0xff] }
  0x19   : > { %5121 = vmatmul.mubr.msk.f32.gmra.mxu1 %vm252_vm0, %v232_v12  ;;  %5146 = vmatprep.subr.mxu1 %v209_v13  ;;  %v242_v40 = vld [vmem:[%s5856_s25 + $0xf9] sm:$0xff]  ;;  %v225_v43 = vld [vmem:[%s5856_s25 + $0x71] sm:$0xff]  ;;  %v244_v44 = vld [vmem:[%s5856_s25 + $0x109] sm:$0xff] }
  0x1a   : > { %5094 = vmatmul.mubr.msk.f32.gmra.mxu0 %vm252_vm0, %v214_v14  ;;  %5123 = vmatprep.mubr.msk.f32.mxu1 %vm252_vm0, %v233_v15  ;;  %v226_v45 = vld [vmem:[%s5856_s25 + $0x79] sm:$0xff]  ;;  %v245_v46 = vld [vmem:[%s5856_s25 + $0x111] sm:$0xff]  ;;  %v227_v47 = vld [vmem:[%s5856_s25 + $0x81] sm:$0xff] }
  0x1b   : > { %5096 = vmatprep.mubr.msk.f32.mxu0 %vm252_vm0, %v215_v16  ;;  %5147 = vmatpush3.msra.mxu1 %v209_v13  ;;  %v246_v48 = vld [vmem:[%s5856_s25 + $0x119] sm:$0xff]  ;;  %v228_v49 = vld [vmem:[%s5856_s25 + $0x89] sm:$0xff] }
  0x1c   : > { %5208 = vmatprep.subr.mxu0 %v4405_v17  ;;  %5148 = vmatprep.subr.mxu1 %v208_v18  ;;  %v171_v50 = vld [vmem:[%s5856_s25] sm:$0xff]  ;;  %v172_v52 = vld [vmem:[%s5856_s25 + $0x8] sm:$0xff]  ;;  %v173_v54 = vld [vmem:[%s5856_s25 + $0x10] sm:$0xff] }
  0x1d   : > { %5124 = vmatmul.mubr.msk.f32.gmra.mxu1 %vm252_vm0, %v234_v19  ;;  %5209 = vmatpush3.msra.mxu0 %v4405_v17  ;;  %v959_v51 = vld [vmem:[%s5856_s25 + $0x2] sm:$0xff]  ;;  %v960_v53 = vld [vmem:[%s5856_s25 + $0xa] sm:$0xff]  ;;  %v5969_v55 = vld [vmem:[%s5856_s25 + $0x12] sm:$0xff] }
  0x1e   : > { %5097 = vmatmul.mubr.msk.f32.gmra.mxu0 %vm252_vm0, %v216_v20  ;;  %5126 = vmatprep.mubr.msk.f32.mxu1 %vm252_vm0, %v235_v21  ;;  %v4445_v56 = vld [vmem:[%s7241_s1 + $0x70] sm:$0xff]  ;;  %v174_v57 = vld [vmem:[%s5856_s25 + $0x18] sm:$0xff]  ;;  %v175_v60 = vld [vmem:[%s5856_s25 + $0x20] sm:$0xff] }
  0x1f   : > { %5099 = vmatprep.mubr.msk.f32.mxu0 %vm252_vm0, %v217_v22  ;;  %5149 = vmatpush3.msra.mxu1 %v208_v18  ;;  %v4485_v58 = vld [vmem:[%s7241_s1 + $0x90] sm:$0xff]  ;;  %v5981_v59 = vld [vmem:[%s5856_s25 + $0x1a] sm:$0xff]  ;;  %v5987_v61 = vld [vmem:[%s5856_s25 + $0x22] sm:$0xff] }
  0x20   : > { %5210 = vmatprep.subr.mxu0 %v4404_v23  ;;  %5150 = vmatprep.subr.mxu1 %v207_v24  ;;  %v4444_v62 = vld [vmem:[%s7241_s1 + $0x68] sm:$0xff]  ;;  %v177_v2 = vld [vmem:[%s5856_s25 + $0x30] sm:$0xff]  ;;  %v4443_v4 = vld [vmem:[%s7241_s1 + $0x60] sm:$0xff] }
  0x21   : > { %5127 = vmatmul.mubr.msk.f32.gmra.mxu1 %vm252_vm0, %v236_v25  ;;  %5211 = vmatpush3.msra.mxu0 %v4404_v23  ;;  %v176_v63 = vld [vmem:[%s5856_s25 + $0x28] sm:$0xff]  ;;  %v6007_v3 = vld [vmem:[%s5856_s25 + $0x32] sm:$0xff]  ;;  %v4483_v6 = vld [vmem:[%s7241_s1 + $0x80] sm:$0xff] }
  0x22   : > { %5100 = vmatmul.mubr.msk.f32.gmra.mxu0 %vm252_vm0, %v218_v26  ;;  %5129 = vmatprep.mubr.msk.f32.mxu1 %vm252_vm0, %v237_v27  ;;  %v4484_v0 = vld [vmem:[%s7241_s1 + $0x88] sm:$0xff]  ;;  %v178_v5 = vld [vmem:[%s5856_s25 + $0x38] sm:$0xff]  ;;  %v179_v8 = vld [vmem:[%s5856_s25 + $0x40] sm:$0xff] }
  0x23   : > { %5102 = vmatprep.mubr.msk.f32.mxu0 %vm252_vm0, %v219_v28  ;;  %5151 = vmatpush3.msra.mxu1 %v207_v24  ;;  %v6003_v1 = vld [vmem:[%s5856_s25 + $0x2a] sm:$0xff]  ;;  %v6023_v7 = vld [vmem:[%s5856_s25 + $0x3a] sm:$0xff]  ;;  %v6027_v9 = vld [vmem:[%s5856_s25 + $0x42] sm:$0xff] }
  0x24   : > { %5212 = vmatprep.subr.mxu0 %v4403_v29  ;;  %5268 = vmatprep.subr.mxu1 %v4446_v30  ;;  %v6033_v10 = vld [vmem:[%s7241_s1 + $0xb8] sm:$0xff]  ;;  %v180_v11 = vld [vmem:[%s5856_s25 + $0x48] sm:$0xff]  ;;  %v181_v14 = vld [vmem:[%s5856_s25 + $0x50] sm:$0xff] }
  0x25   : > { %5130 = vmatmul.mubr.msk.f32.gmra.mxu1 %vm252_vm0, %v238_v31  ;;  %5213 = vmatpush3.msra.mxu0 %v4403_v29  ;;  %v6042_v12 = vld [vmem:[%s7241_s1 + $0xd8] sm:$0xff]  ;;  %v6047_v13 = vld [vmem:[%s5856_s25 + $0x4a] sm:$0xff]  ;;  %v183_v18 = vld [vmem:[%s5856_s25 + $0x60] sm:$0xff] }
  0x26   : > { %5103 = vmatmul.mubr.msk.f32.gmra.mxu0 %vm252_vm0, %v220_v32  ;;  %5132 = vmatprep.mubr.msk.f32.mxu1 %vm252_vm0, %v239_v33  ;;  %v6051_v15 = vld [vmem:[%s5856_s25 + $0x52] sm:$0xff]  ;;  %v6063_v17 = vld [vmem:[%s5856_s25 + $0x5a] sm:$0xff]  ;;  %v6067_v19 = vld [vmem:[%s5856_s25 + $0x62] sm:$0xff] }
  0x27   : > { %5105 = vmatprep.mubr.msk.f32.mxu0 %vm252_vm0, %v221_v34  ;;  %5330 = vmatprep.subr.mxu0 %v4486_v35  ;;  %v182_v16 = vld [vmem:[%s5856_s25 + $0x58] sm:$0xff]  ;;  %v184_v20 = vld [vmem:[%s5856_s25 + $0x68] sm:$0xff]  ;;  %v185_v22 = vld [vmem:[%s5856_s25 + $0x70] sm:$0xff] }
  0x28   : > { %v6077_v21 = vld [vmem:[%s5856_s25 + $0x6a] sm:$0xff]  ;;  %v6081_v23 = vld [vmem:[%s5856_s25 + $0x72] sm:$0xff]  ;;  %v6091_v25 = vld [vmem:[%s5856_s25 + $0x7a] sm:$0xff] }
  0x29   : > { %5133 = vmatmul.mubr.msk.f32.gmra.mxu1 %vm252_vm0, %v240_v36  ;;  %v186_v24 = vld [vmem:[%s5856_s25 + $0x78] sm:$0xff]  ;;  %v187_v26 = vld [vmem:[%s5856_s25 + $0x80] sm:$0xff]  ;;  %v188_v28 = vld [vmem:[%s5856_s25 + $0x88] sm:$0xff] }
  0x2a   : > { %5106 = vmatmul.mubr.msk.f32.gmra.mxu0 %vm252_vm0, %v222_v37  ;;  %5135 = vmatprep.mubr.msk.f32.mxu1 %vm252_vm0, %v241_v38  ;;  %v6095_v27 = vld [vmem:[%s5856_s25 + $0x82] sm:$0xff]  ;;  %v6105_v29 = vld [vmem:[%s5856_s25 + $0x8a] sm:$0xff]  ;;  %v6109_v31 = vld [vmem:[%s5856_s25 + $0x92] sm:$0xff] }
  0x2b   : > { %5108 = vmatprep.mubr.msk.f32.mxu0 %vm252_vm0, %v223_v39  ;;  %v190_v32 = vld [vmem:[%s5856_s25 + $0x98] sm:$0xff]  ;;  %v191_v34 = vld [vmem:[%s5856_s25 + $0xa0] sm:$0xff]  ;;  %v192_v36 = vld [vmem:[%s5856_s25 + $0xa8] sm:$0xff] }
  0x2c   : > { %v6119_v33 = vld [vmem:[%s5856_s25 + $0x9a] sm:$0xff]  ;;  %v6133_v37 = vld [vmem:[%s5856_s25 + $0xaa] sm:$0xff]  ;;  %v6137_v39 = vld [vmem:[%s5856_s25 + $0xb2] sm:$0xff] }
  0x2d   : > { %5136 = vmatmul.mubr.msk.f32.gmra.mxu1 %vm252_vm0, %v242_v40  ;;  %v193_v38 = vld [vmem:[%s5856_s25 + $0xb0] sm:$0xff]  ;;  %v194_v40 = vld [vmem:[%s5856_s25 + $0xb8] sm:$0xff] }
  0x2e   : > { %5109 = vmatmul.mubr.msk.f32.gmra.mxu0 %vm252_vm0, %v224_v41  ;;  %5138 = vmatprep.mubr.msk.f32.mxu1 %vm252_vm0, %v243_v42  ;;  %v6147_v41 = vld [vmem:[%s5856_s25 + $0xba] sm:$0xff] }
  0x2f   : > { %5111 = vmatprep.mubr.msk.f32.mxu0 %vm252_vm0, %v225_v43  ;;  %v195_v42 = vld [vmem:[%s5856_s25 + $0xc0] sm:$0xff] }
  0x30   : > { %v6151_v43 = vld [vmem:[%s5856_s25 + $0xc2] sm:$0xff] }
  0x31   : > { %5139 = vmatmul.mubr.msk.f32.gmra.mxu1 %vm252_vm0, %v244_v44  ;;  %v196_v44 = vld [vmem:[%s5856_s25 + $0xc8] sm:$0xff] }
  0x32   : > { %5112 = vmatmul.mubr.msk.f32.gmra.mxu0 %vm252_vm0, %v226_v45  ;;  %5141 = vmatprep.mubr.msk.f32.mxu1 %vm252_vm0, %v245_v46  ;;  %v6161_v45 = vld [vmem:[%s5856_s25 + $0xca] sm:$0xff] }
  0x33   : > { %5114 = vmatprep.mubr.msk.f32.mxu0 %vm252_vm0, %v227_v47  ;;  %v197_v46 = vld [vmem:[%s5856_s25 + $0xd0] sm:$0xff] }
  0x34   : > { %v6165_v47 = vld [vmem:[%s5856_s25 + $0xd2] sm:$0xff] }
  0x35   : > { %5142 = vmatmul.mubr.msk.f32.gmra.mxu1 %vm252_vm0, %v246_v48  ;;  %v198_v48 = vld [vmem:[%s5856_s25 + $0xd8] sm:$0xff] }
  0x36   : > { %5115 = vmatmul.mubr.msk.f32.gmra.mxu0 %vm252_vm0, %v228_v49  ;;  %5152 = vmatprep.mubr.msk.f32.mxu1 %vm252_vm0, %v171_v50  ;;  %v6175_v49 = vld [vmem:[%s5856_s25 + $0xda] sm:$0xff] }
  0x37   : > { %5214 = vmatprep.mubr.msk.f32.mxu0 %vm252_vm0, %v959_v51  ;;  %v199_v50 = vld [vmem:[%s5856_s25 + $0xe0] sm:$0xff] }
  0x38   : > { %v6179_v51 = vld [vmem:[%s5856_s25 + $0xe2] sm:$0xff] }
  0x39   : > { %5153 = vmatmul.mubr.msk.f32.vlgmr.msra.gmra.mxu1 %vm252_vm0, %v172_v52  ;;  %v200_v52 = vld [vmem:[%s5856_s25 + $0xe8] sm:$0xff] }
  0x3a   : > { %5215 = vmatmul.mubr.msk.f32.vlgmr.msra.gmra.mxu0 %vm252_vm0, %v960_v53  ;;  %5269 = vmatpush3.msra.mxu1 %v4446_v30  ;;  %v189_v30 = vld [vmem:[%s5856_s25 + $0x90] sm:$0xff] }
  0x3b   : > { %5155 = vmatprep.mubr.msk.f32.mxu1 %vm252_vm0, %v173_v54  ;;  %5331 = vmatpush3.msra.mxu0 %v4486_v35  ;;  %v6123_v35 = vld [vmem:[%s5856_s25 + $0xa2] sm:$0xff]  ;;  %v6189_v53 = vld [vmem:[%s5856_s25 + $0xea] sm:$0xff] }
  0x3c   : > { %5217 = vmatprep.mubr.msk.f32.mxu0 %vm252_vm0, %v5969_v55  ;;  %5270 = vmatprep.subr.mxu1 %v4445_v56  ;;  %v201_v54 = vld [vmem:[%s5856_s25 + $0xf0] sm:$0xff] }
  0x3d   : > { %5156 = vmatmul.mubr.msk.f32.gmra.mxu1 %vm252_vm0, %v174_v57  ;;  %5332 = vmatprep.subr.mxu0 %v4485_v58  ;;  %v202_v57 = vld [vmem:[%s5856_s25 + $0xf8] sm:$0xff] }
  0x3e   : > { %5218 = vmatmul.mubr.msk.f32.gmra.mxu0 %vm252_vm0, %v5981_v59  ;;  %5158 = vmatprep.mubr.msk.f32.mxu1 %vm252_vm0, %v175_v60  ;;  %v203_v60 = vld [vmem:[%s5856_s25 + $0x100] sm:$0xff] }
  0x3f   : > { %5220 = vmatprep.mubr.msk.f32.mxu0 %vm252_vm0, %v5987_v61  ;;  %5271 = vmatpush3.msra.mxu1 %v4445_v56  ;;  %v6193_v56 = vld [vmem:[%s5856_s25 + $0xf2] sm:$0xff] }
  0x40   : > { %5333 = vmatpush3.msra.mxu0 %v4485_v58  ;;  %5272 = vmatprep.subr.mxu1 %v4444_v62  ;;  %v6203_v58 = vld [vmem:[%s5856_s25 + $0xfa] sm:$0xff] }
  0x41   : > { %5159 = vmatmul.mubr.msk.f32.gmra.mxu1 %vm252_vm0, %v176_v63  ;;  %5334 = vmatprep.subr.mxu0 %v4484_v0  ;;  %v204_v63 = vld [vmem:[%s5856_s25 + $0x108] sm:$0xff] }
  0x42   : > { %5221 = vmatmul.mubr.msk.f32.gmra.mxu0 %vm252_vm0, %v6003_v1  ;;  %5161 = vmatprep.mubr.msk.f32.mxu1 %vm252_vm0, %v177_v2  ;;  %v205_v2 = vld [vmem:[%s5856_s25 + $0x110] sm:$0xff] }
  0x43   : > { %5223 = vmatprep.mubr.msk.f32.mxu0 %vm252_vm0, %v6007_v3  ;;  %5273 = vmatpush3.msra.mxu1 %v4444_v62  ;;  %v6207_v62 = vld [vmem:[%s5856_s25 + $0x102] sm:$0xff] }
  0x44   : > { %5335 = vmatpush3.msra.mxu0 %v4484_v0  ;;  %5274 = vmatprep.subr.mxu1 %v4443_v4  ;;  %v6217_v0 = vld [vmem:[%s5856_s25 + $0x10a] sm:$0xff] }
  0x45   : > { %5162 = vmatmul.mubr.msk.f32.gmra.mxu1 %vm252_vm0, %v178_v5  ;;  %5336 = vmatprep.subr.mxu0 %v4483_v6  ;;  %v206_v5 = vld [vmem:[%s5856_s25 + $0x118] sm:$0xff] }
  0x46   : > { %5224 = vmatmul.mubr.msk.f32.gmra.mxu0 %vm252_vm0, %v6023_v7  ;;  %5164 = vmatprep.mubr.msk.f32.mxu1 %vm252_vm0, %v179_v8  ;;  %v1819_v8 = vld [vmem:[%s5856_s25 + $0x13] sm:$0xff] }
  0x47   : > { %5226 = vmatprep.mubr.msk.f32.mxu0 %vm252_vm0, %v6027_v9  ;;  %5275 = vmatpush3.msra.mxu1 %v4443_v4  ;;  %v6221_v4 = vld [vmem:[%s5856_s25 + $0x112] sm:$0xff] }
  0x48   : > { %5337 = vmatpush3.msra.mxu0 %v4483_v6  ;;  %5392 = vmatprep.subr.mxu1 %v6033_v10  ;;  %v6231_v6 = vld [vmem:[%s5856_s25 + $0x11a] sm:$0xff] }
  0x49   : > { %5165 = vmatmul.mubr.msk.f32.gmra.mxu1 %vm252_vm0, %v180_v11  ;;  %5454 = vmatprep.subr.mxu0 %v6042_v12  ;;  %v1820_v11 = vld [vmem:[%s5856_s25 + $0x1b] sm:$0xff] }
  0x4a   : > { %5227 = vmatmul.mubr.msk.f32.gmra.mxu0 %vm252_vm0, %v6047_v13  ;;  %5167 = vmatprep.mubr.msk.f32.mxu1 %vm252_vm0, %v181_v14  ;;  %v1821_v14 = vld [vmem:[%s5856_s25 + $0x23] sm:$0xff] }
  0x4b   : > { %5229 = vmatprep.mubr.msk.f32.mxu0 %vm252_vm0, %v6051_v15 }
  0x4d   : > { %5168 = vmatmul.mubr.msk.f32.gmra.mxu1 %vm252_vm0, %v182_v16  ;;  %v4525_v16 = vld [vmem:[%s7241_s1 + $0xb0] sm:$0xff] }
  0x4e   : > { %5230 = vmatmul.mubr.msk.f32.gmra.mxu0 %vm252_vm0, %v6063_v17  ;;  %5170 = vmatprep.mubr.msk.f32.mxu1 %vm252_vm0, %v183_v18  ;;  %v1823_v18 = vld [vmem:[%s5856_s25 + $0x33] sm:$0xff] }
  0x4f   : > { %5232 = vmatprep.mubr.msk.f32.mxu0 %vm252_vm0, %v6067_v19 }
  0x51   : > { %5171 = vmatmul.mubr.msk.f32.gmra.mxu1 %vm252_vm0, %v184_v20  ;;  %v4563_v20 = vld [vmem:[%s7241_s1 + $0xc0] sm:$0xff] }
  0x52   : > { %5233 = vmatmul.mubr.msk.f32.gmra.mxu0 %vm252_vm0, %v6077_v21  ;;  %5173 = vmatprep.mubr.msk.f32.mxu1 %vm252_vm0, %v185_v22  ;;  %v1826_v22 = vld [vmem:[%s5856_s25 + $0x4b] sm:$0xff] }
  0x53   : > { %5235 = vmatprep.mubr.msk.f32.mxu0 %vm252_vm0, %v6081_v23 }
  0x55   : > { %5174 = vmatmul.mubr.msk.f32.gmra.mxu1 %vm252_vm0, %v186_v24  ;;  %v6299_v24 = vld [vmem:[%s7241_s1 + $0x118] sm:$0xff] }
  0x56   : > { %5236 = vmatmul.mubr.msk.f32.gmra.mxu0 %vm252_vm0, %v6091_v25  ;;  %5176 = vmatprep.mubr.msk.f32.mxu1 %vm252_vm0, %v187_v26  ;;  %v1829_v26 = vld [vmem:[%s5856_s25 + $0x63] sm:$0xff] }
  0x57   : > { %5238 = vmatprep.mubr.msk.f32.mxu0 %vm252_vm0, %v6095_v27 }
  0x59   : > { %5177 = vmatmul.mubr.msk.f32.gmra.mxu1 %vm252_vm0, %v188_v28  ;;  %v1831_v28 = vld [vmem:[%s5856_s25 + $0x73] sm:$0xff] }
  0x5a   : > { %5239 = vmatmul.mubr.msk.f32.gmra.mxu0 %vm252_vm0, %v6105_v29  ;;  %5179 = vmatprep.mubr.msk.f32.mxu1 %vm252_vm0, %v189_v30  ;;  %v1833_v30 = vld [vmem:[%s5856_s25 + $0x83] sm:$0xff] }
  0x5b   : > { %5241 = vmatprep.mubr.msk.f32.mxu0 %vm252_vm0, %v6109_v31 }
  0x5d   : > { %5180 = vmatmul.mubr.msk.f32.gmra.mxu1 %vm252_vm0, %v190_v32  ;;  %v1841_v32 = vld [vmem:[%s5856_s25 + $0xc3] sm:$0xff] }
  0x5e   : > { %5242 = vmatmul.mubr.msk.f32.gmra.mxu0 %vm252_vm0, %v6119_v33  ;;  %5182 = vmatprep.mubr.msk.f32.mxu1 %vm252_vm0, %v191_v34  ;;  %v1843_v34 = vld [vmem:[%s5856_s25 + $0xd3] sm:$0xff] }
  0x5f   : > { %5244 = vmatprep.mubr.msk.f32.mxu0 %vm252_vm0, %v6123_v35 }
  0x61   : > { %5183 = vmatmul.mubr.msk.f32.gmra.mxu1 %vm252_vm0, %v192_v36  ;;  %v1845_v36 = vld [vmem:[%s5856_s25 + $0xe3] sm:$0xff] }
  0x62   : > { %5245 = vmatmul.mubr.msk.f32.gmra.mxu0 %vm252_vm0, %v6133_v37  ;;  %5185 = vmatprep.mubr.msk.f32.mxu1 %vm252_vm0, %v193_v38  ;;  %v1847_v38 = vld [vmem:[%s5856_s25 + $0xf3] sm:$0xff] }
  0x63   : > { %5247 = vmatprep.mubr.msk.f32.mxu0 %vm252_vm0, %v6137_v39 }
  0x65   : > { %5186 = vmatmul.mubr.msk.f32.gmra.mxu1 %vm252_vm0, %v194_v40  ;;  %v1849_v40 = vld [vmem:[%s5856_s25 + $0x103] sm:$0xff] }
  0x66   : > { %5248 = vmatmul.mubr.msk.f32.gmra.mxu0 %vm252_vm0, %v6147_v41  ;;  %5188 = vmatprep.mubr.msk.f32.mxu1 %vm252_vm0, %v195_v42  ;;  %v1851_v42 = vld [vmem:[%s5856_s25 + $0x113] sm:$0xff] }
  0x67   : > { %5250 = vmatprep.mubr.msk.f32.mxu0 %vm252_vm0, %v6151_v43 }
  0x69   : > { %5189 = vmatmul.mubr.msk.f32.gmra.mxu1 %vm252_vm0, %v196_v44  ;;  %v1423_v44 = vld [vmem:[%s5856_s25 + $0x122] sm:$0xff] }
  0x6a   : > { %5251 = vmatmul.mubr.msk.f32.gmra.mxu0 %vm252_vm0, %v6161_v45  ;;  %5191 = vmatprep.mubr.msk.f32.mxu1 %vm252_vm0, %v197_v46  ;;  %v1424_v46 = vld [vmem:[%s5856_s25 + $0x12a] sm:$0xff] }
  0x6b   : > { %5253 = vmatprep.mubr.msk.f32.mxu0 %vm252_vm0, %v6165_v47 }
  0x6d   : > { %5192 = vmatmul.mubr.msk.f32.gmra.mxu1 %vm252_vm0, %v198_v48  ;;  %v2249_v48 = vld [vmem:[%s5856_s25 + $0x14] sm:$0xff] }
  0x6e   : > { %5254 = vmatmul.mubr.msk.f32.gmra.mxu0 %vm252_vm0, %v6175_v49  ;;  %5194 = vmatprep.mubr.msk.f32.mxu1 %vm252_vm0, %v199_v50  ;;  %v2250_v50 = vld [vmem:[%s5856_s25 + $0x1c] sm:$0xff] }
  0x6f   : > { %5256 = vmatprep.mubr.msk.f32.mxu0 %vm252_vm0, %v6179_v51 }
  0x71   : > { %5195 = vmatmul.mubr.msk.f32.gmra.mxu1 %vm252_vm0, %v200_v52  ;;  %v2681_v52 = vld [vmem:[%s5856_s25 + $0x34] sm:$0xff] }
  0x72   : > { %5257 = vmatmul.mubr.msk.f32.gmra.mxu0 %vm252_vm0, %v6189_v53  ;;  %5197 = vmatprep.mubr.msk.f32.mxu1 %vm252_vm0, %v201_v54  ;;  %v4645_v54 = vld [vmem:[%s7241_s1 + $0x110] sm:$0xff] }
  0x73   : > { %5259 = vmatprep.mubr.msk.f32.mxu0 %vm252_vm0, %v6193_v56 }
  0x75   : > { %5198 = vmatmul.mubr.msk.f32.gmra.mxu1 %vm252_vm0, %v202_v57  ;;  %v2683_v57 = vld [vmem:[%s5856_s25 + $0x44] sm:$0xff] }
  0x76   : > { %5260 = vmatmul.mubr.msk.f32.gmra.mxu0 %vm252_vm0, %v6203_v58  ;;  %5200 = vmatprep.mubr.msk.f32.mxu1 %vm252_vm0, %v203_v60  ;;  %v4644_v60 = vld [vmem:[%s7241_s1 + $0x108] sm:$0xff] }
  0x77   : > { %5262 = vmatprep.mubr.msk.f32.mxu0 %vm252_vm0, %v6207_v62 }
  0x79   : > { %5201 = vmatmul.mubr.msk.f32.gmra.mxu1 %vm252_vm0, %v204_v63  ;;  %v2685_v63 = vld [vmem:[%s5856_s25 + $0x54] sm:$0xff] }
  0x7a   : > { %5263 = vmatmul.mubr.msk.f32.gmra.mxu0 %vm252_vm0, %v6217_v0  ;;  %5203 = vmatprep.mubr.msk.f32.mxu1 %vm252_vm0, %v205_v2  ;;  %v4643_v2 = vld [vmem:[%s7241_s1 + $0x100] sm:$0xff] }
  0x7b   : > { %5265 = vmatprep.mubr.msk.f32.mxu0 %vm252_vm0, %v6221_v4 }
  0x7d   : > { %5204 = vmatmul.mubr.msk.f32.gmra.mxu1 %vm252_vm0, %v206_v5  ;;  %v2687_v5 = vld [vmem:[%s5856_s25 + $0x64] sm:$0xff] }
  0x7e   : > { %5266 = vmatmul.mubr.msk.f32.gmra.mxu0 %vm252_vm0, %v6231_v6  ;;  %5276 = vmatprep.mubr.msk.f32.mxu1 %vm252_vm0, %v5969_v55  ;;  %v4565_v55 = vld [vmem:[%s7241_s1 + $0xd0] sm:$0xff] }
  0x7f   : > { %5338 = vmatprep.mubr.msk.f32.mxu0 %vm252_vm0, %v1819_v8 }
  0x81   : > { %5277 = vmatmul.mubr.msk.f32.vlgmr.msra.gmra.mxu1 %vm252_vm0, %v5981_v59  ;;  %v1822_v59 = vld [vmem:[%s5856_s25 + $0x2b] sm:$0xff] }
  0x82   : > { %5339 = vmatmul.mubr.msk.f32.vlgmr.msra.gmra.mxu0 %vm252_vm0, %v1820_v11  ;;  %5393 = vmatpush3.msra.mxu1 %v6033_v10  ;;  %v4524_v10 = vld [vmem:[%s7241_s1 + $0xa8] sm:$0xff] }
  0x83   : > { %5279 = vmatprep.mubr.msk.f32.mxu1 %vm252_vm0, %v5987_v61  ;;  %5455 = vmatpush3.msra.mxu0 %v6042_v12  ;;  %v4564_v61 = vld [vmem:[%s7241_s1 + $0xc8] sm:$0xff]  ;;  %v1824_v12 = vld [vmem:[%s5856_s25 + $0x3b] sm:$0xff] }
  0x84   : > { %5341 = vmatprep.mubr.msk.f32.mxu0 %vm252_vm0, %v1821_v14  ;;  %5394 = vmatprep.subr.mxu1 %v4525_v16  ;;  %v2688_v14 = vld [vmem:[%s5856_s25 + $0x6c] sm:$0xff] }
  0x85   : > { %5280 = vmatmul.mubr.msk.f32.gmra.mxu1 %vm252_vm0, %v6003_v1  ;;  %5456 = vmatprep.subr.mxu0 %v4565_v55  ;;  %v1825_v1 = vld [vmem:[%s5856_s25 + $0x43] sm:$0xff] }
  0x86   : > { %5342 = vmatmul.mubr.msk.f32.gmra.mxu0 %vm252_vm0, %v1822_v59  ;;  %5282 = vmatprep.mubr.msk.f32.mxu1 %vm252_vm0, %v6007_v3  ;;  %v4523_v3 = vld [vmem:[%s7241_s1 + $0xa0] sm:$0xff] }
  0x87   : > { %5344 = vmatprep.mubr.msk.f32.mxu0 %vm252_vm0, %v1823_v18  ;;  %5395 = vmatpush3.msra.mxu1 %v4525_v16 }
  0x88   : > { %5457 = vmatpush3.msra.mxu0 %v4565_v55  ;;  %5396 = vmatprep.subr.mxu1 %v4524_v10  ;;  %v2689_v55 = vld [vmem:[%s5856_s25 + $0x74] sm:$0xff] }
  0x89   : > { %5283 = vmatmul.mubr.msk.f32.gmra.mxu1 %vm252_vm0, %v6023_v7  ;;  %5458 = vmatprep.subr.mxu0 %v4564_v61  ;;  %v1827_v7 = vld [vmem:[%s5856_s25 + $0x53] sm:$0xff] }
  0x8a   : > { %5345 = vmatmul.mubr.msk.f32.gmra.mxu0 %vm252_vm0, %v1824_v12  ;;  %5285 = vmatprep.mubr.msk.f32.mxu1 %vm252_vm0, %v6027_v9  ;;  %v6291_v9 = vld [vmem:[%s7241_s1 + $0xf8] sm:$0xff] }
  0x8b   : > { %5347 = vmatprep.mubr.msk.f32.mxu0 %vm252_vm0, %v1825_v1  ;;  %5397 = vmatpush3.msra.mxu1 %v4524_v10  ;;  %v2691_v1 = vld [vmem:[%s5856_s25 + $0x84] sm:$0xff] }
  0x8c   : > { %5459 = vmatpush3.msra.mxu0 %v4564_v61  ;;  %5398 = vmatprep.subr.mxu1 %v4523_v3  ;;  %v2690_v61 = vld [vmem:[%s5856_s25 + $0x7c] sm:$0xff] }
  0x8d   : > { %5286 = vmatmul.mubr.msk.f32.gmra.mxu1 %vm252_vm0, %v6047_v13  ;;  %5460 = vmatprep.subr.mxu0 %v4563_v20  ;;  %v1828_v13 = vld [vmem:[%s5856_s25 + $0x5b] sm:$0xff] }
  0x8e   : > { %5348 = vmatmul.mubr.msk.f32.gmra.mxu0 %vm252_vm0, %v1826_v22  ;;  %5288 = vmatprep.mubr.msk.f32.mxu1 %vm252_vm0, %v6051_v15  ;;  %v1830_v15 = vld [vmem:[%s5856_s25 + $0x6b] sm:$0xff] }
  0x8f   : > { %5350 = vmatprep.mubr.msk.f32.mxu0 %vm252_vm0, %v1827_v7  ;;  %5399 = vmatpush3.msra.mxu1 %v4523_v3  ;;  %v2692_v7 = vld [vmem:[%s5856_s25 + $0x8c] sm:$0xff] }
  0x90   : > { %5461 = vmatpush3.msra.mxu0 %v4563_v20  ;;  %5516 = vmatprep.subr.mxu1 %v6291_v9 }
  0x91   : > { %5289 = vmatmul.mubr.msk.f32.gmra.mxu1 %vm252_vm0, %v6063_v17  ;;  %5578 = vmatprep.subr.mxu0 %v6299_v24  ;;  %v1832_v17 = vld [vmem:[%s5856_s25 + $0x7b] sm:$0xff] }
  0x92   : > { %5351 = vmatmul.mubr.msk.f32.gmra.mxu0 %vm252_vm0, %v1828_v13  ;;  %5291 = vmatprep.mubr.msk.f32.mxu1 %vm252_vm0, %v6067_v19  ;;  %v1834_v19 = vld [vmem:[%s5856_s25 + $0x8b] sm:$0xff] }
  0x93   : > { %5353 = vmatprep.mubr.msk.f32.mxu0 %vm252_vm0, %v1829_v26 }
  0x95   : > { %5292 = vmatmul.mubr.msk.f32.gmra.mxu1 %vm252_vm0, %v6077_v21  ;;  %v1835_v21 = vld [vmem:[%s5856_s25 + $0x93] sm:$0xff] }
  0x96   : > { %5354 = vmatmul.mubr.msk.f32.gmra.mxu0 %vm252_vm0, %v1830_v15  ;;  %5294 = vmatprep.mubr.msk.f32.mxu1 %vm252_vm0, %v6081_v23  ;;  %v1836_v23 = vld [vmem:[%s5856_s25 + $0x9b] sm:$0xff] }
  0x97   : > { %5356 = vmatprep.mubr.msk.f32.mxu0 %vm252_vm0, %v1831_v28  ;;  %v2694_v28 = vld [vmem:[%s5856_s25 + $0x9c] sm:$0xff] }
  0x99   : > { %5295 = vmatmul.mubr.msk.f32.gmra.mxu1 %vm252_vm0, %v6091_v25  ;;  %v1837_v25 = vld [vmem:[%s5856_s25 + $0xa3] sm:$0xff] }
  0x9a   : > { %5357 = vmatmul.mubr.msk.f32.gmra.mxu0 %vm252_vm0, %v1832_v17  ;;  %5297 = vmatprep.mubr.msk.f32.mxu1 %vm252_vm0, %v6095_v27  ;;  %v1838_v27 = vld [vmem:[%s5856_s25 + $0xab] sm:$0xff] }
  0x9b   : > { %5359 = vmatprep.mubr.msk.f32.mxu0 %vm252_vm0, %v1833_v30  ;;  %v2695_v30 = vld [vmem:[%s5856_s25 + $0xa4] sm:$0xff] }
  0x9d   : > { %5298 = vmatmul.mubr.msk.f32.gmra.mxu1 %vm252_vm0, %v6105_v29  ;;  %v1839_v29 = vld [vmem:[%s5856_s25 + $0xb3] sm:$0xff] }
  0x9e   : > { %5360 = vmatmul.mubr.msk.f32.gmra.mxu0 %vm252_vm0, %v1834_v19  ;;  %5300 = vmatprep.mubr.msk.f32.mxu1 %vm252_vm0, %v6109_v31  ;;  %v1840_v31 = vld [vmem:[%s5856_s25 + $0xbb] sm:$0xff] }
  0x9f   : > { %5362 = vmatprep.mubr.msk.f32.mxu0 %vm252_vm0, %v1835_v21 }
  0xa1   : > { %5301 = vmatmul.mubr.msk.f32.gmra.mxu1 %vm252_vm0, %v6119_v33  ;;  %v1842_v33 = vld [vmem:[%s5856_s25 + $0xcb] sm:$0xff] }
  0xa2   : > { %5363 = vmatmul.mubr.msk.f32.gmra.mxu0 %vm252_vm0, %v1836_v23  ;;  %5303 = vmatprep.mubr.msk.f32.mxu1 %vm252_vm0, %v6123_v35  ;;  %v1844_v35 = vld [vmem:[%s5856_s25 + $0xdb] sm:$0xff] }
  0xa3   : > { %5365 = vmatprep.mubr.msk.f32.mxu0 %vm252_vm0, %v1837_v25  ;;  %v2696_v25 = vld [vmem:[%s5856_s25 + $0xac] sm:$0xff] }
  0xa5   : > { %5304 = vmatmul.mubr.msk.f32.gmra.mxu1 %vm252_vm0, %v6133_v37  ;;  %v1846_v37 = vld [vmem:[%s5856_s25 + $0xeb] sm:$0xff] }
  0xa6   : > { %5366 = vmatmul.mubr.msk.f32.gmra.mxu0 %vm252_vm0, %v1838_v27  ;;  %5306 = vmatprep.mubr.msk.f32.mxu1 %vm252_vm0, %v6137_v39  ;;  %v1848_v39 = vld [vmem:[%s5856_s25 + $0xfb] sm:$0xff] }
  0xa7   : > { %5368 = vmatprep.mubr.msk.f32.mxu0 %vm252_vm0, %v1839_v29  ;;  %v2697_v29 = vld [vmem:[%s5856_s25 + $0xb4] sm:$0xff] }
  0xa9   : > { %5307 = vmatmul.mubr.msk.f32.gmra.mxu1 %vm252_vm0, %v6147_v41  ;;  %v1850_v41 = vld [vmem:[%s5856_s25 + $0x10b] sm:$0xff] }
  0xaa   : > { %5369 = vmatmul.mubr.msk.f32.gmra.mxu0 %vm252_vm0, %v1840_v31  ;;  %5309 = vmatprep.mubr.msk.f32.mxu1 %vm252_vm0, %v6151_v43  ;;  %v1852_v43 = vld [vmem:[%s5856_s25 + $0x11b] sm:$0xff] }
  0xab   : > { %5371 = vmatprep.mubr.msk.f32.mxu0 %vm252_vm0, %v1841_v32 }
  0xad   : > { %5310 = vmatmul.mubr.msk.f32.gmra.mxu1 %vm252_vm0, %v6161_v45  ;;  %v1853_v45 = vld [vmem:[%s5856_s25 + $0x123] sm:$0xff] }
  0xae   : > { %5372 = vmatmul.mubr.msk.f32.gmra.mxu0 %vm252_vm0, %v1842_v33  ;;  %5312 = vmatprep.mubr.msk.f32.mxu1 %vm252_vm0, %v6165_v47  ;;  %v1854_v47 = vld [vmem:[%s5856_s25 + $0x12b] sm:$0xff] }
  0xaf   : > { %5374 = vmatprep.mubr.msk.f32.mxu0 %vm252_vm0, %v1843_v34  ;;  %v2698_v34 = vld [vmem:[%s5856_s25 + $0xbc] sm:$0xff] }
  0xb1   : > { %5313 = vmatmul.mubr.msk.f32.gmra.mxu1 %vm252_vm0, %v6175_v49  ;;  %v2679_v49 = vld [vmem:[%s5856_s25 + $0x24] sm:$0xff] }
  0xb2   : > { %5375 = vmatmul.mubr.msk.f32.gmra.mxu0 %vm252_vm0, %v1844_v35  ;;  %5315 = vmatprep.mubr.msk.f32.mxu1 %vm252_vm0, %v6179_v51  ;;  %v2680_v51 = vld [vmem:[%s5856_s25 + $0x2c] sm:$0xff] }
  0xb3   : > { %5377 = vmatprep.mubr.msk.f32.mxu0 %vm252_vm0, %v1845_v36  ;;  %v2699_v36 = vld [vmem:[%s5856_s25 + $0xc4] sm:$0xff] }
  0xb5   : > { %5316 = vmatmul.mubr.msk.f32.gmra.mxu1 %vm252_vm0, %v6189_v53  ;;  %v4605_v53 = vld [vmem:[%s7241_s1 + $0xf0] sm:$0xff] }
  0xb6   : > { %5378 = vmatmul.mubr.msk.f32.gmra.mxu0 %vm252_vm0, %v1846_v37  ;;  %5318 = vmatprep.mubr.msk.f32.mxu1 %vm252_vm0, %v6193_v56  ;;  %v2682_v56 = vld [vmem:[%s5856_s25 + $0x3c] sm:$0xff] }
  0xb7   : > { %5380 = vmatprep.mubr.msk.f32.mxu0 %vm252_vm0, %v1847_v38 }
  0xb9   : > { %5319 = vmatmul.mubr.msk.f32.gmra.mxu1 %vm252_vm0, %v6203_v58  ;;  %v4604_v58 = vld [vmem:[%s7241_s1 + $0xe8] sm:$0xff] }
  0xba   : > { %5381 = vmatmul.mubr.msk.f32.gmra.mxu0 %vm252_vm0, %v1848_v39  ;;  %5321 = vmatprep.mubr.msk.f32.mxu1 %vm252_vm0, %v6207_v62  ;;  %v2684_v62 = vld [vmem:[%s5856_s25 + $0x4c] sm:$0xff] }
  0xbb   : > { %5383 = vmatprep.mubr.msk.f32.mxu0 %vm252_vm0, %v1849_v40  ;;  %v2700_v40 = vld [vmem:[%s5856_s25 + $0xcc] sm:$0xff] }
  0xbd   : > { %5322 = vmatmul.mubr.msk.f32.gmra.mxu1 %vm252_vm0, %v6217_v0  ;;  %v4603_v0 = vld [vmem:[%s7241_s1 + $0xe0] sm:$0xff] }
  0xbe   : > { %5384 = vmatmul.mubr.msk.f32.gmra.mxu0 %vm252_vm0, %v1850_v41  ;;  %5324 = vmatprep.mubr.msk.f32.mxu1 %vm252_vm0, %v6221_v4  ;;  %v2686_v4 = vld [vmem:[%s5856_s25 + $0x5c] sm:$0xff] }
  0xbf   : > { %5386 = vmatprep.mubr.msk.f32.mxu0 %vm252_vm0, %v1851_v42  ;;  %v2701_v42 = vld [vmem:[%s5856_s25 + $0xd4] sm:$0xff] }
  0xc1   : > { %5325 = vmatmul.mubr.msk.f32.gmra.mxu1 %vm252_vm0, %v6231_v6 }
  0xc2   : > { %5387 = vmatmul.mubr.msk.f32.gmra.mxu0 %vm252_vm0, %v1852_v43  ;;  %5327 = vmatprep.mubr.msk.f32.mxu1 %vm252_vm0, %v1423_v44 }
  0xc3   : > { %5389 = vmatprep.mubr.msk.f32.mxu0 %vm252_vm0, %v1853_v45 }
  0xc5   : > { %5328 = vmatmul.mubr.msk.f32.gmra.mxu1 %vm252_vm0, %v1424_v46  ;;  %v2702_v46 = vld [vmem:[%s5856_s25 + $0xdc] sm:$0xff] }
  0xc6   : > { %5390 = vmatmul.mubr.msk.f32.gmra.mxu0 %vm252_vm0, %v1854_v47  ;;  %5400 = vmatprep.mubr.msk.f32.mxu1 %vm252_vm0, %v2249_v48  ;;  %v2703_v48 = vld [vmem:[%s5856_s25 + $0xe4] sm:$0xff] }
  0xc7   : > { %5462 = vmatprep.mubr.msk.f32.mxu0 %vm252_vm0, %v2679_v49 }
  0xc9   : > { %5401 = vmatmul.mubr.msk.f32.vlgmr.msra.gmra.mxu1 %vm252_vm0, %v2250_v50 }
  0xca   : > { %5463 = vmatmul.mubr.msk.f32.vlgmr.msra.gmra.mxu0 %vm252_vm0, %v2680_v51  ;;  %5517 = vmatpush3.msra.mxu1 %v6291_v9 }
  0xcb   : > { %5403 = vmatprep.mubr.msk.f32.mxu1 %vm252_vm0, %v2679_v49  ;;  %5579 = vmatpush3.msra.mxu0 %v6299_v24  ;;  %v2693_v24 = vld [vmem:[%s5856_s25 + $0x94] sm:$0xff] }
  0xcc   : > { %5465 = vmatprep.mubr.msk.f32.mxu0 %vm252_vm0, %v2681_v52  ;;  %5518 = vmatprep.subr.mxu1 %v4605_v53 }
  0xcd   : > { %5404 = vmatmul.mubr.msk.f32.gmra.mxu1 %vm252_vm0, %v2680_v51  ;;  %5580 = vmatprep.subr.mxu0 %v4645_v54 }
  0xce   : > { %5466 = vmatmul.mubr.msk.f32.gmra.mxu0 %vm252_vm0, %v2682_v56  ;;  %5406 = vmatprep.mubr.msk.f32.mxu1 %vm252_vm0, %v2681_v52  ;;  %v2704_v52 = vld [vmem:[%s5856_s25 + $0xec] sm:$0xff] }
  0xcf   : > { %5468 = vmatprep.mubr.msk.f32.mxu0 %vm252_vm0, %v2683_v57  ;;  %5519 = vmatpush3.msra.mxu1 %v4605_v53 }
  0xd0   : > { %5581 = vmatpush3.msra.mxu0 %v4645_v54  ;;  %5520 = vmatprep.subr.mxu1 %v4604_v58  ;;  %v2705_v54 = vld [vmem:[%s5856_s25 + $0xf4] sm:$0xff] }
  0xd1   : > { %5407 = vmatmul.mubr.msk.f32.gmra.mxu1 %vm252_vm0, %v2682_v56  ;;  %5582 = vmatprep.subr.mxu0 %v4644_v60 }
  0xd2   : > { %5469 = vmatmul.mubr.msk.f32.gmra.mxu0 %vm252_vm0, %v2684_v62  ;;  %5409 = vmatprep.mubr.msk.f32.mxu1 %vm252_vm0, %v2683_v57 }
  0xd3   : > { %5471 = vmatprep.mubr.msk.f32.mxu0 %vm252_vm0, %v2685_v63  ;;  %5521 = vmatpush3.msra.mxu1 %v4604_v58 }
  0xd4   : > { %5583 = vmatpush3.msra.mxu0 %v4644_v60  ;;  %5522 = vmatprep.subr.mxu1 %v4603_v0 }
  0xd5   : > { %v6457_v6 = vpop.f32.mrf.mxu1  ;;  %5410 = vmatmul.mubr.msk.f32.gmra.mxu1 %vm252_vm0, %v2684_v62  ;;  %5584 = vmatprep.subr.mxu0 %v4643_v2  ;;  %v2706_v62 = vld [vmem:[%s5856_s25 + $0xfc] sm:$0xff] }
  0xd6   : > { %v6460_v8 = vpop.f32.mrf.mxu0  ;;  %5472 = vmatmul.mubr.msk.f32.gmra.mxu0 %vm252_vm0, %v2686_v4  ;;  %5412 = vmatprep.mubr.msk.f32.mxu1 %vm252_vm0, %v2685_v63 }
  0xd7   : > { %v6464_v11 = vpop.f32.mrf.mxu1  ;;  %5474 = vmatprep.mubr.msk.f32.mxu0 %vm252_vm0, %v2687_v5  ;;  %5523 = vmatpush3.msra.mxu1 %v4603_v0 }
  0xd8   : > { %v6468_v16 = vpop.f32.mrf.mxu0  ;;  %5585 = vmatpush3.msra.mxu0 %v4643_v2 }
  0xd9   : > { %v6471_v59 = vpop.f32.mrf.mxu1  ;;  %5413 = vmatmul.mubr.msk.f32.gmra.mxu1 %vm252_vm0, %v2686_v4  ;;  %v2707_v4 = vld [vmem:[%s5856_s25 + $0x104] sm:$0xff] }
  0xda   : > { %v6474_v18 = vpop.f32.mrf.mxu0  ;;  %5475 = vmatmul.mubr.msk.f32.gmra.mxu0 %vm252_vm0, %v2688_v14  ;;  %5415 = vmatprep.mubr.msk.f32.mxu1 %vm252_vm0, %v2687_v5 }
  0xdb   : > { %v6478_v10 = vpop.f32.mrf.mxu1  ;;  %5477 = vmatprep.mubr.msk.f32.mxu0 %vm252_vm0, %v2689_v55 }
  0xdc   : > { %v6482_v12 = vpop.f32.mrf.mxu0 }
  0xdd   : > { %v6485_v3 = vpop.f32.mrf.mxu1  ;;  %5416 = vmatmul.mubr.msk.f32.gmra.mxu1 %vm252_vm0, %v2688_v14 }
  0xde   : > { %v6488_v20 = vpop.f32.mrf.mxu0  ;;  %5478 = vmatmul.mubr.msk.f32.gmra.mxu0 %vm252_vm0, %v2690_v61  ;;  %5418 = vmatprep.mubr.msk.f32.mxu1 %vm252_vm0, %v2689_v55 }
  0xdf   : > { %v6492_v22 = vpop.f32.mrf.mxu1  ;;  %5480 = vmatprep.mubr.msk.f32.mxu0 %vm252_vm0, %v2691_v1 }
  0xe0   : > { %v6496_v9 = vpop.f32.mrf.mxu0 }
  0xe1   : > { %v6499_v13 = vpop.f32.mrf.mxu1  ;;  %5419 = vmatmul.mubr.msk.f32.gmra.mxu1 %vm252_vm0, %v2690_v61 }
  0xe2   : > { %v6502_v26 = vpop.f32.mrf.mxu0  ;;  %5481 = vmatmul.mubr.msk.f32.gmra.mxu0 %vm252_vm0, %v2692_v7  ;;  %5421 = vmatprep.mubr.msk.f32.mxu1 %vm252_vm0, %v2691_v1 }
  0xe3   : > { %v6506_v15 = vpop.f32.mrf.mxu1  ;;  %5483 = vmatprep.mubr.msk.f32.mxu0 %vm252_vm0, %v2693_v24 }
  0xe4   : > { %v6510_v17 = vpop.f32.mrf.mxu0 }
  0xe5   : > { %v6513_v19 = vpop.f32.mrf.mxu1  ;;  %5422 = vmatmul.mubr.msk.f32.gmra.mxu1 %vm252_vm0, %v2692_v7 }
  0xe6   : > { %v6516_v21 = vpop.f32.mrf.mxu0  ;;  %5484 = vmatmul.mubr.msk.f32.gmra.mxu0 %vm252_vm0, %v2694_v28  ;;  %5424 = vmatprep.mubr.msk.f32.mxu1 %vm252_vm0, %v2693_v24 }
  0xe7   : > { %v6520_v23 = vpop.f32.mrf.mxu1  ;;  %5486 = vmatprep.mubr.msk.f32.mxu0 %vm252_vm0, %v2695_v30 }
  0xe8   : > { %v6524_v27 = vpop.f32.mrf.mxu0 }
  0xe9   : > { %v6527_v31 = vpop.f32.mrf.mxu1  ;;  %5425 = vmatmul.mubr.msk.f32.gmra.mxu1 %vm252_vm0, %v2694_v28  ;;  %v2709_v28 = vld [vmem:[%s5856_s25 + $0x114] sm:$0xff] }
  0xea   : > { %v6530_v32 = vpop.f32.mrf.mxu0  ;;  %5487 = vmatmul.mubr.msk.f32.gmra.mxu0 %vm252_vm0, %v2696_v25  ;;  %5427 = vmatprep.mubr.msk.f32.mxu1 %vm252_vm0, %v2695_v30 }
  0xeb   : > { %v6534_v33 = vpop.f32.mrf.mxu1  ;;  %5489 = vmatprep.mubr.msk.f32.mxu0 %vm252_vm0, %v2697_v29 }
  0xec   : > { %v6538_v35 = vpop.f32.mrf.mxu0 }
  0xed   : > { %v6541_v37 = vpop.f32.mrf.mxu1  ;;  %5428 = vmatmul.mubr.msk.f32.gmra.mxu1 %vm252_vm0, %v2696_v25 }
  0xee   : > { %v6544_v38 = vpop.f32.mrf.mxu0  ;;  %5490 = vmatmul.mubr.msk.f32.gmra.mxu0 %vm252_vm0, %v2698_v34  ;;  %5430 = vmatprep.mubr.msk.f32.mxu1 %vm252_vm0, %v2697_v29 }
  0xef   : > { %v6548_v39 = vpop.f32.mrf.mxu1  ;;  %5492 = vmatprep.mubr.msk.f32.mxu0 %vm252_vm0, %v2699_v36 }
  0xf0   : > { %v6552_v41 = vpop.f32.mrf.mxu0 }
  0xf1   : > { %v6555_v43 = vpop.f32.mrf.mxu1  ;;  %5431 = vmatmul.mubr.msk.f32.gmra.mxu1 %vm252_vm0, %v2698_v34 }
  0xf2   : > { %v6558_v44 = vpop.f32.mrf.mxu0  ;;  %5493 = vmatmul.mubr.msk.f32.gmra.mxu0 %vm252_vm0, %v2700_v40  ;;  %5433 = vmatprep.mubr.msk.f32.mxu1 %vm252_vm0, %v2699_v36 }
  0xf3   : > { %v6562_v45 = vpop.f32.mrf.mxu1  ;;  %5495 = vmatprep.mubr.msk.f32.mxu0 %vm252_vm0, %v2701_v42 }
  0xf4   : > { %v6566_v47 = vpop.f32.mrf.mxu0 }
  0xf5   : > { %v6569_v49 = vpop.f32.mrf.mxu1  ;;  %5434 = vmatmul.mubr.msk.f32.gmra.mxu1 %vm252_vm0, %v2700_v40 }
  0xf6   : > { %v6572_v50 = vpop.f32.mrf.mxu0  ;;  %5496 = vmatmul.mubr.msk.f32.gmra.mxu0 %vm252_vm0, %v2702_v46  ;;  %5436 = vmatprep.mubr.msk.f32.mxu1 %vm252_vm0, %v2701_v42 }
  0xf7   : > { %v6576_v51 = vpop.f32.mrf.mxu1  ;;  %5498 = vmatprep.mubr.msk.f32.mxu0 %vm252_vm0, %v2703_v48 }
  0xf8   : > { %v6580_v53 = vpop.f32.mrf.mxu0 }
  0xf9   : > { %v5154_v56 = vpop.f32.mrf.mxu1  ;;  %5437 = vmatmul.mubr.msk.f32.gmra.mxu1 %vm252_vm0, %v2702_v46  ;;  %v2711_v46 = vld [vmem:[%s5856_s25 + $0x124] sm:$0xff] }
  0xfa   : > { %v786_v57 = vadd.f32 %v5154_v56, %v6460_v8  ;;  %v5216_v58 = vpop.f32.mrf.mxu0  ;;  %5499 = vmatmul.mubr.msk.f32.gmra.mxu0 %vm252_vm0, %v2704_v52  ;;  %5439 = vmatprep.mubr.msk.f32.mxu1 %vm252_vm0, %v2703_v48 }
  0xfb   : > { %v780_v60 = vpop.f32.mrf.mxu1  ;;  %5501 = vmatprep.mubr.msk.f32.mxu0 %vm252_vm0, %v2705_v54 }
  0xfc   : > { %v6589_v63 = vadd.f32 %v5216_v58, %v786_v57  ;;  %v781_v0 = vadd.f32 %v780_v60, %v6468_v16  ;;  %v1174_v2 = vpop.f32.mrf.mxu0  ;;  %v2708_v16 = vld [vmem:[%s5856_s25 + $0x10c] sm:$0xff] }
  0xfd   : > { %v5157_v5 = vpop.f32.mrf.mxu1  ;;  %5440 = vmatmul.mubr.msk.f32.gmra.mxu1 %vm252_vm0, %v2704_v52 }
  0xfe   : > { %v6594_v8 = vadd.f32 %v1174_v2, %v781_v0  ;;  %v796_v14 = vadd.f32 %v5157_v5, %v6474_v18  ;;  %v5219_v55 = vpop.f32.mrf.mxu0  ;;  %5502 = vmatmul.mubr.msk.f32.gmra.mxu0 %vm252_vm0, %v2706_v62  ;;  %5442 = vmatprep.mubr.msk.f32.mxu1 %vm252_vm0, %v2705_v54 }
  0xff   : > { %v790_v61 = vpop.f32.mrf.mxu1  ;;  %5504 = vmatprep.mubr.msk.f32.mxu0 %vm252_vm0, %v2707_v4 }
 0x100   : > { %v6601_v1 = vadd.f32 %v5219_v55, %v796_v14  ;;  %v791_v7 = vadd.f32 %v790_v61, %v6482_v12  ;;  %v1184_v24 = vpop.f32.mrf.mxu0  ;;  %v2710_v12 = vld [vmem:[%s5856_s25 + $0x11c] sm:$0xff]  ;;  %v3109_v14 = vld [vmem:[%s5856_s25 + $0x25] sm:$0xff] }
 0x101   : > { %v5160_v30 = vpop.f32.mrf.mxu1  ;;  %5443 = vmatmul.mubr.msk.f32.gmra.mxu1 %vm252_vm0, %v2706_v62  ;;  %v2713_v62 = vld [vmem:[%s5856_s25 + $0x134] sm:$0xff] }
 0x102   : > { %v6606_v18 = vadd.f32 %v1184_v24, %v791_v7  ;;  %v806_v25 = vadd.f32 %v5160_v30, %v6488_v20  ;;  %v5222_v29 = vpop.f32.mrf.mxu0  ;;  %5505 = vmatmul.mubr.msk.f32.gmra.mxu0 %vm252_vm0, %v2708_v16  ;;  %5445 = vmatprep.mubr.msk.f32.mxu1 %vm252_vm0, %v2707_v4  ;;  %v3539_v7 = vld [vmem:[%s5856_s25 + $0x26] sm:$0xff] }
 0x103   : > { %v800_v34 = vpop.f32.mrf.mxu1  ;;  %5507 = vmatprep.mubr.msk.f32.mxu0 %vm252_vm0, %v2709_v28 }
 0x104   : > { %v6613_v36 = vadd.f32 %v5222_v29, %v806_v25  ;;  %v801_v40 = vadd.f32 %v800_v34, %v6496_v9  ;;  %v1194_v42 = vpop.f32.mrf.mxu0  ;;  %v2712_v9 = vld [vmem:[%s5856_s25 + $0x12c] sm:$0xff]  ;;  %v3111_v34 = vld [vmem:[%s5856_s25 + $0x35] sm:$0xff] }
 0x105   : > { %v5163_v48 = vpop.f32.mrf.mxu1  ;;  %5446 = vmatmul.mubr.msk.f32.gmra.mxu1 %vm252_vm0, %v2708_v16  ;;  %v3110_v25 = vld [vmem:[%s5856_s25 + $0x2d] sm:$0xff] }
 0x106   : > { %v6618_v20 = vadd.f32 %v1194_v42, %v801_v40  ;;  %v816_v52 = vadd.f32 %v5163_v48, %v6502_v26  ;;  %v5225_v54 = vpop.f32.mrf.mxu0  ;;  %5508 = vmatmul.mubr.msk.f32.gmra.mxu0 %vm252_vm0, %v2710_v12  ;;  %5448 = vmatprep.mubr.msk.f32.mxu1 %vm252_vm0, %v2709_v28 }
 0x107   : > { %v810_v56 = vpop.f32.mrf.mxu1  ;;  %5510 = vmatprep.mubr.msk.f32.mxu0 %vm252_vm0, %v2711_v46 }
 0x108   : > { %v6625_v57 = vadd.f32 %v5225_v54, %v816_v52  ;;  %v811_v58 = vadd.f32 %v810_v56, %v6510_v17  ;;  %v1204_v60 = vpop.f32.mrf.mxu0  ;;  %v2714_v17 = vld [vmem:[%s5856_s25 + $0x13c] sm:$0xff] }
 0x109   : > { %v5166_v0 = vpop.f32.mrf.mxu1  ;;  %5449 = vmatmul.mubr.msk.f32.gmra.mxu1 %vm252_vm0, %v2710_v12  ;;  %v3112_v56 = vld [vmem:[%s5856_s25 + $0x3d] sm:$0xff] }
 0x10a   : > { %v6630_v26 = vadd.f32 %v1204_v60, %v811_v58  ;;  %v826_v2 = vadd.f32 %v5166_v0, %v6516_v21  ;;  %v5228_v4 = vpop.f32.mrf.mxu0  ;;  %5511 = vmatmul.mubr.msk.f32.gmra.mxu0 %vm252_vm0, %v2712_v9  ;;  %5451 = vmatprep.mubr.msk.f32.mxu1 %vm252_vm0, %v2711_v46  ;;  %v3113_v58 = vld [vmem:[%s5856_s25 + $0x45] sm:$0xff] }
 0x10b   : > { %v820_v5 = vpop.f32.mrf.mxu1  ;;  %5513 = vmatprep.mubr.msk.f32.mxu0 %vm252_vm0, %v2713_v62 }
 0x10c   : > { %v6638_v55 = vadd.f32 %v5228_v4, %v826_v2  ;;  %v821_v61 = vadd.f32 %v820_v5, %v6524_v27  ;;  %v1214_v16 = vpop.f32.mrf.mxu0  ;;  %v3540_v27 = vld [vmem:[%s5856_s25 + $0x2e] sm:$0xff] }
 0x10d   : > { %v5169_v21 = vpop.f32.mrf.mxu1  ;;  %5452 = vmatmul.mubr.msk.f32.gmra.mxu1 %vm252_vm0, %v2712_v9 }
 0x10e   : > { %v6643_v24 = vadd.f32 %v1214_v16, %v821_v61  ;;  %v836_v28 = vadd.f32 %v5169_v21, %v6530_v32  ;;  %v5231_v30 = vpop.f32.mrf.mxu0  ;;  %5514 = vmatmul.mubr.msk.f32.gmra.mxu0 %vm252_vm0, %v2714_v17  ;;  %5524 = vmatprep.mubr.msk.f32.mxu1 %vm252_vm0, %v3109_v14  ;;  %v3541_v32 = vld [vmem:[%s5856_s25 + $0x36] sm:$0xff]  ;;  %v3114_v14 = vld [vmem:[%s5856_s25 + $0x4d] sm:$0xff] }
 0x10f   : > { %v830_v29 = vpop.f32.mrf.mxu1  ;;  %5586 = vmatprep.mubr.msk.f32.mxu0 %vm252_vm0, %v3539_v7  ;;  %v3115_v16 = vld [vmem:[%s5856_s25 + $0x55] sm:$0xff] }
 0x110   : > { %v6652_v12 = vadd.f32 %v5231_v30, %v836_v28  ;;  %v831_v40 = vadd.f32 %v830_v29, %v6538_v35  ;;  %v1224_v42 = vpop.f32.mrf.mxu0  ;;  %v3542_v35 = vld [vmem:[%s5856_s25 + $0x3e] sm:$0xff] }
 0x111   : > { %v5172_v46 = vpop.f32.mrf.mxu1  ;;  %5525 = vmatmul.mubr.msk.f32.vlgmr.msra.gmra.mxu1 %vm252_vm0, %v3110_v25 }
 0x112   : > { %v6657_v48 = vadd.f32 %v1224_v42, %v831_v40  ;;  %v846_v52 = vadd.f32 %v5172_v46, %v6544_v38  ;;  %v5234_v54 = vpop.f32.mrf.mxu0  ;;  %5587 = vmatmul.mubr.msk.f32.vlgmr.msra.gmra.mxu0 %vm252_vm0, %v3540_v27  ;;  %5527 = vmatprep.mubr.msk.f32.mxu1 %vm252_vm0, %v3111_v34  ;;  %v3543_v38 = vld [vmem:[%s5856_s25 + $0x46] sm:$0xff]  ;;  %v3116_v34 = vld [vmem:[%s5856_s25 + $0x5d] sm:$0xff] }
 0x113   : > { %v840_v9 = vpop.f32.mrf.mxu1  ;;  %5589 = vmatprep.mubr.msk.f32.mxu0 %vm252_vm0, %v3541_v32  ;;  %v3117_v42 = vld [vmem:[%s5856_s25 + $0x65] sm:$0xff] }
 0x114   : > { %v6666_v60 = vadd.f32 %v5234_v54, %v846_v52  ;;  %v841_v62 = vadd.f32 %v840_v9, %v6552_v41  ;;  %v1234_v0 = vpop.f32.mrf.mxu0  ;;  %v3544_v41 = vld [vmem:[%s5856_s25 + $0x4e] sm:$0xff] }
 0x115   : > { %v5175_v2 = vpop.f32.mrf.mxu1  ;;  %5528 = vmatmul.mubr.msk.f32.gmra.mxu1 %vm252_vm0, %v3112_v56 }
 0x116   : > { %v6671_v4 = vadd.f32 %v1234_v0, %v841_v62  ;;  %v856_v5 = vadd.f32 %v5175_v2, %v6558_v44  ;;  %v5237_v17 = vpop.f32.mrf.mxu0  ;;  %5590 = vmatmul.mubr.msk.f32.gmra.mxu0 %vm252_vm0, %v3542_v35  ;;  %5530 = vmatprep.mubr.msk.f32.mxu1 %vm252_vm0, %v3113_v58  ;;  %v3545_v44 = vld [vmem:[%s5856_s25 + $0x56] sm:$0xff]  ;;  %v3118_v58 = vld [vmem:[%s5856_s25 + $0x6d] sm:$0xff] }
 0x117   : > { %v850_v61 = vpop.f32.mrf.mxu1  ;;  %5592 = vmatprep.mubr.msk.f32.mxu0 %vm252_vm0, %v3543_v38  ;;  %v3119_v0 = vld [vmem:[%s5856_s25 + $0x75] sm:$0xff] }
 0x118   : > { %v6680_v7 = vadd.f32 %v5237_v17, %v856_v5  ;;  %v851_v21 = vadd.f32 %v850_v61, %v6566_v47  ;;  %v1244_v28 = vpop.f32.mrf.mxu0  ;;  %v3546_v47 = vld [vmem:[%s5856_s25 + $0x5e] sm:$0xff] }
 0x119   : > { %v5178_v30 = vpop.f32.mrf.mxu1  ;;  %5531 = vmatmul.mubr.msk.f32.gmra.mxu1 %vm252_vm0, %v3114_v14 }
 0x11a   : > { %v6685_v25 = vadd.f32 %v1244_v28, %v851_v21  ;;  %v866_v29 = vadd.f32 %v5178_v30, %v6572_v50  ;;  %v5240_v27 = vpop.f32.mrf.mxu0  ;;  %5593 = vmatmul.mubr.msk.f32.gmra.mxu0 %vm252_vm0, %v3544_v41  ;;  %5533 = vmatprep.mubr.msk.f32.mxu1 %vm252_vm0, %v3115_v16  ;;  %v3547_v50 = vld [vmem:[%s5856_s25 + $0x66] sm:$0xff]  ;;  %v3120_v16 = vld [vmem:[%s5856_s25 + $0x7d] sm:$0xff] }
 0x11b   : > { %v860_v40 = vpop.f32.mrf.mxu1  ;;  %5595 = vmatprep.mubr.msk.f32.mxu0 %vm252_vm0, %v3545_v44  ;;  %v3121_v28 = vld [vmem:[%s5856_s25 + $0x85] sm:$0xff] }
 0x11c   : > { %v6694_v32 = vadd.f32 %v5240_v27, %v866_v29  ;;  %v861_v46 = vadd.f32 %v860_v40, %v6580_v53  ;;  %v1254_v52 = vpop.f32.mrf.mxu0  ;;  %v3548_v53 = vld [vmem:[%s5856_s25 + $0x6e] sm:$0xff] }
 0x11d   : > { %v5181_v54 = vpop.f32.mrf.mxu1  ;;  %5534 = vmatmul.mubr.msk.f32.gmra.mxu1 %vm252_vm0, %v3116_v34 }
 0x11e   : > { %v6699_v56 = vadd.f32 %v1254_v52, %v861_v46  ;;  %v876_v9 = vadd.f32 %v5181_v54, %v6457_v6  ;;  %v5243_v35 = vpop.f32.mrf.mxu0  ;;  %5596 = vmatmul.mubr.msk.f32.gmra.mxu0 %vm252_vm0, %v3546_v47  ;;  %5536 = vmatprep.mubr.msk.f32.mxu1 %vm252_vm0, %v3117_v42  ;;  %v3549_v6 = vld [vmem:[%s5856_s25 + $0x76] sm:$0xff]  ;;  %v3122_v42 = vld [vmem:[%s5856_s25 + $0x8d] sm:$0xff] }
 0x11f   : > { %v870_v62 = vpop.f32.mrf.mxu1  ;;  %5598 = vmatprep.mubr.msk.f32.mxu0 %vm252_vm0, %v3547_v50  ;;  %v3123_v52 = vld [vmem:[%s5856_s25 + $0x95] sm:$0xff] }
 0x120   : > { %v6708_v38 = vadd.f32 %v5243_v35, %v876_v9  ;;  %v871_v2 = vadd.f32 %v870_v62, %v6464_v11  ;;  %v1264_v5 = vpop.f32.mrf.mxu0  ;;  %v3550_v11 = vld [vmem:[%s5856_s25 + $0x7e] sm:$0xff] }
 0x121   : > { %v5184_v17 = vpop.f32.mrf.mxu1  ;;  %5537 = vmatmul.mubr.msk.f32.gmra.mxu1 %vm252_vm0, %v3118_v58 }
 0x122   : > { %v6713_v14 = vadd.f32 %v1264_v5, %v871_v2  ;;  %v886_v61 = vadd.f32 %v5184_v17, %v6471_v59  ;;  %v5246_v41 = vpop.f32.mrf.mxu0  ;;  %5599 = vmatmul.mubr.msk.f32.gmra.mxu0 %vm252_vm0, %v3548_v53  ;;  %5539 = vmatprep.mubr.msk.f32.mxu1 %vm252_vm0, %v3119_v0  ;;  %v3551_v59 = vld [vmem:[%s5856_s25 + $0x86] sm:$0xff]  ;;  %v3124_v0 = vld [vmem:[%s5856_s25 + $0x9d] sm:$0xff] }
 0x123   : > { %v880_v21 = vpop.f32.mrf.mxu1  ;;  %5601 = vmatprep.mubr.msk.f32.mxu0 %vm252_vm0, %v3549_v6  ;;  %v3125_v5 = vld [vmem:[%s5856_s25 + $0xa5] sm:$0xff] }
 0x124   : > { %v6722_v44 = vadd.f32 %v5246_v41, %v886_v61  ;;  %v881_v30 = vadd.f32 %v880_v21, %v6478_v10  ;;  %v1274_v29 = vpop.f32.mrf.mxu0  ;;  %v3552_v10 = vld [vmem:[%s5856_s25 + $0x8e] sm:$0xff] }
 0x125   : > { %v5187_v27 = vpop.f32.mrf.mxu1  ;;  %5540 = vmatmul.mubr.msk.f32.gmra.mxu1 %vm252_vm0, %v3120_v16 }
 0x126   : > { %v6727_v34 = vadd.f32 %v1274_v29, %v881_v30  ;;  %v896_v40 = vadd.f32 %v5187_v27, %v6485_v3  ;;  %v5249_v47 = vpop.f32.mrf.mxu0  ;;  %5602 = vmatmul.mubr.msk.f32.gmra.mxu0 %vm252_vm0, %v3550_v11  ;;  %5542 = vmatprep.mubr.msk.f32.mxu1 %vm252_vm0, %v3121_v28  ;;  %v3553_v3 = vld [vmem:[%s5856_s25 + $0x96] sm:$0xff]  ;;  %v3126_v28 = vld [vmem:[%s5856_s25 + $0xad] sm:$0xff] }
 0x127   : > { %v890_v46 = vpop.f32.mrf.mxu1  ;;  %5604 = vmatprep.mubr.msk.f32.mxu0 %vm252_vm0, %v3551_v59  ;;  %v3127_v29 = vld [vmem:[%s5856_s25 + $0xb5] sm:$0xff] }
 0x128   : > { %v6736_v50 = vadd.f32 %v5249_v47, %v896_v40  ;;  %v891_v54 = vadd.f32 %v890_v46, %v6492_v22  ;;  %v1284_v9 = vpop.f32.mrf.mxu0  ;;  %v3554_v22 = vld [vmem:[%s5856_s25 + $0x9e] sm:$0xff] }
 0x129   : > { %v5190_v35 = vpop.f32.mrf.mxu1  ;;  %5543 = vmatmul.mubr.msk.f32.gmra.mxu1 %vm252_vm0, %v3122_v42 }
 0x12a   : > { %v6741_v58 = vadd.f32 %v1284_v9, %v891_v54  ;;  %v906_v62 = vadd.f32 %v5190_v35, %v6499_v13  ;;  %v5252_v53 = vpop.f32.mrf.mxu0  ;;  %5605 = vmatmul.mubr.msk.f32.gmra.mxu0 %vm252_vm0, %v3552_v10  ;;  %5545 = vmatprep.mubr.msk.f32.mxu1 %vm252_vm0, %v3123_v52  ;;  %v3555_v13 = vld [vmem:[%s5856_s25 + $0xa6] sm:$0xff]  ;;  %v3128_v52 = vld [vmem:[%s5856_s25 + $0xbd] sm:$0xff] }
 0x12b   : > { %v900_v2 = vpop.f32.mrf.mxu1  ;;  %5607 = vmatprep.mubr.msk.f32.mxu0 %vm252_vm0, %v3553_v3  ;;  %v3129_v9 = vld [vmem:[%s5856_s25 + $0xc5] sm:$0xff] }
 0x12c   : > { %v6750_v6 = vadd.f32 %v5252_v53, %v906_v62  ;;  %v901_v17 = vadd.f32 %v900_v2, %v6506_v15  ;;  %v1294_v61 = vpop.f32.mrf.mxu0  ;;  %v3556_v15 = vld [vmem:[%s5856_s25 + $0xae] sm:$0xff] }
 0x12d   : > { %v5193_v41 = vpop.f32.mrf.mxu1  ;;  %5546 = vmatmul.mubr.msk.f32.gmra.mxu1 %vm252_vm0, %v3124_v0 }
 0x12e   : > { %v6755_v16 = vadd.f32 %v1294_v61, %v901_v17  ;;  %v916_v21 = vadd.f32 %v5193_v41, %v6513_v19  ;;  %v5255_v11 = vpop.f32.mrf.mxu0  ;;  %5608 = vmatmul.mubr.msk.f32.gmra.mxu0 %vm252_vm0, %v3554_v22  ;;  %5548 = vmatprep.mubr.msk.f32.mxu1 %vm252_vm0, %v3125_v5  ;;  %v3557_v19 = vld [vmem:[%s5856_s25 + $0xb6] sm:$0xff]  ;;  %v3130_v5 = vld [vmem:[%s5856_s25 + $0xcd] sm:$0xff] }
 0x12f   : > { %v910_v30 = vpop.f32.mrf.mxu1  ;;  %5610 = vmatprep.mubr.msk.f32.mxu0 %vm252_vm0, %v3555_v13  ;;  %v3131_v61 = vld [vmem:[%s5856_s25 + $0xd5] sm:$0xff] }
 0x130   : > { %v6764_v59 = vadd.f32 %v5255_v11, %v916_v21  ;;  %v911_v27 = vadd.f32 %v910_v30, %v6520_v23  ;;  %v1304_v40 = vpop.f32.mrf.mxu0  ;;  %v3558_v23 = vld [vmem:[%s5856_s25 + $0xbe] sm:$0xff] }
 0x131   : > { %v5196_v47 = vpop.f32.mrf.mxu1  ;;  %5549 = vmatmul.mubr.msk.f32.gmra.mxu1 %vm252_vm0, %v3126_v28 }
 0x132   : > { %v6769_v42 = vadd.f32 %v1304_v40, %v911_v27  ;;  %v926_v46 = vadd.f32 %v5196_v47, %v6527_v31  ;;  %v5258_v10 = vpop.f32.mrf.mxu0  ;;  %5611 = vmatmul.mubr.msk.f32.gmra.mxu0 %vm252_vm0, %v3556_v15  ;;  %5551 = vmatprep.mubr.msk.f32.mxu1 %vm252_vm0, %v3127_v29  ;;  %v3559_v31 = vld [vmem:[%s5856_s25 + $0xc6] sm:$0xff]  ;;  %v3132_v29 = vld [vmem:[%s5856_s25 + $0xdd] sm:$0xff] }
 0x133   : > { %v920_v54 = vpop.f32.mrf.mxu1  ;;  %5613 = vmatprep.mubr.msk.f32.mxu0 %vm252_vm0, %v3557_v19  ;;  %v3133_v40 = vld [vmem:[%s5856_s25 + $0xe5] sm:$0xff] }
 0x134   : > { %v6778_v3 = vadd.f32 %v5258_v10, %v926_v46  ;;  %v921_v35 = vadd.f32 %v920_v54, %v6534_v33  ;;  %v1314_v62 = vpop.f32.mrf.mxu0  ;;  %v3560_v33 = vld [vmem:[%s5856_s25 + $0xce] sm:$0xff] }
 0x135   : > { %v5199_v53 = vpop.f32.mrf.mxu1  ;;  %5552 = vmatmul.mubr.msk.f32.gmra.mxu1 %vm252_vm0, %v3128_v52 }
 0x136   : > { %v6783_v0 = vadd.f32 %v1314_v62, %v921_v35  ;;  %v936_v2 = vadd.f32 %v5199_v53, %v6541_v37  ;;  %v5261_v22 = vpop.f32.mrf.mxu0  ;;  %5614 = vmatmul.mubr.msk.f32.gmra.mxu0 %vm252_vm0, %v3558_v23  ;;  %5554 = vmatprep.mubr.msk.f32.mxu1 %vm252_vm0, %v3129_v9  ;;  %v3561_v37 = vld [vmem:[%s5856_s25 + $0xd6] sm:$0xff]  ;;  %v3134_v9 = vld [vmem:[%s5856_s25 + $0xed] sm:$0xff] }
 0x137   : > { %v930_v17 = vpop.f32.mrf.mxu1  ;;  %5616 = vmatprep.mubr.msk.f32.mxu0 %vm252_vm0, %v3559_v31  ;;  %v3135_v62 = vld [vmem:[%s5856_s25 + $0xf5] sm:$0xff] }
 0x138   : > { %v6792_v13 = vadd.f32 %v5261_v22, %v936_v2  ;;  %v931_v41 = vadd.f32 %v930_v17, %v6548_v39  ;;  %v1324_v21 = vpop.f32.mrf.mxu0  ;;  %v3562_v39 = vld [vmem:[%s5856_s25 + $0xde] sm:$0xff] }
 0x139   : > { %v5202_v11 = vpop.f32.mrf.mxu1  ;;  %5555 = vmatmul.mubr.msk.f32.gmra.mxu1 %vm252_vm0, %v3130_v5 }
 0x13a   : > { %v6797_v28 = vadd.f32 %v1324_v21, %v931_v41  ;;  %v946_v30 = vadd.f32 %v5202_v11, %v6555_v43  ;;  %v5264_v15 = vpop.f32.mrf.mxu0  ;;  %5617 = vmatmul.mubr.msk.f32.gmra.mxu0 %vm252_vm0, %v3560_v33  ;;  %5557 = vmatprep.mubr.msk.f32.mxu1 %vm252_vm0, %v3131_v61  ;;  %v3563_v43 = vld [vmem:[%s5856_s25 + $0xe6] sm:$0xff]  ;;  %v3136_v61 = vld [vmem:[%s5856_s25 + $0xfd] sm:$0xff] }
 0x13b   : > { %v940_v27 = vpop.f32.mrf.mxu1  ;;  %5619 = vmatprep.mubr.msk.f32.mxu0 %vm252_vm0, %v3561_v37  ;;  %v3137_v21 = vld [vmem:[%s5856_s25 + $0x105] sm:$0xff] }
 0x13c   : > { %v6806_v19 = vadd.f32 %v5264_v15, %v946_v30  ;;  %v941_v47 = vadd.f32 %v940_v27, %v6562_v45  ;;  %v1334_v46 = vpop.f32.mrf.mxu0  ;;  %v3564_v45 = vld [vmem:[%s5856_s25 + $0xee] sm:$0xff] }
 0x13d   : > { %v5205_v10 = vpop.f32.mrf.mxu1  ;;  %5558 = vmatmul.mubr.msk.f32.gmra.mxu1 %vm252_vm0, %v3132_v29 }
 0x13e   : > { %v6811_v52 = vadd.f32 %v1334_v46, %v941_v47  ;;  %v956_v54 = vadd.f32 %v5205_v10, %v6569_v49  ;;  %v5267_v23 = vpop.f32.mrf.mxu0  ;;  %5620 = vmatmul.mubr.msk.f32.gmra.mxu0 %vm252_vm0, %v3562_v39  ;;  %5560 = vmatprep.mubr.msk.f32.mxu1 %vm252_vm0, %v3133_v40  ;;  %v3565_v49 = vld [vmem:[%s5856_s25 + $0xf6] sm:$0xff]  ;;  %v3138_v40 = vld [vmem:[%s5856_s25 + $0x10d] sm:$0xff] }
 0x13f   : > { %v950_v35 = vpop.f32.mrf.mxu1  ;;  %5622 = vmatprep.mubr.msk.f32.mxu0 %vm252_vm0, %v3563_v43  ;;  %v3139_v46 = vld [vmem:[%s5856_s25 + $0x115] sm:$0xff] }
 0x140   : > { %v6820_v31 = vadd.f32 %v5267_v23, %v956_v54  ;;  %v951_v53 = vadd.f32 %v950_v35, %v6576_v51  ;;  %v1344_v2 = vpop.f32.mrf.mxu0  ;;  %v3566_v51 = vld [vmem:[%s5856_s25 + $0xfe] sm:$0xff] }
 0x141   : > { %v5278_v22 = vpop.f32.mrf.mxu1  ;;  %5561 = vmatmul.mubr.msk.f32.gmra.mxu1 %vm252_vm0, %v3134_v9 }
 0x142   : > { %v6825_v5 = vadd.f32 %v1344_v2, %v951_v53  ;;  %v1784_v17 = vadd.f32 %v5278_v22, %v6589_v63  ;;  %v5340_v33 = vpop.f32.mrf.mxu0  ;;  %5623 = vmatmul.mubr.msk.f32.gmra.mxu0 %vm252_vm0, %v3564_v45  ;;  %5563 = vmatprep.mubr.msk.f32.mxu1 %vm252_vm0, %v3135_v62  ;;  %v3567_v63 = vld [vmem:[%s5856_s25 + $0x106] sm:$0xff]  ;;  %v3140_v62 = vld [vmem:[%s5856_s25 + $0x11d] sm:$0xff] }
 0x143   : > { %v1604_v41 = vpop.f32.mrf.mxu1  ;;  %5625 = vmatprep.mubr.msk.f32.mxu0 %vm252_vm0, %v3565_v49  ;;  %v3141_v2 = vld [vmem:[%s5856_s25 + $0x125] sm:$0xff] }
 0x144   : > { %v6834_v37 = vadd.f32 %v5340_v33, %v1784_v17  ;;  %v1783_v11 = vadd.f32 %v1604_v41, %v6594_v8  ;;  %v2034_v30 = vpop.f32.mrf.mxu0  ;;  %v3568_v8 = vld [vmem:[%s5856_s25 + $0x10e] sm:$0xff] }
 0x145   : > { %v5281_v15 = vpop.f32.mrf.mxu1  ;;  %5564 = vmatmul.mubr.msk.f32.gmra.mxu1 %vm252_vm0, %v3136_v61 }
 0x146   : > { %v6839_v29 = vadd.f32 %v2034_v30, %v1783_v11  ;;  %v1786_v27 = vadd.f32 %v5281_v15, %v6601_v1  ;;  %v5343_v39 = vpop.f32.mrf.mxu0  ;;  %5626 = vmatmul.mubr.msk.f32.gmra.mxu0 %vm252_vm0, %v3566_v51  ;;  %5566 = vmatprep.mubr.msk.f32.mxu1 %vm252_vm0, %v3137_v21  ;;  %v3569_v1 = vld [vmem:[%s5856_s25 + $0x116] sm:$0xff]  ;;  %v3142_v21 = vld [vmem:[%s5856_s25 + $0x12d] sm:$0xff] }
 0x147   : > { %v1614_v47 = vpop.f32.mrf.mxu1  ;;  %5628 = vmatprep.mubr.msk.f32.mxu0 %vm252_vm0, %v3567_v63  ;;  %v3143_v30 = vld [vmem:[%s5856_s25 + $0x135] sm:$0xff] }
 0x148   : > { %v6848_v43 = vadd.f32 %v5343_v39, %v1786_v27  ;;  %v1785_v10 = vadd.f32 %v1614_v47, %v6606_v18  ;;  %v2044_v54 = vpop.f32.mrf.mxu0  ;;  %v3570_v18 = vld [vmem:[%s5856_s25 + $0x11e] sm:$0xff]  ;;  %v3573_v39 = vld [vmem:[%s5856_s25 + $0x136] sm:$0xff] }
 0x149   : > { %v5284_v23 = vpop.f32.mrf.mxu1  ;;  %5567 = vmatmul.mubr.msk.f32.gmra.mxu1 %vm252_vm0, %v3138_v40 }
 0x14a   : > { %v6853_v9 = vadd.f32 %v2044_v54, %v1785_v10  ;;  %v1788_v35 = vadd.f32 %v5284_v23, %v6613_v36  ;;  %v5346_v45 = vpop.f32.mrf.mxu0  ;;  %5629 = vmatmul.mubr.msk.f32.gmra.mxu0 %vm252_vm0, %v3568_v8  ;;  %5569 = vmatprep.mubr.msk.f32.mxu1 %vm252_vm0, %v3139_v46  ;;  %v3571_v36 = vld [vmem:[%s5856_s25 + $0x126] sm:$0xff]  ;;  %v3144_v46 = vld [vmem:[%s5856_s25 + $0x13d] sm:$0xff] }
 0x14b   : > { %v1624_v53 = vpop.f32.mrf.mxu1  ;;  %5631 = vmatprep.mubr.msk.f32.mxu0 %vm252_vm0, %v3569_v1  ;;  %v3574_v54 = vld [vmem:[%s5856_s25 + $0x13e] sm:$0xff] }
 0x14c   : > { %v6862_v49 = vadd.f32 %v5346_v45, %v1788_v35  ;;  %v1787_v22 = vadd.f32 %v1624_v53, %v6618_v20  ;;  %v2054_v17 = vpop.f32.mrf.mxu0  ;;  %v3572_v20 = vld [vmem:[%s5856_s25 + $0x12e] sm:$0xff] }
 0x14d   : > { %v5287_v33 = vpop.f32.mrf.mxu1  ;;  %5570 = vmatmul.mubr.msk.f32.gmra.mxu1 %vm252_vm0, %v3140_v62 }
 0x14e   : > { %v6867_v61 = vadd.f32 %v2054_v17, %v1787_v22  ;;  %v1790_v41 = vadd.f32 %v5287_v33, %v6625_v57  ;;  %v5349_v51 = vpop.f32.mrf.mxu0  ;;  %5632 = vmatmul.mubr.msk.f32.gmra.mxu0 %vm252_vm0, %v3570_v18  ;;  %5572 = vmatprep.mubr.msk.f32.mxu1 %vm252_vm0, %v3141_v2 }
 0x14f   : > { %v1634_v11 = vpop.f32.mrf.mxu1  ;;  %5634 = vmatprep.mubr.msk.f32.mxu0 %vm252_vm0, %v3571_v36 }
 0x150   : > { %v6876_v63 = vadd.f32 %v5349_v51, %v1790_v41  ;;  %v1789_v15 = vadd.f32 %v1634_v11, %v6630_v26  ;;  %v2064_v27 = vpop.f32.mrf.mxu0 }
 0x151   : > { %v5290_v57 = vpop.f32.mrf.mxu1  ;;  %5573 = vmatmul.mubr.msk.f32.gmra.mxu1 %vm252_vm0, %v3142_v21 }
 0x152   : > { %v6881_v40 = vadd.f32 %v2064_v27, %v1789_v15  ;;  %v1792_v47 = vadd.f32 %v5290_v57, %v6638_v55  ;;  %v5352_v8 = vpop.f32.mrf.mxu0  ;;  %5635 = vmatmul.mubr.msk.f32.gmra.mxu0 %vm252_vm0, %v3572_v20  ;;  %5575 = vmatprep.mubr.msk.f32.mxu1 %vm252_vm0, %v3143_v30 }
 0x153   : > { %v1644_v10 = vpop.f32.mrf.mxu1  ;;  %5637 = vmatprep.mubr.msk.f32.mxu0 %vm252_vm0, %v3573_v39 }
 0x154   : > { %v6889_v26 = vadd.f32 %v5352_v8, %v1792_v47  ;;  %v1791_v1 = vadd.f32 %v1644_v10, %v6643_v24  ;;  %v2074_v23 = vpop.f32.mrf.mxu0 }
 0x155   : > { %v5293_v35 = vpop.f32.mrf.mxu1  ;;  %5576 = vmatmul.mubr.msk.f32.gmra.mxu1 %vm252_vm0, %v3144_v46 }
 0x156   : > { %v6893_v45 = vadd.f32 %v2074_v23, %v1791_v1  ;;  %v1794_v55 = vadd.f32 %v5293_v35, %v6652_v12  ;;  %v5355_v62 = vpop.f32.mrf.mxu0  ;;  %5638 = vmatmul.mubr.msk.f32.gmra.mxu0 %vm252_vm0, %v3574_v54 }
 0x157   : > { %v1654_v53 = vpop.f32.mrf.mxu1 }
 0x158   : > { %v6897_v18 = vadd.f32 %v5355_v62, %v1794_v55  ;;  %v1793_v2 = vadd.f32 %v1654_v53, %v6657_v48  ;;  %v2084_v22 = vpop.f32.mrf.mxu0 }
 0x159   : > { %v5296_v17 = vpop.f32.mrf.mxu1 }
 0x15a   : > { %v6900_v36 = vadd.f32 %v2084_v22, %v1793_v2  ;;  %v1796_v24 = vadd.f32 %v5296_v17, %v6666_v60  ;;  %v5358_v33 = vpop.f32.mrf.mxu0 }
 0x15b   : > { %v1664_v41 = vpop.f32.mrf.mxu1 }
 0x15c   : > { %v6903_v51 = vadd.f32 %v5358_v33, %v1796_v24  ;;  %v1795_v12 = vadd.f32 %v1664_v41, %v6671_v4  ;;  %v2094_v21 = vpop.f32.mrf.mxu0 }
 0x15d   : > { %v5299_v11 = vpop.f32.mrf.mxu1 }
 0x15e   : > { %v6906_v20 = vadd.f32 %v2094_v21, %v1795_v12  ;;  %v1798_v30 = vadd.f32 %v5299_v11, %v6680_v7  ;;  %v5361_v15 = vpop.f32.mrf.mxu0 }
 0x15f   : > { %v1674_v48 = vpop.f32.mrf.mxu1 }
 0x160   : > { %v6909_v27 = vadd.f32 %v5361_v15, %v1798_v30  ;;  %v1797_v39 = vadd.f32 %v1674_v48, %v6685_v25  ;;  %v2104_v57 = vpop.f32.mrf.mxu0 }
 0x161   : > { %v5302_v60 = vpop.f32.mrf.mxu1 }
 0x162   : > { %v6912_v47 = vadd.f32 %v2104_v57, %v1797_v39  ;;  %v1800_v8 = vadd.f32 %v5302_v60, %v6694_v32  ;;  %v5364_v46 = vpop.f32.mrf.mxu0 }
 0x163   : > { %v1684_v4 = vpop.f32.mrf.mxu1 }
 0x164   : > { %v6915_v10 = vadd.f32 %v5364_v46, %v1800_v8  ;;  %v1799_v54 = vadd.f32 %v1684_v4, %v6699_v56  ;;  %v2114_v1 = vpop.f32.mrf.mxu0 }
 0x165   : > { %v5305_v7 = vpop.f32.mrf.mxu1 }
 0x166   : > { %v6918_v23 = vadd.f32 %v2114_v1, %v1799_v54  ;;  %v1802_v35 = vadd.f32 %v5305_v7, %v6708_v38  ;;  %v5367_v55 = vpop.f32.mrf.mxu0 }
 0x167   : > { %v1694_v25 = vpop.f32.mrf.mxu1 }
 0x168   : > { %v6921_v62 = vadd.f32 %v5367_v55, %v1802_v35  ;;  %v1801_v53 = vadd.f32 %v1694_v25, %v6713_v14  ;;  %v2124_v2 = vpop.f32.mrf.mxu0 }
 0x169   : > { %v5308_v32 = vpop.f32.mrf.mxu1 }
 0x16a   : > { %v6924_v22 = vadd.f32 %v2124_v2, %v1801_v53  ;;  %v1804_v17 = vadd.f32 %v5308_v32, %v6722_v44  ;;  %v5370_v24 = vpop.f32.mrf.mxu0 }
 0x16b   : > { %v1704_v56 = vpop.f32.mrf.mxu1 }
 0x16c   : > { %v6927_v33 = vadd.f32 %v5370_v24, %v1804_v17  ;;  %v1803_v41 = vadd.f32 %v1704_v56, %v6727_v34  ;;  %v2134_v12 = vpop.f32.mrf.mxu0 }
 0x16d   : > { %v5311_v38 = vpop.f32.mrf.mxu1 }
 0x16e   : > { %v6930_v21 = vadd.f32 %v2134_v12, %v1803_v41  ;;  %v1806_v11 = vadd.f32 %v5311_v38, %v6736_v50  ;;  %v5373_v30 = vpop.f32.mrf.mxu0 }
 0x16f   : > { %v1714_v14 = vpop.f32.mrf.mxu1 }
 0x170   : > { %v6933_v15 = vadd.f32 %v5373_v30, %v1806_v11  ;;  %v1805_v48 = vadd.f32 %v1714_v14, %v6741_v58  ;;  %v2144_v39 = vpop.f32.mrf.mxu0 }
 0x171   : > { %v5314_v44 = vpop.f32.mrf.mxu1 }
 0x172   : > { %v6936_v57 = vadd.f32 %v2144_v39, %v1805_v48  ;;  %v1808_v60 = vadd.f32 %v5314_v44, %v6750_v6  ;;  %v5376_v8 = vpop.f32.mrf.mxu0 }
 0x173   : > { %v1724_v34 = vpop.f32.mrf.mxu1 }
 0x174   : > { %v6939_v46 = vadd.f32 %v5376_v8, %v1808_v60  ;;  %v1807_v4 = vadd.f32 %v1724_v34, %v6755_v16  ;;  %v2154_v54 = vpop.f32.mrf.mxu0 }
 0x175   : > { %v5317_v50 = vpop.f32.mrf.mxu1 }
 0x176   : > { %v6942_v1 = vadd.f32 %v2154_v54, %v1807_v4  ;;  %v1810_v7 = vadd.f32 %v5317_v50, %v6764_v59  ;;  %v5379_v35 = vpop.f32.mrf.mxu0 }
 0x177   : > { %v1734_v58 = vpop.f32.mrf.mxu1 }
 0x178   : > { %v6945_v55 = vadd.f32 %v5379_v35, %v1810_v7  ;;  %v1809_v25 = vadd.f32 %v1734_v58, %v6769_v42  ;;  %v2164_v53 = vpop.f32.mrf.mxu0 }
 0x179   : > { %v5320_v6 = vpop.f32.mrf.mxu1 }
 0x17a   : > { %v6948_v2 = vadd.f32 %v2164_v53, %v1809_v25  ;;  %v1812_v32 = vadd.f32 %v5320_v6, %v6778_v3  ;;  %v5382_v17 = vpop.f32.mrf.mxu0 }
 0x17b   : > { %v1744_v16 = vpop.f32.mrf.mxu1 }
 0x17c   : > { %v6951_v24 = vadd.f32 %v5382_v17, %v1812_v32  ;;  %v1811_v56 = vadd.f32 %v1744_v16, %v6783_v0  ;;  %v2174_v41 = vpop.f32.mrf.mxu0 }
 0x17d   : > { %v5323_v59 = vpop.f32.mrf.mxu1 }
 0x17e   : > { %v6954_v12 = vadd.f32 %v2174_v41, %v1811_v56  ;;  %v1814_v38 = vadd.f32 %v5323_v59, %v6792_v13  ;;  %v5385_v11 = vpop.f32.mrf.mxu0 }
 0x17f   : > { %v1754_v42 = vpop.f32.mrf.mxu1 }
 0x180   : > { %v6957_v30 = vadd.f32 %v5385_v11, %v1814_v38  ;;  %v1813_v14 = vadd.f32 %v1754_v42, %v6797_v28  ;;  %v2184_v48 = vpop.f32.mrf.mxu0 }
 0x181   : > { %v5326_v3 = vpop.f32.mrf.mxu1 }
 0x182   : > { %v6960_v39 = vadd.f32 %v2184_v48, %v1813_v14  ;;  %v1816_v44 = vadd.f32 %v5326_v3, %v6806_v19  ;;  %v5388_v60 = vpop.f32.mrf.mxu0 }
 0x183   : > { %v1764_v0 = vpop.f32.mrf.mxu1 }
 0x184   : > { %v6963_v8 = vadd.f32 %v5388_v60, %v1816_v44  ;;  %v1815_v34 = vadd.f32 %v1764_v0, %v6811_v52  ;;  %v2194_v4 = vpop.f32.mrf.mxu0 }
 0x185   : > { %v5329_v13 = vpop.f32.mrf.mxu1 }
 0x186   : > { %v6966_v54 = vadd.f32 %v2194_v4, %v1815_v34  ;;  %v1818_v50 = vadd.f32 %v5329_v13, %v6820_v31  ;;  %v5391_v7 = vpop.f32.mrf.mxu0 }
 0x187   : > { %v1774_v28 = vpop.f32.mrf.mxu1 }
 0x188   : > { %v6969_v35 = vadd.f32 %v5391_v7, %v1818_v50  ;;  %v1817_v58 = vadd.f32 %v1774_v28, %v6825_v5  ;;  %v2204_v25 = vpop.f32.mrf.mxu0 }
 0x189   : > { %v5402_v19 = vpop.f32.mrf.mxu1 }
 0x18a   : > { %v6972_v53 = vadd.f32 %v2204_v25, %v1817_v58  ;;  %v2644_v6 = vadd.f32 %v5402_v19, %v6834_v37  ;;  %v5464_v32 = vpop.f32.mrf.mxu0 }
 0x18b   : > { %v2464_v52 = vpop.f32.mrf.mxu1 }
 0x18c   : > { %v6975_v17 = vadd.f32 %v5464_v32, %v2644_v6  ;;  %v2643_v16 = vadd.f32 %v2464_v52, %v6839_v29  ;;  %v2894_v56 = vpop.f32.mrf.mxu0 }
 0x18d   : > { %v5405_v31 = vpop.f32.mrf.mxu1 }
 0x18e   : > { %v6978_v41 = vadd.f32 %v2894_v56, %v2643_v16  ;;  %v2646_v59 = vadd.f32 %v5405_v31, %v6848_v43  ;;  %v5467_v38 = vpop.f32.mrf.mxu0 }
 0x18f   : > { %v2474_v5 = vpop.f32.mrf.mxu1 }
 0x190   : > { %v6981_v11 = vadd.f32 %v5467_v38, %v2646_v59  ;;  %v2645_v42 = vadd.f32 %v2474_v5, %v6853_v9  ;;  %v2904_v14 = vpop.f32.mrf.mxu0 }
 0x191   : > { %v5408_v37 = vpop.f32.mrf.mxu1 }
 0x192   : > { %v6984_v48 = vadd.f32 %v2904_v14, %v2645_v42  ;;  %v2648_v3 = vadd.f32 %v5408_v37, %v6862_v49  ;;  %v5470_v44 = vpop.f32.mrf.mxu0 }
 0x193   : > { %v2484_v29 = vpop.f32.mrf.mxu1 }
 0x194   : > { %v6987_v60 = vadd.f32 %v5470_v44, %v2648_v3  ;;  %v2647_v0 = vadd.f32 %v2484_v29, %v6867_v61  ;;  %v2914_v34 = vpop.f32.mrf.mxu0 }
 0x195   : > { %v5411_v43 = vpop.f32.mrf.mxu1 }
 0x196   : > { %v6990_v4 = vadd.f32 %v2914_v34, %v2647_v0  ;;  %v2650_v13 = vadd.f32 %v5411_v43, %v6876_v63  ;;  %v5473_v50 = vpop.f32.mrf.mxu0 }
 0x197   : > { %v2494_v9 = vpop.f32.mrf.mxu1 }
 0x198   : > { %v6993_v7 = vadd.f32 %v5473_v50, %v2650_v13  ;;  %v2649_v28 = vadd.f32 %v2494_v9, %v6881_v40  ;;  %v2924_v58 = vpop.f32.mrf.mxu0 }
 0x199   : > { %v5414_v49 = vpop.f32.mrf.mxu1 }
 0x19a   : > { %v6996_v25 = vadd.f32 %v2924_v58, %v2649_v28  ;;  %v2652_v19 = vadd.f32 %v5414_v49, %v6889_v26  ;;  %v5476_v6 = vpop.f32.mrf.mxu0 }
 0x19b   : > { %v2504_v61 = vpop.f32.mrf.mxu1 }
 0x19c   : > { %v6999_v32 = vadd.f32 %v5476_v6, %v2652_v19  ;;  %v2651_v52 = vadd.f32 %v2504_v61, %v6893_v45  ;;  %v2934_v16 = vpop.f32.mrf.mxu0 }
 0x19d   : > { %v5417_v63 = vpop.f32.mrf.mxu1 }
 0x19e   : > { %v7002_v56 = vadd.f32 %v2934_v16, %v2651_v52  ;;  %v2654_v31 = vadd.f32 %v5417_v63, %v6897_v18  ;;  %v5479_v59 = vpop.f32.mrf.mxu0 }
 0x19f   : > { %v2514_v40 = vpop.f32.mrf.mxu1 }
 0x1a0   : > { %v7005_v38 = vadd.f32 %v5479_v59, %v2654_v31  ;;  %v2653_v5 = vadd.f32 %v2514_v40, %v6900_v36  ;;  %v2944_v42 = vpop.f32.mrf.mxu0 }
 0x1a1   : > { %v5420_v26 = vpop.f32.mrf.mxu1 }
 0x1a2   : > { %v7008_v14 = vadd.f32 %v2944_v42, %v2653_v5  ;;  %v2656_v37 = vadd.f32 %v5420_v26, %v6903_v51  ;;  %v5482_v3 = vpop.f32.mrf.mxu0 }
 0x1a3   : > { %v2524_v45 = vpop.f32.mrf.mxu1 }
 0x1a4   : > { %v7011_v44 = vadd.f32 %v5482_v3, %v2656_v37  ;;  %v2655_v29 = vadd.f32 %v2524_v45, %v6906_v20  ;;  %v2954_v0 = vpop.f32.mrf.mxu0 }
 0x1a5   : > { %v5423_v18 = vpop.f32.mrf.mxu1 }
 0x1a6   : > { %v7014_v34 = vadd.f32 %v2954_v0, %v2655_v29  ;;  %v2658_v43 = vadd.f32 %v5423_v18, %v6909_v27  ;;  %v5485_v13 = vpop.f32.mrf.mxu0 }
 0x1a7   : > { %v2534_v36 = vpop.f32.mrf.mxu1 }
 0x1a8   : > { %v7017_v50 = vadd.f32 %v5485_v13, %v2658_v43  ;;  %v2657_v9 = vadd.f32 %v2534_v36, %v6912_v47  ;;  %v2964_v28 = vpop.f32.mrf.mxu0 }
 0x1a9   : > { %v5426_v51 = vpop.f32.mrf.mxu1 }
 0x1aa   : > { %v7020_v58 = vadd.f32 %v2964_v28, %v2657_v9  ;;  %v2660_v49 = vadd.f32 %v5426_v51, %v6915_v10  ;;  %v5488_v19 = vpop.f32.mrf.mxu0 }
 0x1ab   : > { %v2544_v20 = vpop.f32.mrf.mxu1 }
 0x1ac   : > { %v7023_v6 = vadd.f32 %v5488_v19, %v2660_v49  ;;  %v2659_v61 = vadd.f32 %v2544_v20, %v6918_v23  ;;  %v2974_v52 = vpop.f32.mrf.mxu0 }
 0x1ad   : > { %v5429_v27 = vpop.f32.mrf.mxu1 }
 0x1ae   : > { %v7026_v16 = vadd.f32 %v2974_v52, %v2659_v61  ;;  %v2662_v63 = vadd.f32 %v5429_v27, %v6921_v62  ;;  %v5491_v31 = vpop.f32.mrf.mxu0 }
 0x1af   : > { %v2554_v47 = vpop.f32.mrf.mxu1 }
 0x1b0   : > { %v7029_v59 = vadd.f32 %v5491_v31, %v2662_v63  ;;  %v2661_v40 = vadd.f32 %v2554_v47, %v6924_v22  ;;  %v2984_v5 = vpop.f32.mrf.mxu0 }
 0x1b1   : > { %v5432_v10 = vpop.f32.mrf.mxu1 }
 0x1b2   : > { %v7032_v42 = vadd.f32 %v2984_v5, %v2661_v40  ;;  %v2664_v26 = vadd.f32 %v5432_v10, %v6927_v33  ;;  %v5494_v37 = vpop.f32.mrf.mxu0 }
 0x1b3   : > { %v2564_v23 = vpop.f32.mrf.mxu1 }
 0x1b4   : > { %v7035_v3 = vadd.f32 %v5494_v37, %v2664_v26  ;;  %v2663_v45 = vadd.f32 %v2564_v23, %v6930_v21  ;;  %v2994_v29 = vpop.f32.mrf.mxu0 }
 0x1b5   : > { %v5435_v62 = vpop.f32.mrf.mxu1 }
 0x1b6   : > { %v7038_v0 = vadd.f32 %v2994_v29, %v2663_v45  ;;  %v2666_v18 = vadd.f32 %v5435_v62, %v6933_v15  ;;  %v5497_v43 = vpop.f32.mrf.mxu0 }
 0x1b7   : > { %v2574_v22 = vpop.f32.mrf.mxu1 }
 0x1b8   : > { %v7041_v13 = vadd.f32 %v5497_v43, %v2666_v18  ;;  %v2665_v36 = vadd.f32 %v2574_v22, %v6936_v57  ;;  %v3004_v9 = vpop.f32.mrf.mxu0 }
 0x1b9   : > { %v5438_v33 = vpop.f32.mrf.mxu1 }
 0x1ba   : > { %v7044_v28 = vadd.f32 %v3004_v9, %v2665_v36  ;;  %v2668_v51 = vadd.f32 %v5438_v33, %v6939_v46  ;;  %v5500_v49 = vpop.f32.mrf.mxu0 }
 0x1bb   : > { %v2584_v21 = vpop.f32.mrf.mxu1 }
 0x1bc   : > { %v7047_v19 = vadd.f32 %v5500_v49, %v2668_v51  ;;  %v2667_v20 = vadd.f32 %v2584_v21, %v6942_v1  ;;  %v3014_v61 = vpop.f32.mrf.mxu0 }
 0x1bd   : > { %v5441_v15 = vpop.f32.mrf.mxu1 }
 0x1be   : > { %v7050_v52 = vadd.f32 %v3014_v61, %v2667_v20  ;;  %v2670_v27 = vadd.f32 %v5441_v15, %v6945_v55  ;;  %v5503_v63 = vpop.f32.mrf.mxu0 }
 0x1bf   : > { %v2594_v57 = vpop.f32.mrf.mxu1 }
 0x1c0   : > { %v7053_v31 = vadd.f32 %v5503_v63, %v2670_v27  ;;  %v2669_v47 = vadd.f32 %v2594_v57, %v6948_v2  ;;  %v3024_v40 = vpop.f32.mrf.mxu0 }
 0x1c1   : > { %v5444_v46 = vpop.f32.mrf.mxu1 }
 0x1c2   : > { %v7056_v5 = vadd.f32 %v3024_v40, %v2669_v47  ;;  %v2672_v10 = vadd.f32 %v5444_v46, %v6951_v24  ;;  %v5506_v26 = vpop.f32.mrf.mxu0 }
 0x1c3   : > { %v2604_v1 = vpop.f32.mrf.mxu1 }
 0x1c4   : > { %v7059_v37 = vadd.f32 %v5506_v26, %v2672_v10  ;;  %v2671_v23 = vadd.f32 %v2604_v1, %v6954_v12  ;;  %v3034_v45 = vpop.f32.mrf.mxu0 }
 0x1c5   : > { %v5447_v55 = vpop.f32.mrf.mxu1 }
 0x1c6   : > { %v7062_v29 = vadd.f32 %v3034_v45, %v2671_v23  ;;  %v2674_v62 = vadd.f32 %v5447_v55, %v6957_v30  ;;  %v5509_v18 = vpop.f32.mrf.mxu0 }
 0x1c7   : > { %v2614_v2 = vpop.f32.mrf.mxu1 }
 0x1c8   : > { %v7065_v43 = vadd.f32 %v5509_v18, %v2674_v62  ;;  %v2673_v22 = vadd.f32 %v2614_v2, %v6960_v39  ;;  %v3044_v36 = vpop.f32.mrf.mxu0 }
 0x1c9   : > { %v5450_v24 = vpop.f32.mrf.mxu1 }
 0x1ca   : > { %v7068_v9 = vadd.f32 %v3044_v36, %v2673_v22  ;;  %v2676_v33 = vadd.f32 %v5450_v24, %v6963_v8  ;;  %v5512_v51 = vpop.f32.mrf.mxu0 }
 0x1cb   : > { %v2624_v12 = vpop.f32.mrf.mxu1 }
 0x1cc   : > { %v7071_v49 = vadd.f32 %v5512_v51, %v2676_v33  ;;  %v2675_v21 = vadd.f32 %v2624_v12, %v6966_v54  ;;  %v3054_v20 = vpop.f32.mrf.mxu0  ;;  %v7086_v54 = vld [vmem:[%s7242_s2] ss:$0 sm:$0xff] }
 0x1cd   : > { %v5453_v30 = vpop.f32.mrf.mxu1 }
 0x1ce   : > { %v7074_v61 = vadd.f32 %v3054_v20, %v2675_v21  ;;  %v2678_v15 = vadd.f32 %v5453_v30, %v6969_v35  ;;  %v5515_v27 = vpop.f32.mrf.mxu0 }
 0x1cf   : > { %v2634_v39 = vpop.f32.mrf.mxu1 }
 0x1d0   : > { %v7077_v63 = vadd.f32 %v5515_v27, %v2678_v15  ;;  %v2677_v57 = vadd.f32 %v2634_v39, %v6972_v53  ;;  %v3064_v47 = vpop.f32.mrf.mxu0 }
 0x1d1   : > { %v5526_v8 = vpop.f32.mrf.mxu1 }
 0x1d2   : > { %v7080_v40 = vadd.f32 %v3064_v47, %v2677_v57  ;;  %v3504_v46 = vadd.f32 %v5526_v8, %v6975_v17  ;;  %v5588_v10 = vpop.f32.mrf.mxu0 }
 0x1d3   : > { %v3324_v26 = vpop.f32.mrf.mxu1 }
 0x1d4   : > { %v3934_v35 = vadd.f32 %v5588_v10, %v3504_v46  ;;  %v3503_v1 = vadd.f32 %v3324_v26, %v6978_v41  ;;  %v3754_v23 = vpop.f32.mrf.mxu0 }
 0x1d5   : > { %v5529_v45 = vpop.f32.mrf.mxu1 }
 0x1d6   : > { %v3977_v53 = vadd.f32 %v7086_v54, %v3934_v35  ;;  %v3933_v55 = vadd.f32 %v3754_v23, %v3503_v1  ;;  %v3506_v62 = vadd.f32 %v5529_v45, %v6981_v11  ;;  %v5591_v18 = vpop.f32.mrf.mxu0 }
 0x1d7   : > { %v3334_v2 = vpop.f32.mrf.mxu1 }
 0x1d8   : > { %v4685_v17 = vmul.f32 -1.442695, %v3977_v53  ;;  %v3976_v22 = vadd.f32 %v7086_v54, %v3933_v55  ;;  %v3936_v36 = vadd.f32 %v5591_v18, %v3506_v62  ;;  %v3505_v24 = vadd.f32 %v3334_v2, %v6984_v48  ;;  %v3764_v33 = vpop.f32.mrf.mxu0 }
 0x1d9   : > { %v5532_v51 = vpop.f32.mrf.mxu1 }
 0x1da   : > { %5658 = vpow2.f32 %v4685_v17  ;;  %v4684_v12 = vmul.f32 -1.442695, %v3976_v22  ;;  %v3979_v41 = vadd.f32 %v7086_v54, %v3936_v36  ;;  %v3935_v21 = vadd.f32 %v3764_v33, %v3505_v24  ;;  %v5594_v20 = vpop.f32.mrf.mxu0 }
 0x1db   : > { %v3508_v30 = vadd.f32 %v5532_v51, %v6987_v60  ;;  %v3344_v15 = vpop.f32.mrf.mxu1 }
 0x1dc   : > { %5660 = vpow2.f32 %v4684_v12  ;;  %v4687_v11 = vmul.f32 -1.442695, %v3979_v41  ;;  %v3978_v27 = vadd.f32 %v7086_v54, %v3935_v21  ;;  %v3507_v39 = vadd.f32 %v3344_v15, %v6990_v4  ;;  %v3774_v57 = vpop.f32.mrf.mxu0 }
 0x1dd   : > { %v3938_v47 = vadd.f32 %v5594_v20, %v3508_v30  ;;  %v5535_v48 = vpop.f32.mrf.mxu1 }
 0x1de   : > { %5662 = vpow2.f32 %v4687_v11  ;;  %v4686_v8 = vmul.f32 -1.442695, %v3978_v27  ;;  %v3937_v46 = vadd.f32 %v3774_v57, %v3507_v39  ;;  %v3510_v10 = vadd.f32 %v5535_v48, %v6993_v7  ;;  %v5597_v26 = vpop.f32.mrf.mxu0 }
 0x1df   : > { %v3981_v35 = vadd.f32 %v7086_v54, %v3938_v47  ;;  %v3354_v1 = vpop.f32.mrf.mxu1 }
 0x1e0   : > { %5664 = vpow2.f32 %v4686_v8  ;;  %v3980_v60 = vadd.f32 %v7086_v54, %v3937_v46  ;;  %v3940_v23 = vadd.f32 %v5597_v26, %v3510_v10  ;;  %v3509_v45 = vadd.f32 %v3354_v1, %v6996_v25  ;;  %v3784_v53 = vpop.f32.mrf.mxu0 }
 0x1e1   : > { %v4689_v4 = vmul.f32 -1.442695, %v3981_v35  ;;  %v5538_v55 = vpop.f32.mrf.mxu1 }
 0x1e2   : > { %v4688_v62 = vmul.f32 -1.442695, %v3980_v60  ;;  %v3983_v18 = vadd.f32 %v7086_v54, %v3940_v23  ;;  %v3939_v2 = vadd.f32 %v3784_v53, %v3509_v45  ;;  %v3512_v17 = vadd.f32 %v5538_v55, %v6999_v32  ;;  %v5600_v7 = vpop.f32.mrf.mxu0 }
 0x1e3   : > { %5666 = vpow2.f32 %v4689_v4  ;;  %v3364_v22 = vpop.f32.mrf.mxu1 }
 0x1e4   : > { %5668 = vpow2.f32 %v4688_v62  ;;  %v4691_v36 = vmul.f32 -1.442695, %v3983_v18  ;;  %v3982_v24 = vadd.f32 %v7086_v54, %v3939_v2  ;;  %v3942_v33 = vadd.f32 %v5600_v7, %v3512_v17  ;;  %v3794_v51 = vpop.f32.mrf.mxu0 }
 0x1e5   : > { %v3511_v25 = vadd.f32 %v3364_v22, %v7002_v56  ;;  %v5541_v12 = vpop.f32.mrf.mxu1 }
 0x1e6   : > { %5670 = vpow2.f32 %v4691_v36  ;;  %v4690_v41 = vmul.f32 -1.442695, %v3982_v24  ;;  %v3985_v21 = vadd.f32 %v7086_v54, %v3942_v33  ;;  %v3514_v20 = vadd.f32 %v5541_v12, %v7005_v38  ;;  %v5603_v30 = vpop.f32.mrf.mxu0 }
 0x1e7   : > { %v5659_v32 = vpop.eup %5658  ;;  %v3941_v15 = vadd.f32 %v3794_v51, %v3511_v25  ;;  %v3374_v11 = vpop.f32.mrf.mxu1 }
 0x1e8   : > { %v4121_v27 = vadd.f32 1.0, %v5659_v32  ;;  %5672 = vpow2.f32 %v4690_v41  ;;  %v4693_v39 = vmul.f32 -1.442695, %v3985_v21  ;;  %v3944_v57 = vadd.f32 %v5603_v30, %v3514_v20  ;;  %v3804_v47 = vpop.f32.mrf.mxu0 }
 0x1e9   : > { %v5661_v48 = vpop.eup %5660  ;;  %v3984_v8 = vadd.f32 %v7086_v54, %v3941_v15  ;;  %v3513_v56 = vadd.f32 %v3374_v11, %v7008_v14  ;;  %v5544_v46 = vpop.f32.mrf.mxu1 }
 0x1ea   : > { %5674 = vrcp.f32 %v4121_v27  ;;  %v4120_v10 = vadd.f32 1.0, %v5661_v48  ;;  %v3987_v26 = vadd.f32 %v7086_v54, %v3944_v57  ;;  %v3516_v38 = vadd.f32 %v5544_v46, %v7011_v44  ;;  %v5606_v35 = vpop.f32.mrf.mxu0 }
 0x1eb   : > { %v5663_v1 = vpop.eup %5662  ;;  %5676 = vpow2.f32 %v4693_v39  ;;  %v4692_v60 = vmul.f32 -1.442695, %v3984_v8  ;;  %v3943_v23 = vadd.f32 %v3804_v47, %v3513_v56  ;;  %v3384_v45 = vpop.f32.mrf.mxu1 }
 0x1ec   : > { %5678 = vrcp.f32 %v4120_v10  ;;  %v4123_v53 = vadd.f32 1.0, %v5663_v1  ;;  %v4695_v4 = vmul.f32 -1.442695, %v3987_v26  ;;  %v3946_v55 = vadd.f32 %v5606_v35, %v3516_v38  ;;  %v3814_v62 = vpop.f32.mrf.mxu0 }
 0x1ed   : > { %v5665_v18 = vpop.eup %5664  ;;  %5680 = vpow2.f32 %v4692_v60  ;;  %v3986_v14 = vadd.f32 %v7086_v54, %v3943_v23  ;;  %v3515_v2 = vadd.f32 %v3384_v45, %v7014_v34  ;;  %v5547_v17 = vpop.f32.mrf.mxu1 }
 0x1ee   : > { %5682 = vrcp.f32 %v4123_v53  ;;  %v4122_v44 = vadd.f32 1.0, %v5665_v18  ;;  %v3989_v7 = vadd.f32 %v7086_v54, %v3946_v55  ;;  %v3518_v22 = vadd.f32 %v5547_v17, %v7017_v50  ;;  %v5609_v36 = vpop.f32.mrf.mxu0 }
 0x1ef   : > { %5684 = vpow2.f32 %v4695_v4  ;;  %v4694_v24 = vmul.f32 -1.442695, %v3986_v14  ;;  %v3945_v33 = vadd.f32 %v3814_v62, %v3515_v2  ;;  %v3394_v51 = vpop.f32.mrf.mxu1 }
 0x1f0   : > { %v5667_v25 = vpop.eup %5666  ;;  %5686 = vrcp.f32 %v4122_v44  ;;  %v4697_v12 = vmul.f32 -1.442695, %v3989_v7  ;;  %v3948_v41 = vadd.f32 %v5609_v36, %v3518_v22  ;;  %v3517_v21 = vadd.f32 %v3394_v51, %v7020_v58  ;;  %v3824_v34 = vpop.f32.mrf.mxu0 }
 0x1f1   : > { %v5669_v20 = vpop.eup %5668  ;;  %v4125_v30 = vadd.f32 1.0, %v5667_v25  ;;  %5688 = vpow2.f32 %v4694_v24  ;;  %v3988_v32 = vadd.f32 %v7086_v54, %v3945_v33  ;;  %v5550_v15 = vpop.f32.mrf.mxu1 }
 0x1f2   : > { %v4124_v50 = vadd.f32 1.0, %v5669_v20  ;;  %5690 = vpow2.f32 %v4697_v12  ;;  %v3991_v11 = vadd.f32 %v7086_v54, %v3948_v41  ;;  %v3947_v27 = vadd.f32 %v3824_v34, %v3517_v21  ;;  %v5612_v39 = vpop.f32.mrf.mxu0 }
 0x1f3   : > { %v5671_v57 = vpop.eup %5670  ;;  %5692 = vrcp.f32 %v4125_v30  ;;  %v4696_v47 = vmul.f32 -1.442695, %v3988_v32  ;;  %v3520_v48 = vadd.f32 %v5550_v15, %v7023_v6  ;;  %v3404_v58 = vpop.f32.mrf.mxu1 }
 0x1f4   : > { %5694 = vrcp.f32 %v4124_v50  ;;  %v4127_v8 = vadd.f32 1.0, %v5671_v57  ;;  %v4699_v56 = vmul.f32 -1.442695, %v3991_v11  ;;  %v3990_v46 = vadd.f32 %v7086_v54, %v3947_v27  ;;  %v3834_v10 = vpop.f32.mrf.mxu0 }
 0x1f5   : > { %v5673_v26 = vpop.eup %5672  ;;  %5696 = vpow2.f32 %v4696_v47  ;;  %v3950_v38 = vadd.f32 %v5612_v39, %v3520_v48  ;;  %v3519_v35 = vadd.f32 %v3404_v58, %v7026_v16  ;;  %v5553_v6 = vpop.f32.mrf.mxu1 }
 0x1f6   : > { %5698 = vrcp.f32 %v4127_v8  ;;  %v4126_v1 = vadd.f32 1.0, %v5673_v26  ;;  %v4698_v60 = vmul.f32 -1.442695, %v3990_v46  ;;  %v3522_v23 = vadd.f32 %v5553_v6, %v7029_v59  ;;  %v5615_v45 = vpop.f32.mrf.mxu0 }
 0x1f7   : > { %v5675_v53 = vpop.eup %5674  ;;  %5700 = vpow2.f32 %v4699_v56  ;;  %v3993_v4 = vadd.f32 %v7086_v54, %v3950_v38  ;;  %v3949_v55 = vadd.f32 %v3834_v10, %v3519_v35  ;;  %v3414_v62 = vpop.f32.mrf.mxu1 }
 0x1f8   : > { %v5677_v18 = vpop.eup %5676  ;;  %4230 = vst.msk [vmem:[%s7124_s20 + $0x8] sm:$0xff] %vm4228_vm1, %v5675_v53  ;;  %5702 = vrcp.f32 %v4126_v1  ;;  %v3952_v14 = vadd.f32 %v5615_v45, %v3522_v23  ;;  %v3521_v16 = vadd.f32 %v3414_v62, %v7032_v42  ;;  %v3844_v2 = vpop.f32.mrf.mxu0 }
 0x1f9   : > { %v5679_v17 = vpop.eup %5678  ;;  %v4129_v44 = vadd.f32 1.0, %v5677_v18  ;;  %5704 = vpow2.f32 %v4698_v60  ;;  %v4701_v59 = vmul.f32 -1.442695, %v3993_v4  ;;  %v3992_v7 = vadd.f32 %v7086_v54, %v3949_v55  ;;  %v5556_v22 = vpop.f32.mrf.mxu1 }
 0x1fa   : > { %v5681_v36 = vpop.eup %5680  ;;  %4229 = vst.msk [vmem:[%s7124_s20] sm:$0xff] %vm4228_vm1, %v5679_v17  ;;  %v3995_v24 = vadd.f32 %v7086_v54, %v3952_v14  ;;  %v3951_v33 = vadd.f32 %v3844_v2, %v3521_v16  ;;  %v3524_v51 = vadd.f32 %v5556_v22, %v7035_v3  ;;  %v5618_v25 = vpop.f32.mrf.mxu0 }
 0x1fb   : > { %v5683_v12 = vpop.eup %5682  ;;  %5706 = vrcp.f32 %v4129_v44  ;;  %v4128_v42 = vadd.f32 1.0, %v5681_v36  ;;  %v4700_v41 = vmul.f32 -1.442695, %v3992_v7  ;;  %v3424_v21 = vpop.f32.mrf.mxu1 }
 0x1fc   : > { %v5685_v34 = vpop.eup %5684  ;;  %4232 = vst.msk [vmem:[%s7124_s20 + $0x18] sm:$0xff] %vm4228_vm1, %v5683_v12  ;;  %5708 = vpow2.f32 %v4701_v59  ;;  %v4703_v20 = vmul.f32 -1.442695, %v3995_v24  ;;  %v3994_v30 = vadd.f32 %v7086_v54, %v3951_v33  ;;  %v3954_v32 = vadd.f32 %v5618_v25, %v3524_v51  ;;  %v3854_v15 = vpop.f32.mrf.mxu0 }
 0x1fd   : > { %v5687_v50 = vpop.eup %5686  ;;  %5710 = vrcp.f32 %v4128_v42  ;;  %v4131_v11 = vadd.f32 1.0, %v5685_v34  ;;  %v3523_v3 = vadd.f32 %v3424_v21, %v7038_v0  ;;  %v5559_v27 = vpop.f32.mrf.mxu1 }
 0x1fe   : > { %v5689_v39 = vpop.eup %5688  ;;  %4231 = vst.msk [vmem:[%s7124_s20 + $0x10] sm:$0xff] %vm4228_vm1, %v5687_v50  ;;  %5712 = vpow2.f32 %v4700_v41  ;;  %v3997_v57 = vadd.f32 %v7086_v54, %v3954_v32  ;;  %v3526_v47 = vadd.f32 %v5559_v27, %v7041_v13  ;;  %v5621_v48 = vpop.f32.mrf.mxu0  ;;  %v4702_v56 = vmul.f32 -1.442695, %v3994_v30 }
 0x1ff   : > { %v5691_v58 = vpop.eup %5690  ;;  %5714 = vrcp.f32 %v4131_v11  ;;  %v4130_v8 = vadd.f32 1.0, %v5689_v39  ;;  %v3953_v46 = vadd.f32 %v3854_v15, %v3523_v3  ;;  %v3434_v10 = vpop.f32.mrf.mxu1 }
 0x200   : > { %v5693_v26 = vpop.eup %5692  ;;  %v4133_v0 = vadd.f32 1.0, %v5691_v58  ;;  %5716 = vpow2.f32 %v4703_v20  ;;  %v4705_v38 = vmul.f32 -1.442695, %v3997_v57  ;;  %v3956_v35 = vadd.f32 %v5621_v48, %v3526_v47  ;;  %v3864_v6 = vpop.f32.mrf.mxu0 }
 0x201   : > { %v5695_v1 = vpop.eup %5694  ;;  %4234 = vst.msk [vmem:[%s7124_s20 + $0x28] sm:$0xff] %vm4228_vm1, %v5693_v26  ;;  %5718 = vrcp.f32 %v4130_v8  ;;  %v3996_v13 = vadd.f32 %v7086_v54, %v3953_v46  ;;  %v3525_v60 = vadd.f32 %v3434_v10, %v7044_v28  ;;  %v5562_v23 = vpop.f32.mrf.mxu1 }
 0x202   : > { %v5697_v45 = vpop.eup %5696  ;;  %4233 = vst.msk [vmem:[%s7124_s20 + $0x20] sm:$0xff] %vm4228_vm1, %v5695_v1  ;;  %5720 = vrcp.f32 %v4133_v0  ;;  %v3999_v53 = vadd.f32 %v7086_v54, %v3956_v35  ;;  %v3528_v4 = vadd.f32 %v5562_v23, %v7047_v19  ;;  %v5624_v55 = vpop.f32.mrf.mxu0 }
 0x203   : > { %v5699_v62 = vpop.eup %5698  ;;  %v4132_v18 = vadd.f32 1.0, %v5697_v45  ;;  %5722 = vpow2.f32 %v4702_v56  ;;  %v4704_v14 = vmul.f32 -1.442695, %v3996_v13  ;;  %v3955_v16 = vadd.f32 %v3864_v6, %v3525_v60  ;;  %v3444_v2 = vpop.f32.mrf.mxu1 }
 0x204   : > { %v5701_v17 = vpop.eup %5700  ;;  %4236 = vst.msk [vmem:[%s7124_s20 + $0x38] sm:$0xff] %vm4228_vm1, %v5699_v62  ;;  %5724 = vpow2.f32 %v4705_v38  ;;  %v4707_v28 = vmul.f32 -1.442695, %v3999_v53  ;;  %v3958_v44 = vadd.f32 %v5624_v55, %v3528_v4  ;;  %v3527_v59 = vadd.f32 %v3444_v2, %v7050_v52  ;;  %v3874_v7 = vpop.f32.mrf.mxu0 }
 0x205   : > { %v5703_v22 = vpop.eup %5702  ;;  %5726 = vrcp.f32 %v4132_v18  ;;  %v4135_v19 = vadd.f32 1.0, %v5701_v17  ;;  %v3998_v36 = vadd.f32 %v7086_v54, %v3955_v16  ;;  %v5565_v24 = vpop.f32.mrf.mxu1 }
 0x206   : > { %v5705_v33 = vpop.eup %5704  ;;  %4235 = vst.msk [vmem:[%s7124_s20 + $0x30] sm:$0xff] %vm4228_vm1, %v5703_v22  ;;  %5728 = vpow2.f32 %v4704_v14  ;;  %v4001_v51 = vadd.f32 %v7086_v54, %v3958_v44  ;;  %v3957_v25 = vadd.f32 %v3874_v7, %v3527_v59  ;;  %v3530_v12 = vadd.f32 %v5565_v24, %v7053_v31  ;;  %v5627_v42 = vpop.f32.mrf.mxu0 }
 0x207   : > { %5730 = vrcp.f32 %v4135_v19  ;;  %v4134_v52 = vadd.f32 1.0, %v5705_v33  ;;  %v4706_v41 = vmul.f32 -1.442695, %v3998_v36  ;;  %v3454_v21 = vpop.f32.mrf.mxu1 }
 0x208   : > { %v5707_v34 = vpop.eup %5706  ;;  %5732 = vpow2.f32 %v4707_v28  ;;  %v4709_v20 = vmul.f32 -1.442695, %v4001_v51  ;;  %v4000_v30 = vadd.f32 %v7086_v54, %v3957_v25  ;;  %v3960_v32 = vadd.f32 %v5627_v42, %v3530_v12  ;;  %v3884_v15 = vpop.f32.mrf.mxu0 }
 0x209   : > { %v5709_v50 = vpop.eup %5708  ;;  %4238 = vst.msk [vmem:[%s7124_s20 + $0x48] sm:$0xff] %vm4228_vm1, %v5707_v34  ;;  %5734 = vrcp.f32 %v4134_v52  ;;  %v3529_v11 = vadd.f32 %v3454_v21, %v7056_v5  ;;  %v5568_v31 = vpop.f32.mrf.mxu1 }
 0x20a   : > { %v5711_v3 = vpop.eup %5710  ;;  %v4137_v27 = vadd.f32 1.0, %v5709_v50  ;;  %5736 = vpow2.f32 %v4706_v41  ;;  %v4708_v39 = vmul.f32 -1.442695, %v4000_v30  ;;  %v4003_v57 = vadd.f32 %v7086_v54, %v3960_v32  ;;  %v5630_v47 = vpop.f32.mrf.mxu0 }
 0x20b   : > { %v5713_v48 = vpop.eup %5712  ;;  %4237 = vst.msk [vmem:[%s7124_s20 + $0x40] sm:$0xff] %vm4228_vm1, %v5711_v3  ;;  %5738 = vpow2.f32 %v4709_v20  ;;  %v3959_v58 = vadd.f32 %v3884_v15, %v3529_v11  ;;  %v3532_v8 = vadd.f32 %v5568_v31, %v7059_v37  ;;  %v3464_v56 = vpop.f32.mrf.mxu1 }
 0x20c   : > { %v5715_v46 = vpop.eup %5714  ;;  %5740 = vrcp.f32 %v4137_v27  ;;  %v4136_v5 = vadd.f32 1.0, %v5713_v48  ;;  %v4711_v10 = vmul.f32 -1.442695, %v4003_v57  ;;  %v3531_v26 = vadd.f32 %v3464_v56, %v7062_v29  ;;  %v3894_v0 = vpop.f32.mrf.mxu0 }
 0x20d   : > { %v5717_v38 = vpop.eup %5716  ;;  %4240 = vst.msk [vmem:[%s7124_s20 + $0x58] sm:$0xff] %vm4228_vm1, %v5715_v46  ;;  %5742 = vpow2.f32 %v4708_v39  ;;  %v4002_v35 = vadd.f32 %v7086_v54, %v3959_v58  ;;  %v3962_v6 = vadd.f32 %v5630_v47, %v3532_v8  ;;  %v5571_v1 = vpop.f32.mrf.mxu1 }
 0x20e   : > { %v5719_v13 = vpop.eup %5718  ;;  %5744 = vrcp.f32 %v4136_v5  ;;  %v4139_v37 = vadd.f32 1.0, %v5717_v38  ;;  %v3961_v60 = vadd.f32 %v3894_v0, %v3531_v26  ;;  %v3534_v23 = vadd.f32 %v5571_v1, %v7065_v43  ;;  %v5633_v45 = vpop.f32.mrf.mxu0 }
 0x20f   : > { %v5721_v53 = vpop.eup %5720  ;;  %4239 = vst.msk [vmem:[%s7124_s20 + $0x50] sm:$0xff] %vm4228_vm1, %v5719_v13  ;;  %5746 = vpow2.f32 %v4711_v10  ;;  %v4710_v29 = vmul.f32 -1.442695, %v4002_v35  ;;  %v4005_v4 = vadd.f32 %v7086_v54, %v3962_v6  ;;  %v3474_v55 = vpop.f32.mrf.mxu1 }
 0x210   : > { %v5723_v62 = vpop.eup %5722  ;;  %4242 = vst.msk [vmem:[%s7124_s20 + $0x68] sm:$0xff] %vm4228_vm1, %v5721_v53  ;;  %5748 = vrcp.f32 %v4139_v37  ;;  %v4004_v18 = vadd.f32 %v7086_v54, %v3961_v60  ;;  %v3964_v14 = vadd.f32 %v5633_v45, %v3534_v23  ;;  %v3533_v16 = vadd.f32 %v3474_v55, %v7068_v9  ;;  %v3904_v43 = vpop.f32.mrf.mxu0 }
 0x211   : > { %v5725_v2 = vpop.eup %5724  ;;  %v4138_v17 = vadd.f32 1.0, %v5723_v62  ;;  %5750 = vpow2.f32 %v4710_v29  ;;  %v4713_v28 = vmul.f32 -1.442695, %v4005_v4  ;;  %v5574_v44 = vpop.f32.mrf.mxu1 }
 0x212   : > { %v5727_v59 = vpop.eup %5726  ;;  %v4141_v7 = vadd.f32 1.0, %v5725_v2  ;;  %v4007_v22 = vadd.f32 %v7086_v54, %v3964_v14  ;;  %v3963_v19 = vadd.f32 %v3904_v43, %v3533_v16  ;;  %v5636_v36 = vpop.f32.mrf.mxu0  ;;  %v4712_v33 = vmul.f32 -1.442695, %v4004_v18 }
 0x213   : > { %v5729_v24 = vpop.eup %5728  ;;  %4241 = vst.msk [vmem:[%s7124_s20 + $0x60] sm:$0xff] %vm4228_vm1, %v5727_v59  ;;  %5752 = vrcp.f32 %v4138_v17  ;;  %v3536_v9 = vadd.f32 %v5574_v44, %v7071_v49  ;;  %v3484_v51 = vpop.f32.mrf.mxu1 }
 0x214   : > { %v5731_v25 = vpop.eup %5730  ;;  %5754 = vrcp.f32 %v4141_v7  ;;  %v4140_v12 = vadd.f32 1.0, %v5729_v24  ;;  %v4006_v42 = vadd.f32 %v7086_v54, %v3963_v19  ;;  %v3914_v52 = vpop.f32.mrf.mxu0  ;;  %v4715_v21 = vmul.f32 -1.442695, %v4007_v22 }
 0x215   : > { %v5733_v41 = vpop.eup %5732  ;;  %4244 = vst.msk [vmem:[%s7124_s20 + $0x78] sm:$0xff] %vm4228_vm1, %v5731_v25  ;;  %5756 = vpow2.f32 %v4713_v28  ;;  %v3966_v34 = vadd.f32 %v5636_v36, %v3536_v9  ;;  %v3535_v20 = vadd.f32 %v3484_v51, %v7074_v61  ;;  %v5577_v30 = vpop.f32.mrf.mxu1 }
 0x216   : > { %v5735_v32 = vpop.eup %5734  ;;  %5758 = vrcp.f32 %v4140_v12  ;;  %v4143_v49 = vadd.f32 1.0, %v5733_v41  ;;  %v3538_v15 = vadd.f32 %v5577_v30, %v7077_v63  ;;  %v5639_v50 = vpop.f32.mrf.mxu0  ;;  %v4714_v31 = vmul.f32 -1.442695, %v4006_v42 }
 0x217   : > { %v5737_v11 = vpop.eup %5736  ;;  %4243 = vst.msk [vmem:[%s7124_s20 + $0x70] sm:$0xff] %vm4228_vm1, %v5735_v32  ;;  %5760 = vpow2.f32 %v4712_v33  ;;  %v4009_v3 = vadd.f32 %v7086_v54, %v3966_v34  ;;  %v3965_v27 = vadd.f32 %v3914_v52, %v3535_v20  ;;  %v3494_v39 = vpop.f32.mrf.mxu1 }
 0x218   : > { %v5739_v57 = vpop.eup %5738  ;;  %5762 = vrcp.f32 %v4143_v49  ;;  %v4142_v61 = vadd.f32 1.0, %v5737_v11  ;;  %v3968_v47 = vadd.f32 %v5639_v50, %v3538_v15  ;;  %v3537_v48 = vadd.f32 %v3494_v39, %v7080_v40  ;;  %v3924_v56 = vpop.f32.mrf.mxu0 }
 0x219   : > { %v5741_v58 = vpop.eup %5740  ;;  %v4145_v63 = vadd.f32 1.0, %v5739_v57  ;;  %5764 = vpow2.f32 %v4715_v21  ;;  %v4008_v8 = vadd.f32 %v7086_v54, %v3965_v27  ;;  %v4717_v5 = vmul.f32 -1.442695, %v4009_v3 }
 0x21a   : > { %v5743_v46 = vpop.eup %5742  ;;  %4246 = vst.msk [vmem:[%s7124_s20 + $0x88] sm:$0xff] %vm4228_vm1, %v5741_v58  ;;  %5766 = vrcp.f32 %v4142_v61  ;;  %v4011_v10 = vadd.f32 %v7086_v54, %v3968_v47  ;;  %v3967_v26 = vadd.f32 %v3924_v56, %v3537_v48 }
 0x21b   : > { %v5745_v0 = vpop.eup %5744  ;;  %5768 = vrcp.f32 %v4145_v63  ;;  %v4144_v38 = vadd.f32 1.0, %v5743_v46  ;;  %v4716_v35 = vmul.f32 -1.442695, %v4008_v8 }
 0x21c   : > { %v5747_v40 = vpop.eup %5746  ;;  %4245 = vst.msk [vmem:[%s7124_s20 + $0x80] sm:$0xff] %vm4228_vm1, %v5745_v0  ;;  %5770 = vpow2.f32 %v4714_v31  ;;  %v4010_v6 = vadd.f32 %v7086_v54, %v3967_v26  ;;  %v4719_v60 = vmul.f32 -1.442695, %v4011_v10 }
 0x21d   : > { %v5749_v1 = vpop.eup %5748  ;;  %5772 = vrcp.f32 %v4144_v38  ;;  %v4147_v13 = vadd.f32 1.0, %v5747_v40 }
 0x21e   : > { %v5751_v37 = vpop.eup %5750  ;;  %4248 = vst.msk [vmem:[%s7124_s20 + $0x98] sm:$0xff] %vm4228_vm1, %v5749_v1  ;;  %5774 = vpow2.f32 %v4717_v5  ;;  %v4718_v45 = vmul.f32 -1.442695, %v4010_v6 }
 0x21f   : > { %5776 = vrcp.f32 %v4147_v13  ;;  %v4146_v23 = vadd.f32 1.0, %v5751_v37 }
 0x220   : > { %v5753_v53 = vpop.eup %5752  ;;  %5778 = vpow2.f32 %v4716_v35 }
 0x221   : > { %v5755_v29 = vpop.eup %5754  ;;  %4247 = vst.msk [vmem:[%s7124_s20 + $0x90] sm:$0xff] %vm4228_vm1, %v5753_v53  ;;  %5780 = vrcp.f32 %v4146_v23 }
 0x222   : > { %v5757_v54 = vpop.eup %5756  ;;  %4250 = vst.msk [vmem:[%s7124_s20 + $0xa8] sm:$0xff] %vm4228_vm1, %v5755_v29  ;;  %5782 = vpow2.f32 %v4719_v60 }
 0x223   : > { %v5759_v4 = vpop.eup %5758  ;;  %v4149_v55 = vadd.f32 1.0, %v5757_v54  ;;  %5784 = vpow2.f32 %v4718_v45 }
 0x224   : > { %v5761_v62 = vpop.eup %5760  ;;  %4249 = vst.msk [vmem:[%s7124_s20 + $0xa0] sm:$0xff] %vm4228_vm1, %v5759_v4 }
 0x225   : > { %v5763_v18 = vpop.eup %5762  ;;  %5786 = vrcp.f32 %v4149_v55  ;;  %v4148_v14 = vadd.f32 1.0, %v5761_v62 }
 0x226   : > { %v5765_v16 = vpop.eup %5764  ;;  %4252 = vst.msk [vmem:[%s7124_s20 + $0xb8] sm:$0xff] %vm4228_vm1, %v5763_v18 }
 0x227   : > { %v5767_v43 = vpop.eup %5766  ;;  %5788 = vrcp.f32 %v4148_v14  ;;  %v4151_v2 = vadd.f32 1.0, %v5765_v16 }
 0x228   : > { %v5769_v17 = vpop.eup %5768  ;;  %4251 = vst.msk [vmem:[%s7124_s20 + $0xb0] sm:$0xff] %vm4228_vm1, %v5767_v43 }
 0x229   : > { %v5771_v28 = vpop.eup %5770  ;;  %4254 = vst.msk [vmem:[%s7124_s20 + $0xc8] sm:$0xff] %vm4228_vm1, %v5769_v17  ;;  %5790 = vrcp.f32 %v4151_v2 }
 0x22a   : > { %v5773_v44 = vpop.eup %5772  ;;  %v4150_v59 = vadd.f32 1.0, %v5771_v28 }
 0x22b   : > { %v5775_v7 = vpop.eup %5774  ;;  %4253 = vst.msk [vmem:[%s7124_s20 + $0xc0] sm:$0xff] %vm4228_vm1, %v5773_v44 }
 0x22c   : > { %v5777_v22 = vpop.eup %5776  ;;  %5792 = vrcp.f32 %v4150_v59  ;;  %v4153_v19 = vadd.f32 1.0, %v5775_v7 }
 0x22d   : > { %v5779_v36 = vpop.eup %5778  ;;  %4256 = vst.msk [vmem:[%s7124_s20 + $0xd8] sm:$0xff] %vm4228_vm1, %v5777_v22 }
 0x22e   : > { %v5781_v24 = vpop.eup %5780  ;;  %5794 = vrcp.f32 %v4153_v19  ;;  %v4152_v33 = vadd.f32 1.0, %v5779_v36 }
 0x22f   : > { %v5783_v9 = vpop.eup %5782  ;;  %4255 = vst.msk [vmem:[%s7124_s20 + $0xd0] sm:$0xff] %vm4228_vm1, %v5781_v24 }
 0x230   : > { %v5785_v51 = vpop.eup %5784  ;;  %5796 = vrcp.f32 %v4152_v33  ;;  %v4155_v25 = vadd.f32 1.0, %v5783_v9 }
 0x231   : > { %v4154_v12 = vadd.f32 1.0, %v5785_v51 }
 0x232   : > { %v5787_v42 = vpop.eup %5786  ;;  %5798 = vrcp.f32 %v4155_v25 }
 0x233   : > { %4258 = vst.msk [vmem:[%s7124_s20 + $0xe8] sm:$0xff] %vm4228_vm1, %v5787_v42  ;;  %5800 = vrcp.f32 %v4154_v12 }
 0x234   : > { %v5789_v52 = vpop.eup %5788 }
 0x235   : > { %4257 = vst.msk [vmem:[%s7124_s20 + $0xe0] sm:$0xff] %vm4228_vm1, %v5789_v52 }
 0x236   : > { %v5791_v41 = vpop.eup %5790 }
 0x237   : > { %4260 = vst.msk [vmem:[%s7124_s20 + $0xf8] sm:$0xff] %vm4228_vm1, %v5791_v41 }
 0x239   : > { %v5793_v21 = vpop.eup %5792 }
 0x23a   : > { %4259 = vst.msk [vmem:[%s7124_s20 + $0xf0] sm:$0xff] %vm4228_vm1, %v5793_v21 }
 0x23b   : > { %v5795_v34 = vpop.eup %5794 }
 0x23c   : > { %4262 = vst.msk [vmem:[%s7124_s20 + $0x108] sm:$0xff] %vm4228_vm1, %v5795_v34 }
 0x23d   : > { %v5797_v20 = vpop.eup %5796 }
 0x23e   : > { %4261 = vst.msk [vmem:[%s7124_s20 + $0x100] sm:$0xff] %vm4228_vm1, %v5797_v20 }
 0x23f   : > { %v5799_v30 = vpop.eup %5798 }
 0x240   : > { %v5801_v32 = vpop.eup %5800  ;;  %4264 = vst.msk [vmem:[%s7124_s20 + $0x118] sm:$0xff] %vm4228_vm1, %v5799_v30 }
 0x241   : > { %4263 = vst.msk [vmem:[%s7124_s20 + $0x110] sm:$0xff] %vm4228_vm1, %v5801_v32 }
 0x242 PF: > { %s13_s12 = sadd.s32 1, %s5808_s12  }
 0x243   : > { %p10_p4 = scmp.ge.s32.totalorder %s13_s12, 4  }
 0x245   :  { %12 = sbr.rel (!%p10_p4) target bundleno = 1 (0x1), region = 70 }

</bundles_post_ra>
